<compile_context>
chip_gen: v7x
topology: tpu7x:2x2x1
jax: 0.10.0
libtpu: 0.0.40
codegen_flags: <defaults>
</compile_context>

<pallas_src>
import functools

import jax
import jax.numpy as jnp
from jax.experimental import pallas as pl
from jax.experimental.pallas import tpu as pltpu

_HIGHEST = jax.lax.Precision.HIGHEST


def _round8(n):
    return (n + 7) // 8 * 8


def _full_spec(shape):
    zeros = (0,) * len(shape)
    return pl.BlockSpec(tuple(shape), lambda: zeros)


# ---------------------------------------------------------------------------
# Fused forward kernel: the whole model in one grid-less pallas_call.
# ---------------------------------------------------------------------------

def _fused_forward_kernel(data_ref, params_ref, x_out_ref, tmp_out_ref, *,
                          layout, steps, K, c_down, num_classes):
    """Whole forward pass, everything VMEM-resident.

    data_ref   : (num_channels, N*L)  batch folded into the lane axis
    params_ref : (R, 128) packed slab; static row-block layout in `layout`
    x_out_ref  : (maxdepth, N*L)      lane-dense; un-padded in the wrapper
    tmp_out_ref: (1, num_classes)
    """
    lanes = data_ref.shape[1]

    def block(name):
        r0, nr, nc = layout[name]
        return params_ref[r0:r0 + nr, 0:nc]          # static slice = free view

    def mm(a, b):
        return jnp.dot(a, b, precision=_HIGHEST,
                       preferred_element_type=jnp.float32)

    # ---- starting Conv2d(1, maxdepth, kernel=(num_channels, 1)) ------------
    # Collapses the EEG-channel axis -> one matmul over that axis.
    x = mm(block('w_start'), data_ref[...]) + block('b_start')

    # ---- down path: valid stride-1 Conv1d + ReLU (im2col via lane rolls) ---
    for i in range(steps):
        shifted = [x] + [pltpu.roll(x, shift=lanes - k, axis=1)
                         for k in range(1, K)]
        cols = jnp.concatenate(shifted, axis=0)       # (K*Cin, lanes), k-major
        x = jnp.maximum(mm(block(f'w_down{i}'), cols) + block(f'b_down{i}'),
                        0.0)

    # ---- classifier on the batch-mixed flatten ------------------------------
    # Weight pre-packed to rows [c*lanes + lane], zero rows on padded lanes.
    r0, _, _ = layout['w_cls']
    tmp = block('b_cls')                              # (1, num_classes)
    for c in range(c_down):
        w_c = params_ref[r0 + c * lanes:r0 + (c + 1) * lanes, 0:num_classes]
        tmp = tmp + mm(x[c:c + 1, :], w_c)
    tmp_out_ref[...] = tmp.astype(tmp_out_ref.dtype)

    # ---- up path: 1x1 Conv1d + ReLU -----------------------------------------
    for i in range(steps):
        x = jnp.maximum(mm(block(f'w_up{i}'), x) + block(f'b_up{i}'), 0.0)

    x_out_ref[...] = x.astype(x_out_ref.dtype)        # single lane-dense store


# ---------------------------------------------------------------------------
# Model wrapper (parameter setup / host-side packing = one-time glue;
#                all per-call compute happens in the single fused kernel)
# ---------------------------------------------------------------------------

class CortexCodecBasicUModelPallas:
    def __init__(self, key, *, batch_size, steps=3, num_channels=4,
                 num_samples=64, maxdepth=32, ourkernel=4, num_classes=19):
        self.batch_size = batch_size
        self.steps = steps
        self.num_channels = num_channels
        self.num_samples = num_samples
        self.maxdepth = maxdepth
        self.ourkernel = ourkernel
        self.num_classes = num_classes
        self.l_down = num_samples - steps * (ourkernel - 1)
        self.c_down = maxdepth // 2 ** steps
        self.lanes = batch_size * num_samples

        def nrm(k, shape, scale=0.1):
            return scale * jax.random.normal(k, shape, jnp.float32)

        keys = jax.random.split(key, 4 + 4 * steps)
        ki = iter(keys)

        # --- original-layout parameters (also used by the pure-JAX reference)
        # starting Conv2d(1, maxdepth, kernel=(num_channels, 1)):
        #   weight (maxdepth, 1, num_channels, 1) stored as (maxdepth, num_channels)
        self.w_start = nrm(next(ki), (maxdepth, num_channels))
        self.b_start = nrm(next(ki), (maxdepth,))

        # stepsdown[i]: Conv1d(maxdepth//2**i -> maxdepth//2**(i+1), k=ourkernel)
        self.w_down, self.b_down = [], []
        for i in range(steps):
            cin, cout = maxdepth // 2 ** i, maxdepth // 2 ** (i + 1)
            self.w_down.append(nrm(next(ki), (cout, cin, ourkernel)))
            self.b_down.append(nrm(next(ki), (cout,)))

        # stepsup[i]: Conv1d(maxdepth//2**(steps-i) -> maxdepth//2**(steps-i-1), k=1)
        self.w_up, self.b_up = [], []
        for i in range(steps):
            cin = maxdepth // 2 ** (steps - i)
            cout = maxdepth // 2 ** (steps - i - 1)
            self.w_up.append(nrm(next(ki), (cout, cin)))
            self.b_up.append(nrm(next(ki), (cout,)))

        # classifier Linear: in_features = numel of x.flatten() after down path
        feat = batch_size * self.c_down * self.l_down
        self.w_cls = nrm(next(ki), (num_classes, feat))
        self.b_cls = nrm(next(ki), (num_classes,))

        self.params_slab, self.layout = self._pack_params()

    # --- pack every parameter into one (R, 128) f32 slab (one-time, host) ---
    def _pack_params(self):
        lanes = self.lanes

        def bcast(b):                                  # bias -> full lane row
            return jnp.broadcast_to(b.reshape(-1, 1), (b.shape[0], lanes))

        blocks = [('w_start', self.w_start), ('b_start', bcast(self.b_start))]
        for i in range(self.steps):
            w = self.w_down[i]
            # im2col layout, k-major columns: col r = k*Cin + c  <->  w[o, c, k]
            blocks.append((f'w_down{i}',
                           jnp.transpose(w, (0, 2, 1)).reshape(w.shape[0], -1)))
            blocks.append((f'b_down{i}', bcast(self.b_down[i])))
        for i in range(self.steps):
            blocks.append((f'w_up{i}', self.w_up[i]))
            blocks.append((f'b_up{i}', bcast(self.b_up[i])))
        blocks.append(('b_cls', self.b_cls.reshape(1, -1)))

        # classifier weight -> (c_down*lanes, num_classes), row = c*lanes +
        # n*num_samples + t; zero rows on the padded tail (t >= l_down).
        w4 = self.w_cls.reshape(self.num_classes, self.batch_size,
                                self.c_down, self.l_down)
        wt = jnp.transpose(w4, (2, 1, 3, 0))           # (c_down, N, l_down, Q)
        wt = jnp.pad(wt, ((0, 0), (0, 0),
                          (0, self.num_samples - self.l_down), (0, 0)))
        blocks.append(('w_cls',
                       wt.reshape(self.c_down * lanes, self.num_classes)))

        slab_w = max(128, max(a.shape[1] for _, a in blocks))
        slab_w = (slab_w + 127) // 128 * 128

        layout, rows, r = {}, [], 0
        for name, arr in blocks:
            arr = jnp.asarray(arr, jnp.float32)
            nr, nc = arr.shape
            pr = _round8(nr)                           # 8-sublane-aligned start
            rows.append(jnp.zeros((pr, slab_w), jnp.float32)
                        .at[:nr, :nc].set(arr))
            layout[name] = (r, nr, nc)
            r += pr
        return jnp.concatenate(rows, axis=0), layout

    def forward(self, data):
        # data: (N, 1, num_channels, num_samples) — PyTorch NCHW Conv2d input.
        n = data.shape[0]
        lanes = n * self.num_samples
        # batch folded into the lane axis: lane = n*num_samples + t
        x_in = jnp.transpose(data[:, 0, :, :], (1, 0, 2)).reshape(
            self.num_channels, lanes)

        kernel = functools.partial(
            _fused_forward_kernel, layout=self.layout, steps=self.steps,
            K=self.ourkernel, c_down=self.c_down, num_classes=self.num_classes)

        out_shape = (
            jax.ShapeDtypeStruct((self.maxdepth, lanes), jnp.float32),
            jax.ShapeDtypeStruct((1, self.num_classes), jnp.float32),
        )
        x_flat, tmp2 = pl.pallas_call(
            kernel,
            out_shape=out_shape,
            in_specs=[_full_spec(x_in.shape),
                      _full_spec(self.params_slab.shape)],
            out_specs=tuple(_full_spec(s.shape) for s in out_shape),
        )(x_in, self.params_slab)

        # lane-dense kernel output -> (N, maxdepth, l_down) view (XLA plumbing)
        x_out = jnp.transpose(
            x_flat.reshape(self.maxdepth, n, self.num_samples),
            (1, 0, 2))[:, :, :self.l_down]
        return x_out, tmp2[0]


# ---------------------------------------------------------------------------
# Pure-JAX reference (for correctness check only)
# ---------------------------------------------------------------------------

def reference_forward(model, data):
    x = data[:, 0, :, :]
    x = jnp.einsum('oc,ncl->nol', model.w_start, x,
                   precision=_HIGHEST) + model.b_start[None, :, None]
    for i in range(model.steps):
        w, b = model.w_down[i], model.b_down[i]
        K = w.shape[2]
        lout = x.shape[-1] - K + 1
        acc = b[None, :, None]
        for k in range(K):
            acc = acc + jnp.einsum('oc,ncl->nol', w[:, :, k],
                                   x[:, :, k:k + lout], precision=_HIGHEST)
        x = jnp.maximum(acc, 0.0)
    tmp = jnp.dot(model.w_cls, x.reshape(-1), precision=_HIGHEST) + model.b_cls
    for i in range(model.steps):
        w, b = model.w_up[i], model.b_up[i]
        x = jnp.maximum(jnp.einsum('oc,ncl->nol', w, x, precision=_HIGHEST)
                        + b[None, :, None], 0.0)
    return x, tmp


if __name__ == "__main__":
    N, num_channels, num_samples = 2, 4, 64
    steps, maxdepth, ourkernel, num_classes = 3, 32, 4, 19

    root = jax.random.PRNGKey(0)
    k_param, k_data = jax.random.split(root)

    model = CortexCodecBasicUModelPallas(
        k_param, batch_size=N, steps=steps, num_channels=num_channels,
        num_samples=num_samples, maxdepth=maxdepth, ourkernel=ourkernel,
        num_classes=num_classes)

    data = jax.random.normal(k_data, (N, 1, num_channels, num_samples),
                             jnp.float32)

    x_out, tmp_out = model.forward(data)
    jax.block_until_ready((x_out, tmp_out))

    l_down = num_samples - steps * (ourkernel - 1)
    assert x_out.shape == (N, maxdepth, l_down), x_out.shape
    assert tmp_out.shape == (num_classes,), tmp_out.shape

    # Tight numerical check against a pure-JAX reference of the same math.
    x_ref, tmp_ref = reference_forward(model, data)
    assert jnp.allclose(x_out, x_ref, rtol=1e-5, atol=1e-5), (
        "x mismatch, max abs err = %g" % float(jnp.max(jnp.abs(x_out - x_ref))))
    assert jnp.allclose(tmp_out, tmp_ref, rtol=1e-5, atol=1e-5), (
        "tmp mismatch, max abs err = %g"
        % float(jnp.max(jnp.abs(tmp_out - tmp_ref))))

    print("KERNEL_OK")
</pallas_src>

<mosaic_0001>
module attributes {stable_mosaic.version = 11 : i64} {
  func.func @_fused_forward_kernel(%arg0: memref<4x128xf32, #tpu.memory_space<vmem>>, %arg1: memref<760x128xf32, #tpu.memory_space<vmem>>, %arg2: memref<32x128xf32, #tpu.memory_space<vmem>>, %arg3: memref<1x19xf32, #tpu.memory_space<vmem>>) attributes {dimension_semantics = [], scalar_prefetch = 0 : i64, scratch_operands = 0 : i64, tpu.core_type = #tpu.core_type<tc>} {
    %c0 = arith.constant 0 : index
    %c0_0 = arith.constant 0 : index
    %0 = vector.load %arg1[%c0, %c0_0] : memref<760x128xf32, #tpu.memory_space<vmem>>, vector<32x4xf32>
    %c0_1 = arith.constant 0 : index
    %c0_2 = arith.constant 0 : index
    %1 = vector.load %arg0[%c0_1, %c0_2] : memref<4x128xf32, #tpu.memory_space<vmem>>, vector<4x128xf32>
    %cst = arith.constant dense<0.000000e+00> : vector<32x128xf32>
    %2 = tpu.matmul %0, %1, %cst {dimension_numbers = #tpu.dot_dimension_numbers<[1], [0], [0], [1], [0, 0, 1, 1], [], []>, precision = #tpu.contract_precision<fp32>} : vector<32x4xf32>, vector<4x128xf32>, vector<32x128xf32> -> vector<32x128xf32>
    %c32 = arith.constant 32 : index
    %c0_3 = arith.constant 0 : index
    %3 = vector.load %arg1[%c32, %c0_3] : memref<760x128xf32, #tpu.memory_space<vmem>>, vector<32x128xf32>
    %4 = arith.addf %2, %3 : vector<32x128xf32>
    %c127_i32 = arith.constant 127 : i32
    %5 = tpu.dynamic_rotate %4 by %c127_i32 dim 1 : vector<32x128xf32>, i32 -> vector<32x128xf32>
    %c126_i32 = arith.constant 126 : i32
    %6 = tpu.dynamic_rotate %4 by %c126_i32 dim 1 : vector<32x128xf32>, i32 -> vector<32x128xf32>
    %c125_i32 = arith.constant 125 : i32
    %7 = tpu.dynamic_rotate %4 by %c125_i32 dim 1 : vector<32x128xf32>, i32 -> vector<32x128xf32>
    %8 = tpu.concatenate %4, %5, %6, %7 in 0 : vector<32x128xf32>, vector<32x128xf32>, vector<32x128xf32>, vector<32x128xf32> -> vector<128x128xf32>
    %c64 = arith.constant 64 : index
    %c0_4 = arith.constant 0 : index
    %9 = vector.load %arg1[%c64, %c0_4] : memref<760x128xf32, #tpu.memory_space<vmem>>, vector<16x128xf32>
    %cst_5 = arith.constant dense<0.000000e+00> : vector<16x128xf32>
    %10 = tpu.matmul %9, %8, %cst_5 {dimension_numbers = #tpu.dot_dimension_numbers<[1], [0], [0], [1], [0, 0, 1, 1], [], []>, precision = #tpu.contract_precision<fp32>} : vector<16x128xf32>, vector<128x128xf32>, vector<16x128xf32> -> vector<16x128xf32>
    %c80 = arith.constant 80 : index
    %c0_6 = arith.constant 0 : index
    %11 = vector.load %arg1[%c80, %c0_6] : memref<760x128xf32, #tpu.memory_space<vmem>>, vector<16x128xf32>
    %12 = arith.addf %10, %11 : vector<16x128xf32>
    %cst_7 = arith.constant 0.000000e+00 : f32
    %13 = vector.broadcast %cst_7 : f32 to vector<16x128xf32>
    %14 = arith.maximumf %12, %13 : vector<16x128xf32>
    %c127_i32_8 = arith.constant 127 : i32
    %15 = tpu.dynamic_rotate %14 by %c127_i32_8 dim 1 : vector<16x128xf32>, i32 -> vector<16x128xf32>
    %c126_i32_9 = arith.constant 126 : i32
    %16 = tpu.dynamic_rotate %14 by %c126_i32_9 dim 1 : vector<16x128xf32>, i32 -> vector<16x128xf32>
    %c125_i32_10 = arith.constant 125 : i32
    %17 = tpu.dynamic_rotate %14 by %c125_i32_10 dim 1 : vector<16x128xf32>, i32 -> vector<16x128xf32>
    %18 = tpu.concatenate %14, %15, %16, %17 in 0 : vector<16x128xf32>, vector<16x128xf32>, vector<16x128xf32>, vector<16x128xf32> -> vector<64x128xf32>
    %c96 = arith.constant 96 : index
    %c0_11 = arith.constant 0 : index
    %19 = vector.load %arg1[%c96, %c0_11] : memref<760x128xf32, #tpu.memory_space<vmem>>, vector<8x64xf32>
    %cst_12 = arith.constant dense<0.000000e+00> : vector<8x128xf32>
    %20 = tpu.matmul %19, %18, %cst_12 {dimension_numbers = #tpu.dot_dimension_numbers<[1], [0], [0], [1], [0, 0, 1, 1], [], []>, precision = #tpu.contract_precision<fp32>} : vector<8x64xf32>, vector<64x128xf32>, vector<8x128xf32> -> vector<8x128xf32>
    %c104 = arith.constant 104 : index
    %c0_13 = arith.constant 0 : index
    %21 = vector.load %arg1[%c104, %c0_13] : memref<760x128xf32, #tpu.memory_space<vmem>>, vector<8x128xf32>
    %22 = arith.addf %20, %21 : vector<8x128xf32>
    %cst_14 = arith.constant 0.000000e+00 : f32
    %23 = vector.broadcast %cst_14 : f32 to vector<8x128xf32>
    %24 = arith.maximumf %22, %23 : vector<8x128xf32>
    %c127_i32_15 = arith.constant 127 : i32
    %25 = tpu.dynamic_rotate %24 by %c127_i32_15 dim 1 : vector<8x128xf32>, i32 -> vector<8x128xf32>
    %c126_i32_16 = arith.constant 126 : i32
    %26 = tpu.dynamic_rotate %24 by %c126_i32_16 dim 1 : vector<8x128xf32>, i32 -> vector<8x128xf32>
    %c125_i32_17 = arith.constant 125 : i32
    %27 = tpu.dynamic_rotate %24 by %c125_i32_17 dim 1 : vector<8x128xf32>, i32 -> vector<8x128xf32>
    %28 = tpu.concatenate %24, %25, %26, %27 in 0 : vector<8x128xf32>, vector<8x128xf32>, vector<8x128xf32>, vector<8x128xf32> -> vector<32x128xf32>
    %c112 = arith.constant 112 : index
    %c0_18 = arith.constant 0 : index
    %29 = vector.load %arg1[%c112, %c0_18] : memref<760x128xf32, #tpu.memory_space<vmem>>, vector<4x32xf32>
    %cst_19 = arith.constant dense<0.000000e+00> : vector<4x128xf32>
    %30 = tpu.matmul %29, %28, %cst_19 {dimension_numbers = #tpu.dot_dimension_numbers<[1], [0], [0], [1], [0, 0, 1, 1], [], []>, precision = #tpu.contract_precision<fp32>} : vector<4x32xf32>, vector<32x128xf32>, vector<4x128xf32> -> vector<4x128xf32>
    %c120 = arith.constant 120 : index
    %c0_20 = arith.constant 0 : index
    %31 = vector.load %arg1[%c120, %c0_20] : memref<760x128xf32, #tpu.memory_space<vmem>>, vector<4x128xf32>
    %32 = arith.addf %30, %31 : vector<4x128xf32>
    %cst_21 = arith.constant 0.000000e+00 : f32
    %33 = vector.broadcast %cst_21 : f32 to vector<4x128xf32>
    %34 = arith.maximumf %32, %33 : vector<4x128xf32>
    %c240 = arith.constant 240 : index
    %c0_22 = arith.constant 0 : index
    %35 = vector.load %arg1[%c240, %c0_22] : memref<760x128xf32, #tpu.memory_space<vmem>>, vector<1x19xf32>
    %c248 = arith.constant 248 : index
    %c0_23 = arith.constant 0 : index
    %36 = vector.load %arg1[%c248, %c0_23] : memref<760x128xf32, #tpu.memory_space<vmem>>, vector<128x19xf32>
    %37 = vector.extract_strided_slice %34 {offsets = [0, 0], sizes = [1, 128], strides = [1, 1]} : vector<4x128xf32> to vector<1x128xf32>
    %cst_24 = arith.constant dense<0.000000e+00> : vector<1x19xf32>
    %38 = tpu.matmul %37, %36, %cst_24 {dimension_numbers = #tpu.dot_dimension_numbers<[1], [0], [0], [1], [0, 0, 1, 1], [], []>, precision = #tpu.contract_precision<fp32>} : vector<1x128xf32>, vector<128x19xf32>, vector<1x19xf32> -> vector<1x19xf32>
    %39 = arith.addf %35, %38 : vector<1x19xf32>
    %c376 = arith.constant 376 : index
    %c0_25 = arith.constant 0 : index
    %40 = vector.load %arg1[%c376, %c0_25] : memref<760x128xf32, #tpu.memory_space<vmem>>, vector<128x19xf32>
    %41 = vector.extract_strided_slice %34 {offsets = [1, 0], sizes = [1, 128], strides = [1, 1]} : vector<4x128xf32> to vector<1x128xf32>
    %cst_26 = arith.constant dense<0.000000e+00> : vector<1x19xf32>
    %42 = tpu.matmul %41, %40, %cst_26 {dimension_numbers = #tpu.dot_dimension_numbers<[1], [0], [0], [1], [0, 0, 1, 1], [], []>, precision = #tpu.contract_precision<fp32>} : vector<1x128xf32>, vector<128x19xf32>, vector<1x19xf32> -> vector<1x19xf32>
    %43 = arith.addf %39, %42 : vector<1x19xf32>
    %c504 = arith.constant 504 : index
    %c0_27 = arith.constant 0 : index
    %44 = vector.load %arg1[%c504, %c0_27] : memref<760x128xf32, #tpu.memory_space<vmem>>, vector<128x19xf32>
    %45 = vector.extract_strided_slice %34 {offsets = [2, 0], sizes = [1, 128], strides = [1, 1]} : vector<4x128xf32> to vector<1x128xf32>
    %cst_28 = arith.constant dense<0.000000e+00> : vector<1x19xf32>
    %46 = tpu.matmul %45, %44, %cst_28 {dimension_numbers = #tpu.dot_dimension_numbers<[1], [0], [0], [1], [0, 0, 1, 1], [], []>, precision = #tpu.contract_precision<fp32>} : vector<1x128xf32>, vector<128x19xf32>, vector<1x19xf32> -> vector<1x19xf32>
    %47 = arith.addf %43, %46 : vector<1x19xf32>
    %c632 = arith.constant 632 : index
    %c0_29 = arith.constant 0 : index
    %48 = vector.load %arg1[%c632, %c0_29] : memref<760x128xf32, #tpu.memory_space<vmem>>, vector<128x19xf32>
    %49 = vector.extract_strided_slice %34 {offsets = [3, 0], sizes = [1, 128], strides = [1, 1]} : vector<4x128xf32> to vector<1x128xf32>
    %cst_30 = arith.constant dense<0.000000e+00> : vector<1x19xf32>
    %50 = tpu.matmul %49, %48, %cst_30 {dimension_numbers = #tpu.dot_dimension_numbers<[1], [0], [0], [1], [0, 0, 1, 1], [], []>, precision = #tpu.contract_precision<fp32>} : vector<1x128xf32>, vector<128x19xf32>, vector<1x19xf32> -> vector<1x19xf32>
    %51 = arith.addf %47, %50 : vector<1x19xf32>
    %c0_31 = arith.constant 0 : index
    %c0_32 = arith.constant 0 : index
    %52 = vector.load %arg3[%c0_31, %c0_32] : memref<1x19xf32, #tpu.memory_space<vmem>>, vector<1x19xf32>
    tpu.vector_store %arg3[%c0_31, %c0_32], %51 {strides = array<i32>} : memref<1x19xf32, #tpu.memory_space<vmem>>, vector<1x19xf32>,
    %c128 = arith.constant 128 : index
    %c0_33 = arith.constant 0 : index
    %53 = vector.load %arg1[%c128, %c0_33] : memref<760x128xf32, #tpu.memory_space<vmem>>, vector<8x4xf32>
    %cst_34 = arith.constant dense<0.000000e+00> : vector<8x128xf32>
    %54 = tpu.matmul %53, %34, %cst_34 {dimension_numbers = #tpu.dot_dimension_numbers<[1], [0], [0], [1], [0, 0, 1, 1], [], []>, precision = #tpu.contract_precision<fp32>} : vector<8x4xf32>, vector<4x128xf32>, vector<8x128xf32> -> vector<8x128xf32>
    %c136 = arith.constant 136 : index
    %c0_35 = arith.constant 0 : index
    %55 = vector.load %arg1[%c136, %c0_35] : memref<760x128xf32, #tpu.memory_space<vmem>>, vector<8x128xf32>
    %56 = arith.addf %54, %55 : vector<8x128xf32>
    %cst_36 = arith.constant 0.000000e+00 : f32
    %57 = vector.broadcast %cst_36 : f32 to vector<8x128xf32>
    %58 = arith.maximumf %56, %57 : vector<8x128xf32>
    %c144 = arith.constant 144 : index
    %c0_37 = arith.constant 0 : index
    %59 = vector.load %arg1[%c144, %c0_37] : memref<760x128xf32, #tpu.memory_space<vmem>>, vector<16x8xf32>
    %cst_38 = arith.constant dense<0.000000e+00> : vector<16x128xf32>
    %60 = tpu.matmul %59, %58, %cst_38 {dimension_numbers = #tpu.dot_dimension_numbers<[1], [0], [0], [1], [0, 0, 1, 1], [], []>, precision = #tpu.contract_precision<fp32>} : vector<16x8xf32>, vector<8x128xf32>, vector<16x128xf32> -> vector<16x128xf32>
    %c160 = arith.constant 160 : index
    %c0_39 = arith.constant 0 : index
    %61 = vector.load %arg1[%c160, %c0_39] : memref<760x128xf32, #tpu.memory_space<vmem>>, vector<16x128xf32>
    %62 = arith.addf %60, %61 : vector<16x128xf32>
    %cst_40 = arith.constant 0.000000e+00 : f32
    %63 = vector.broadcast %cst_40 : f32 to vector<16x128xf32>
    %64 = arith.maximumf %62, %63 : vector<16x128xf32>
    %c176 = arith.constant 176 : index
    %c0_41 = arith.constant 0 : index
    %65 = vector.load %arg1[%c176, %c0_41] : memref<760x128xf32, #tpu.memory_space<vmem>>, vector<32x16xf32>
    %cst_42 = arith.constant dense<0.000000e+00> : vector<32x128xf32>
    %66 = tpu.matmul %65, %64, %cst_42 {dimension_numbers = #tpu.dot_dimension_numbers<[1], [0], [0], [1], [0, 0, 1, 1], [], []>, precision = #tpu.contract_precision<fp32>} : vector<32x16xf32>, vector<16x128xf32>, vector<32x128xf32> -> vector<32x128xf32>
    %c208 = arith.constant 208 : index
    %c0_43 = arith.constant 0 : index
    %67 = vector.load %arg1[%c208, %c0_43] : memref<760x128xf32, #tpu.memory_space<vmem>>, vector<32x128xf32>
    %68 = arith.addf %66, %67 : vector<32x128xf32>
    %cst_44 = arith.constant 0.000000e+00 : f32
    %69 = vector.broadcast %cst_44 : f32 to vector<32x128xf32>
    %70 = arith.maximumf %68, %69 : vector<32x128xf32>
    %c0_45 = arith.constant 0 : index
    %c0_46 = arith.constant 0 : index
    %71 = vector.load %arg2[%c0_45, %c0_46] : memref<32x128xf32, #tpu.memory_space<vmem>>, vector<32x128xf32>
    tpu.vector_store %arg2[%c0_45, %c0_46], %70 {strides = array<i32>} : memref<32x128xf32, #tpu.memory_space<vmem>>, vector<32x128xf32>,
    return
  }
}

</mosaic_0001>

<bundles_post_ra>
// kernel: tpu_custom_call.1
= control target key start
LH: loop header
LB: loop body
LE: loop exit
PB: predicated region body
PF: predicated region fallthrough
CT: control target
= control target key end

     0   :  { %9 = vsyncpa [#allocation3], 0  ;;  %s11863_s0 = inlined_call_operand.hbm [shape: f32[4,128], index: 0, kind: input, shape index: {}]   ;;  %s11864_s1 = inlined_call_operand.hbm [shape: f32[760,128], index: 1, kind: input, shape index: {}]   ;;  %s11865_s2 = inlined_call_operand.hbm [shape: f32[32,128], index: 2, kind: output, shape index: {0}]   ;;  %s11866_s3 = inlined_call_operand.hbm [shape: f32[1,19], index: 3, kind: output, shape index: {1}]  }
   0x1   :  { %10 = vsyncpa [#allocation6], 0 }
   0x2   :  { %11 = vsyncpa [#allocation4], 0 }
   0x3   :  { %12 = vsyncpa [#allocation9], 0  ;;  %s9908_s12 = smov [#allocation2]   ;;  %s9909_s14 = smov [#allocation5]  }
   0x4   :  { %s19_s13 = sshll.u32 %s9908_s12, 4  ;;  %s28_s15 = sshll.u32 %s9909_s14, 4  ;;  %s20_s13 = int_to_ptr.vmem [resolvable:$true] %s19_s13  ;;  %s9940_s15 = int_to_ptr.vmem [resolvable:$true] %s28_s15 }
   0x5   :  { %s9812_s18 = scalar_lea.hbm %s11863_s0, 64 }
   0x6   :  { %p9813_p0 = scmp.ne.s32.totalorder %s11863_s0, %s9812_s18  ;;  %p9816_p1 = scmp.lt.u32.totalorder %s9812_s18, %s11863_s0 }
   0x8   :  { %p9818_p2 = pnand %p9816_p1, %p9813_p0 }
   0xa   :  { %9821 = shalt.err (!%p9818_p2)
}
   0xb   :  { %s9822_s23 = scalar_lea.vmem %s20_s13, 64  ;;  %p9827_p4 = scmp.lt.s32.totalorder %s20_s13, %s20_s13 }
   0xc   :  { %p9823_p3 = scmp.ne.s32.totalorder %s20_s13, %s9822_s23  ;;  %p9828_p5 = scmp.lt.s32.totalorder %s9822_s23, %s9822_s23 }
   0xe   :  { %p9829_p6 = por %p9828_p5, %p9827_p4 }
  0x10   :  { %p9830_p7 = pnand %p9829_p6, %p9823_p3 }
  0x12   :  { %9833 = shalt.err (!%p9830_p7)
}
  0x13   :  { %22 = dma.hbm_to_vmem [thread:$0]  %s11863_s0, 64, %s20_s13, [#allocation3]  }
  0x14   :  { %s9834_s28 = scalar_lea.hbm %s11864_s1, 12160 }
  0x15   :  { %p9835_p8 = scmp.ne.s32.totalorder %s11864_s1, %s9834_s28  ;;  %p9838_p9 = scmp.lt.u32.totalorder %s9834_s28, %s11864_s1 }
  0x17   :  { %p9840_p10 = pnand %p9838_p9, %p9835_p8 }
  0x19   :  { %9843 = shalt.err (!%p9840_p10)
}
  0x1a   :  { %s9844_s6 = scalar_lea.vmem %s9940_s15, 12160  ;;  %p9849_p12 = scmp.lt.s32.totalorder %s9940_s15, %s9940_s15 }
  0x1b   :  { %p9845_p11 = scmp.ne.s32.totalorder %s9940_s15, %s9844_s6  ;;  %p9850_p13 = scmp.lt.s32.totalorder %s9844_s6, %s9844_s6 }
  0x1d   :  { %p9851_p0 = por %p9850_p13, %p9849_p12 }
  0x1f   :  { %p9852_p1 = pnand %p9851_p0, %p9845_p11 }
  0x21   :  { %9855 = shalt.err (!%p9852_p1)
}
  0x22   :  { %s9910_s0 = smov 128   ;;  %s9911_s7 = smov 8  }
  0x23   :  { %34 = dma.hbm_to_vmem [thread:$0]  %s11864_s1, 12160, %s9940_s15, [#allocation6], %s9910_s0, %s9910_s0, %s9911_s7  }
  0x24   :  { %9900 = dma.done.wait [#allocation3], 64  }
  0x25   :  { %9901 = vsyncadd [#allocation3], 4294967232 }
  0x26   :  { %9902 = dma.done.wait [#allocation6], 12160  }
  0x27   :  { %9903 = vsyncadd [#allocation6], 4294955136  ;;  %vm63_vm0 = vcmask 1043456   ;;  %vm50_vm1 = vcmask 31744   ;;  %v45_v0 = vld [vmem:[#allocation2] sm:$0xf] }
  0x28   :  { %v41_v1 = vld [vmem:[#allocation5] sm:$0xff]  ;;  %v42_v2 = vld [vmem:[#allocation5 + $0x8] sm:$0xff]  ;;  %v65_v3 = vsel %vm63_vm0, %v45_v0, 0  ;;  %v43_v6 = vld [vmem:[#allocation5 + $0x10] sm:$0xff]  ;;  %s9912_s1 = smov 127   ;;  %s9913_s10 = smov 126  }
  0x29   :  { %v52_v4 = vsel %vm50_vm1, %v41_v1, 0  ;;  %v55_v5 = vsel %vm50_vm1, %v42_v2, 0  ;;  %v44_v7 = vld [vmem:[#allocation5 + $0x18] sm:$0xff]  ;;  %v68_v8 = vand.u32 4294901760, %v65_v3  ;;  %v58_v11 = vsel %vm50_vm1, %v43_v6, 0  ;;  %v47_v35 = vld [vmem:[#allocation5 + $0x28] sm:$0xff] }
  0x2a   :  { %v133_v9 = vand.u32 4294901760, %v52_v4  ;;  %v143_v10 = vand.u32 4294901760, %v55_v5  ;;  %v153_v12 = vand.u32 4294901760, %v58_v11  ;;  %v61_v13 = vsel %vm50_vm1, %v44_v7, 0  ;;  %v46_v36 = vld [vmem:[#allocation5 + $0x20] sm:$0xff]  ;;  %v49_v41 = vld [vmem:[#allocation5 + $0x38] sm:$0xff] }
  0x2b   :  { %7353 = vmatprep.subr.mxu0 %v68_v8  ;;  %v163_v16 = vand.u32 4294901760, %v61_v13  ;;  %v175_v17 = vsub.f32 %v65_v3, %v68_v8  ;;  %v48_v43 = vld [vmem:[#allocation5 + $0x30] sm:$0xff]  ;;  %v666_v2 = vld [vmem:[#allocation5 + $0x40] sm:$0xff]  ;;  %s9914_s11 = smov 125   ;;  %vm9916_vm2 = vmmov 0   ;;  %vm1370_vm3 = vcmask 523264  }
  0x2c   :  { %v134_v14 = vsub.f32 %v52_v4, %v133_v9  ;;  %v144_v15 = vsub.f32 %v55_v5, %v143_v10  ;;  %7354 = vmatpush3.msra.mxu0 %v68_v8  ;;  %v154_v18 = vsub.f32 %v58_v11, %v153_v12  ;;  %v9998_v5 = vand.u32 4294901760, %v666_v2  ;;  %s9918_s12 = smov [#allocation8]  }
  0x2d   :  { %v164_v21 = vsub.f32 %v61_v13, %v163_v16  ;;  %v176_v22 = vand.u32 4294901760, %v175_v17  ;;  %vm1920_vm4 = vcmask 261120   ;;  %vm5510_vm5 = vcmask 64512   ;;  %s6643_s13 = sshll.u32 %s9918_s12, 4  ;;  %s6644_s13 = int_to_ptr.vmem [resolvable:$true] %s6643_s13 }
  0x2e   :  { %v135_v19 = vand.u32 4294901760, %v134_v14  ;;  %v145_v20 = vand.u32 4294901760, %v144_v15  ;;  %v155_v23 = vand.u32 4294901760, %v154_v18  ;;  %vm5050_vm6 = vcmask 147456   ;;  %s9856_s14 = scalar_lea.vmem %s6644_s13, 16  ;;  %s9860_s15 = scalar_lea.vmem %s6644_s13, 32 }
  0x2f   :  { %v165_v26 = vand.u32 4294901760, %v164_v21  ;;  %v177_v27 = vsub.f32 %v175_v17, %v176_v22  ;;  %vm6016_vm7 = vcmask 130048   ;;  %p9857_p2 = scmp.ne.s32.totalorder %s6644_s13, %s9856_s14  ;;  %p9861_p3 = scmp.lt.s32.totalorder %s6644_s13, %s6644_s13 }
  0x30   :  { %v136_v24 = vsub.f32 %v134_v14, %v135_v19  ;;  %v146_v25 = vsub.f32 %v144_v15, %v145_v20  ;;  %v156_v28 = vsub.f32 %v154_v18, %v155_v23  ;;  %p9862_p4 = scmp.lt.s32.totalorder %s9860_s15, %s9856_s14 }
  0x31   :  { %v166_v31 = vsub.f32 %v164_v21, %v165_v26  ;;  %v178_v32 = vand.u32 4294901760, %v177_v27 }
  0x32   :  { %v137_v29 = vand.u32 4294901760, %v136_v24  ;;  %v147_v30 = vand.u32 4294901760, %v146_v25  ;;  %v157_v33 = vand.u32 4294901760, %v156_v28  ;;  %p9863_p5 = por %p9862_p4, %p9861_p3 }
  0x33   :  { %7361 = vmatprep.subr.mxu0 %v178_v32  ;;  %v167_v34 = vand.u32 4294901760, %v166_v31 }
  0x34   :  { %7355 = vmatprep.mubr.f32.mxu0 %v137_v29  ;;  %p9864_p6 = pnand %p9863_p5, %p9857_p2 }
  0x35   :  { %7356 = vmatmul.mubr.f32.vlgmr.msra.gmra.mrb[0].mxu0 %v147_v30 }
  0x36   :  { %7358 = vmatprep.mubr.f32.mxu0 %v157_v33  ;;  %7362 = vmatpush3.msra.mxu0 %v178_v32 }
  0x37   :  { %7369 = vmatprep.subr.mxu0 %v175_v17 }
  0x39   :  { %7359 = vmatmul.mubr.f32.gmra.mrb[2].mxu0 %v167_v34 }
  0x3a   :  { %7363 = vmatprep.mubr.f32.mxu0 %v133_v9 }
  0x3d   :  { %7364 = vmatmul.mubr.f32.vlgmr.msra.gmra.mrb[0].mxu0 %v143_v10 }
  0x3e   :  { %7366 = vmatprep.mubr.f32.mxu0 %v153_v12  ;;  %7370 = vmatpush3.msra.mxu0 %v175_v17 }
  0x3f   :  { %7377 = vmatprep.subr.mxu0 %v68_v8 }
  0x41   :  { %7367 = vmatmul.mubr.f32.gmra.mrb[2].mxu0 %v163_v16 }
  0x42   :  { %7371 = vmatprep.mubr.f32.mxu0 %v134_v14 }
  0x45   :  { %7372 = vmatmul.mubr.f32.vlgmr.msra.gmra.mrb[0].mxu0 %v144_v15 }
  0x46   :  { %7374 = vmatprep.mubr.f32.mxu0 %v154_v18  ;;  %7378 = vmatpush3.msra.mxu0 %v68_v8 }
  0x47   :  { %7385 = vmatprep.subr.mxu0 %v176_v22 }
  0x49   :  { %7375 = vmatmul.mubr.f32.gmra.mrb[2].mxu0 %v164_v21 }
  0x4a   :  { %7379 = vmatprep.mubr.f32.mxu0 %v135_v19 }
  0x4d   :  { %7380 = vmatmul.mubr.f32.vlgmr.msra.gmra.mrb[0].mxu0 %v145_v20 }
  0x4e   :  { %7382 = vmatprep.mubr.f32.mxu0 %v155_v23  ;;  %7386 = vmatpush3.msra.mxu0 %v176_v22 }
  0x4f   :  { %7393 = vmatprep.subr.mxu0 %v68_v8 }
  0x51   :  { %7383 = vmatmul.mubr.f32.gmra.mrb[2].mxu0 %v165_v26 }
  0x52   :  { %7387 = vmatprep.mubr.f32.mxu0 %v133_v9 }
  0x55   :  { %7388 = vmatmul.mubr.f32.vlgmr.msra.gmra.mrb[0].mxu0 %v143_v10 }
  0x56   :  { %7390 = vmatprep.mubr.f32.mxu0 %v153_v12  ;;  %7394 = vmatpush3.msra.mxu0 %v68_v8 }
  0x59   :  { %7391 = vmatmul.mubr.f32.gmra.mrb[2].mxu0 %v163_v16 }
  0x5a   :  { %7395 = vmatprep.mubr.f32.mxu0 %v133_v9 }
  0x5d   :  { %7396 = vmatmul.mubr.f32.vlgmr.msra.gmra.mrb[0].mxu0 %v143_v10  ;;  %v10006_v10 = vsub.f32 %v666_v2, %v9998_v5 }
  0x5e   :  { %7398 = vmatprep.mubr.f32.mxu0 %v153_v12 }
  0x5f   :  { %v753_v13 = vand.u32 4294901760, %v10006_v10 }
  0x61   :  { %7399 = vmatmul.mubr.f32.gmra.mrb[2].mxu0 %v163_v16  ;;  %v754_v15 = vsub.f32 %v10006_v10, %v753_v13 }
  0x63   :  { %v755_v16 = vand.u32 4294901760, %v754_v15 }
  0x65   :  { %7433 = vmatprep.mubr.f32.mxu1 %v755_v16 }
 0x130   :  { %v7397_v37 = vpop.f32.mrb[0].mxu0 }
 0x131   :  { %v9651_v38 = vadd.f32 %v7397_v37, %v47_v35  ;;  %v620_v39 = vpop.f32.mrb[1].mxu0  ;;  %v667_v35 = vld [vmem:[#allocation5 + $0x48] sm:$0xff] }
 0x132   :  { %v9652_v40 = vadd.f32 %v620_v39, %v46_v36 }
 0x133   :  { %v674_v42 = vand.u32 4294901760, %v9651_v38 }
 0x134   :  { %v671_v44 = vand.u32 4294901760, %v9652_v40  ;;  %v7400_v45 = vpop.f32.mrb[2].mxu0  ;;  %642 = vrot.lane.b32.xlu0 %v9652_v40, %s9912_s1 }
 0x135   :  { %v9653_v46 = vadd.f32 %v7400_v45, %v49_v41  ;;  %v632_v47 = vpop.f32.mrb[3].mxu0  ;;  %v780_v48 = vsub.f32 %v9651_v38, %v674_v42 }
 0x136   :  { %v9980_v49 = vpack.c.bf16 %v674_v42, %v671_v44  ;;  %v9654_v50 = vadd.f32 %v632_v47, %v48_v43  ;;  %v773_v51 = vsub.f32 %v9652_v40, %v671_v44  ;;  %v10045_v44 = vand.u32 4294901760, %v667_v35 }
 0x137   :  { %v680_v52 = vand.u32 4294901760, %v9653_v46  ;;  %648 = vrot.lane.b32.xlu1 %v9653_v46, %s9912_s1  ;;  %v781_v53 = vand.u32 4294901760, %v780_v48 }
 0x138   :  { %v677_v54 = vand.u32 4294901760, %v9654_v50  ;;  %644 = vrot.lane.b32.xlu0 %v9651_v38, %s9912_s1  ;;  %8752 = vmatprep.subr.bf16.mxu1 %v9980_v49  ;;  %v774_v55 = vand.u32 4294901760, %v773_v51  ;;  %v9985_v56 = vpack.c.bf16 %v780_v48, %v773_v51 }
 0x139   :  { %8754 = vmatpush3.bf16.msra.mxu1 %v9980_v49  ;;  %v782_v57 = vsub.f32 %v780_v48, %v781_v53  ;;  %v794_v58 = vsub.f32 %v9653_v46, %v680_v52 }
 0x13a   :  { %v9988_v59 = vpack.c.bf16 %v680_v52, %v677_v54  ;;  %v775_v60 = vsub.f32 %v773_v51, %v774_v55  ;;  %v787_v61 = vsub.f32 %v9654_v50, %v677_v54  ;;  %v9990_v62 = vpack.c.bf16 %v781_v53, %v774_v55 }
 0x13b   :  { %646 = vrot.lane.b32.xlu1 %v9654_v50, %s9912_s1  ;;  %v783_v63 = vand.u32 4294901760, %v782_v57  ;;  %v795_v0 = vand.u32 4294901760, %v794_v58  ;;  %v10062_v57 = vsub.f32 %v667_v35, %v10045_v44 }
 0x13c   :  { %650 = vrot.lane.b32.xlu0 %v9652_v40, %s9913_s10  ;;  %8756 = vmatprep.subr.bf16.mxu1 %v9988_v59  ;;  %v776_v1 = vand.u32 4294901760, %v775_v60  ;;  %v788_v3 = vand.u32 4294901760, %v787_v61  ;;  %v9995_v4 = vpack.c.bf16 %v794_v58, %v787_v61 }
 0x13d   :  { %8758 = vmatpush3.bf16.msra.mxu1 %v9988_v59  ;;  %v796_v6 = vsub.f32 %v794_v58, %v795_v0 }
 0x13e   :  { %v10000_v7 = vpack.c.bf16 %v783_v63, %v776_v1  ;;  %v789_v8 = vsub.f32 %v787_v61, %v788_v3  ;;  %v10002_v9 = vpack.c.bf16 %v795_v0, %v788_v3 }
 0x13f   :  { %652 = vrot.lane.b32.xlu1 %v9651_v38, %s9913_s10  ;;  %v797_v11 = vand.u32 4294901760, %v796_v6 }
 0x140   :  { %654 = vrot.lane.b32.xlu0 %v9654_v50, %s9913_s10  ;;  %v790_v12 = vand.u32 4294901760, %v789_v8 }
 0x142   :  { %v10010_v14 = vpack.c.bf16 %v797_v11, %v790_v12  ;;  %v763_v11 = vand.u32 4294901760, %v10062_v57 }
 0x143   :  { %656 = vrot.lane.b32.xlu1 %v9653_v46, %s9913_s10 }
 0x144   :  { %658 = vrot.lane.b32.xlu0 %v9652_v40, %s9914_s11 }
 0x147   :  { %660 = vrot.lane.b32.xlu1 %v9651_v38, %s9914_s11 }
 0x148   :  { %662 = vrot.lane.b32.xlu0 %v9654_v50, %s9914_s11 }
 0x14b   :  { %664 = vrot.lane.b32.xlu1 %v9653_v46, %s9914_s11 }
 0x1a6   :  { %v643_v17 = vpop.permute.xlu0 %642 }
 0x1a7   :  { %v683_v18 = vand.u32 4294901760, %v643_v17 }
 0x1a9   :  { %v649_v19 = vpop.permute.xlu1 %648  ;;  %v10020_v22 = vsub.f32 %v643_v17, %v683_v18 }
 0x1aa   :  { %v692_v20 = vand.u32 4294901760, %v649_v19  ;;  %v645_v21 = vpop.permute.xlu0 %644 }
 0x1ab   :  { %v686_v23 = vand.u32 4294901760, %v645_v21  ;;  %v802_v30 = vand.u32 4294901760, %v10020_v22 }
 0x1ac   :  { %v10026_v27 = vsub.f32 %v649_v19, %v692_v20 }
 0x1ad   :  { %v10022_v24 = vpack.c.bf16 %v686_v23, %v683_v18  ;;  %v10024_v25 = vsub.f32 %v645_v21, %v686_v23  ;;  %v647_v26 = vpop.permute.xlu1 %646  ;;  %v764_v23 = vsub.f32 %v10062_v57, %v763_v11 }
 0x1ae   :  { %v689_v28 = vand.u32 4294901760, %v647_v26  ;;  %v651_v29 = vpop.permute.xlu0 %650  ;;  %v823_v38 = vand.u32 4294901760, %v10026_v27 }
 0x1af   :  { %v809_v31 = vand.u32 4294901760, %v10024_v25  ;;  %v695_v32 = vand.u32 4294901760, %v651_v29  ;;  %8760 = vmatprep.subr.bf16.mxu1 %v10022_v24 }
 0x1b0   :  { %v10031_v33 = vpack.c.bf16 %v692_v20, %v689_v28  ;;  %v10033_v34 = vsub.f32 %v647_v26, %v689_v28  ;;  %8762 = vmatpush3.bf16.msra.mxu1 %v10022_v24 }
 0x1b1   :  { %v653_v36 = vpop.permute.xlu1 %652  ;;  %v10038_v37 = vpack.c.bf16 %v809_v31, %v802_v30  ;;  %v10043_v42 = vsub.f32 %v651_v29, %v695_v32 }
 0x1b2   :  { %v816_v39 = vand.u32 4294901760, %v10033_v34  ;;  %v698_v40 = vand.u32 4294901760, %v653_v36  ;;  %v655_v41 = vpop.permute.xlu0 %654  ;;  %8764 = vmatprep.subr.bf16.mxu1 %v10031_v33 }
 0x1b3   :  { %v701_v43 = vand.u32 4294901760, %v655_v41  ;;  %v830_v53 = vand.u32 4294901760, %v10043_v42 }
 0x1b4   :  { %v10047_v45 = vpack.c.bf16 %v698_v40, %v695_v32  ;;  %v10049_v46 = vsub.f32 %v653_v36, %v698_v40  ;;  %8766 = vmatpush3.bf16.msra.mxu1 %v10031_v33  ;;  %v10054_v47 = vpack.c.bf16 %v823_v38, %v816_v39  ;;  %v810_v36 = vsub.f32 %v10024_v25, %v809_v31 }
 0x1b5   :  { %v657_v48 = vpop.permute.xlu1 %656  ;;  %v10059_v54 = vsub.f32 %v655_v41, %v701_v43  ;;  %v765_v40 = vand.u32 4294901760, %v764_v23  ;;  %v824_v31 = vsub.f32 %v10026_v27, %v823_v38 }
 0x1b6   :  { %v837_v50 = vand.u32 4294901760, %v10049_v46  ;;  %v704_v51 = vand.u32 4294901760, %v657_v48  ;;  %v659_v52 = vpop.permute.xlu0 %658  ;;  %8768 = vmatprep.subr.bf16.mxu1 %v10047_v45 }
 0x1b7   :  { %v707_v55 = vand.u32 4294901760, %v659_v52  ;;  %v844_v3 = vand.u32 4294901760, %v10059_v54 }
 0x1b8   :  { %v10064_v58 = vpack.c.bf16 %v704_v51, %v701_v43  ;;  %v10066_v60 = vsub.f32 %v657_v48, %v704_v51  ;;  %8770 = vmatpush3.bf16.msra.mxu1 %v10047_v45  ;;  %v10069_v63 = vpack.c.bf16 %v837_v50, %v830_v53  ;;  %v803_v43 = vsub.f32 %v10020_v22, %v802_v30 }
 0x1b9   :  { %v661_v61 = vpop.permute.xlu1 %660  ;;  %v10074_v6 = vsub.f32 %v659_v52, %v707_v55  ;;  %v817_v48 = vsub.f32 %v10033_v34, %v816_v39  ;;  %v811_v51 = vand.u32 4294901760, %v810_v36  ;;  %v831_v39 = vsub.f32 %v10043_v42, %v830_v53 }
 0x1ba   :  { %v851_v0 = vand.u32 4294901760, %v10066_v60  ;;  %v710_v1 = vand.u32 4294901760, %v661_v61  ;;  %v663_v2 = vpop.permute.xlu0 %662  ;;  %8772 = vmatprep.subr.bf16.mxu1 %v10064_v58  ;;  %v804_v52 = vand.u32 4294901760, %v803_v43  ;;  %v845_v38 = vsub.f32 %v10059_v54, %v844_v3 }
 0x1bb   :  { %v713_v8 = vand.u32 4294901760, %v663_v2  ;;  %v858_v21 = vand.u32 4294901760, %v10074_v6 }
 0x1bc   :  { %v10077_v12 = vpack.c.bf16 %v710_v1, %v707_v55  ;;  %v10079_v15 = vsub.f32 %v661_v61, %v710_v1  ;;  %8774 = vmatpush3.bf16.msra.mxu1 %v10064_v58  ;;  %v10082_v17 = vpack.c.bf16 %v851_v0, %v844_v3  ;;  %v838_v55 = vsub.f32 %v10049_v46, %v837_v50 }
 0x1bd   :  { %v665_v16 = vpop.permute.xlu1 %664  ;;  %v10085_v19 = vsub.f32 %v663_v2, %v713_v8  ;;  %v8791_v30 = vpack.c.bf16 %v811_v51, %v804_v52  ;;  %v818_v61 = vand.u32 4294901760, %v817_v48  ;;  %v825_v1 = vand.u32 4294901760, %v824_v31 }
 0x1be   :  { %v865_v18 = vand.u32 4294901760, %v10079_v15  ;;  %v716_v20 = vand.u32 4294901760, %v665_v16  ;;  %8776 = vmatprep.subr.bf16.mxu1 %v10077_v12  ;;  %v846_v53 = vand.u32 4294901760, %v845_v38 }
 0x1bf   :  { %v872_v32 = vand.u32 4294901760, %v10085_v19  ;;  %v8795_v2 = vpack.c.bf16 %v825_v1, %v818_v61 }
 0x1c0   :  { %v10092_v26 = vpack.c.bf16 %v716_v20, %v713_v8  ;;  %v10094_v28 = vsub.f32 %v665_v16, %v716_v20  ;;  %8778 = vmatpush3.bf16.msra.mxu1 %v10077_v12  ;;  %v10097_v29 = vpack.c.bf16 %v865_v18, %v858_v21  ;;  %v839_v8 = vand.u32 4294901760, %v838_v55 }
 0x1c1   :  { %v832_v16 = vand.u32 4294901760, %v831_v39  ;;  %v866_v20 = vsub.f32 %v10079_v15, %v865_v18  ;;  %v873_v43 = vsub.f32 %v10085_v19, %v872_v32 }
 0x1c2   :  { %v879_v35 = vand.u32 4294901760, %v10094_v28  ;;  %8780 = vmatprep.subr.bf16.mxu1 %v10092_v26 }
 0x1c3   :  { %v8799_v50 = vpack.c.bf16 %v839_v8, %v832_v16  ;;  %v874_v18 = vand.u32 4294901760, %v873_v43 }
 0x1c4   :  { %8782 = vmatpush3.bf16.msra.mxu1 %v10092_v26  ;;  %v10104_v41 = vpack.c.bf16 %v879_v35, %v872_v32  ;;  %v880_v36 = vsub.f32 %v10094_v28, %v879_v35  ;;  %v8827_v32 = vpack.c.bf16 %v10026_v27, %v10033_v34  ;;  %v8831_v35 = vpack.c.bf16 %v10049_v46, %v10043_v42 }
 0x1c5   :  { %8784 = vmatprep.subr.bf16.mxu1 %v10000_v7 }
 0x1c6   :  { %v881_v51 = vand.u32 4294901760, %v880_v36 }
 0x1c7   :  { %7434 = vmatmul.mubr.f32.vlgmr.msra.gmra.mrb[0].mxu1 %v765_v40 }
 0x1c8   :  { %8786 = vmatpush3.bf16.msra.mxu1 %v10000_v7  ;;  %7468 = vmatprep.mubr.f32.mxu1 %v9998_v5  ;;  %v852_v7 = vsub.f32 %v10066_v60, %v851_v0  ;;  %v867_v0 = vand.u32 4294901760, %v866_v20  ;;  %v8811_v31 = vpack.c.bf16 %v881_v51, %v874_v18 }
 0x1c9   :  { %8788 = vmatprep.subr.bf16.mxu1 %v10010_v14 }
 0x1ca   :  { %v853_v23 = vand.u32 4294901760, %v852_v7 }
 0x1cc   :  { %8790 = vmatpush3.bf16.msra.mxu1 %v10010_v14  ;;  %v859_v14 = vsub.f32 %v10074_v6, %v858_v21  ;;  %v8803_v40 = vpack.c.bf16 %v853_v23, %v846_v53  ;;  %v8823_v21 = vpack.c.bf16 %v10024_v25, %v10020_v22  ;;  %v8839_v22 = vpack.c.bf16 %v10079_v15, %v10074_v6 }
 0x1cd   :  { %8792 = vmatprep.subr.bf16.mxu1 %v8791_v30 }
 0x1ce   :  { %v860_v3 = vand.u32 4294901760, %v859_v14 }
 0x1d0   :  { %8794 = vmatpush3.bf16.msra.mxu1 %v8791_v30  ;;  %v8807_v48 = vpack.c.bf16 %v867_v0, %v860_v3 }
 0x1d1   :  { %8796 = vmatprep.subr.bf16.mxu1 %v8795_v2 }
 0x1d4   :  { %8798 = vmatpush3.bf16.msra.mxu1 %v8795_v2 }
 0x1d5   :  { %8800 = vmatprep.subr.bf16.mxu1 %v8799_v50 }
 0x1d8   :  { %8802 = vmatpush3.bf16.msra.mxu1 %v8799_v50 }
 0x1d9   :  { %8804 = vmatprep.subr.bf16.mxu1 %v8803_v40 }
 0x1dc   :  { %8806 = vmatpush3.bf16.msra.mxu1 %v8803_v40 }
 0x1dd   :  { %8808 = vmatprep.subr.bf16.mxu1 %v8807_v48 }
 0x1e0   :  { %8810 = vmatpush3.bf16.msra.mxu1 %v8807_v48 }
 0x1e1   :  { %8812 = vmatprep.subr.bf16.mxu1 %v8811_v31 }
 0x1e4   :  { %8814 = vmatpush3.bf16.msra.mxu1 %v8811_v31 }
 0x1e5   :  { %8816 = vmatprep.subr.bf16.mxu1 %v9985_v56 }
 0x1e7   :  { %7469 = vmatmul.mubr.f32.vlgmr.msra.gmra.mrb[0].mxu1 %v10045_v44 }
 0x1e8   :  { %8818 = vmatpush3.bf16.msra.mxu1 %v9985_v56  ;;  %7503 = vmatprep.mubr.f32.mxu1 %v10006_v10  ;;  %v8835_v56 = vpack.c.bf16 %v10066_v60, %v10059_v54 }
 0x1e9   :  { %8820 = vmatprep.subr.bf16.mxu1 %v9995_v4 }
 0x1ec   :  { %8822 = vmatpush3.bf16.msra.mxu1 %v9995_v4  ;;  %v8843_v4 = vpack.c.bf16 %v10094_v28, %v10085_v19 }
 0x1ed   :  { %8824 = vmatprep.subr.bf16.mxu1 %v8823_v21 }
 0x1f0   :  { %8826 = vmatpush3.bf16.msra.mxu1 %v8823_v21 }
 0x1f1   :  { %8828 = vmatprep.subr.bf16.mxu1 %v8827_v32 }
 0x1f4   :  { %8830 = vmatpush3.bf16.msra.mxu1 %v8827_v32 }
 0x1f5   :  { %8832 = vmatprep.subr.bf16.mxu1 %v8831_v35 }
 0x1f8   :  { %8834 = vmatpush3.bf16.msra.mxu1 %v8831_v35 }
 0x1f9   :  { %8836 = vmatprep.subr.bf16.mxu1 %v8835_v56 }
 0x1fc   :  { %8838 = vmatpush3.bf16.msra.mxu1 %v8835_v56 }
 0x1fd   :  { %8840 = vmatprep.subr.bf16.mxu1 %v8839_v22 }
 0x200   :  { %8842 = vmatpush3.bf16.msra.mxu1 %v8839_v22 }
 0x201   :  { %8844 = vmatprep.subr.bf16.mxu1 %v8843_v4 }
 0x204   :  { %8846 = vmatpush3.bf16.msra.mxu1 %v8843_v4 }
 0x205   :  { %8848 = vmatprep.subr.bf16.mxu1 %v9980_v49 }
 0x207   :  { %7504 = vmatmul.mubr.f32.vlgmr.msra.gmra.mrb[0].mxu1 %v10062_v57 }
 0x208   :  { %8850 = vmatpush3.bf16.msra.mxu1 %v9980_v49  ;;  %7538 = vmatprep.mubr.f32.mxu1 %v753_v13 }
 0x209   :  { %8852 = vmatprep.subr.bf16.mxu1 %v9988_v59 }
 0x20c   :  { %8854 = vmatpush3.bf16.msra.mxu1 %v9988_v59 }
 0x20d   :  { %8856 = vmatprep.subr.bf16.mxu1 %v10022_v24 }
 0x210   :  { %8858 = vmatpush3.bf16.msra.mxu1 %v10022_v24 }
 0x211   :  { %8860 = vmatprep.subr.bf16.mxu1 %v10031_v33 }
 0x214   :  { %8862 = vmatpush3.bf16.msra.mxu1 %v10031_v33 }
 0x215   :  { %8864 = vmatprep.subr.bf16.mxu1 %v10047_v45 }
 0x218   :  { %8866 = vmatpush3.bf16.msra.mxu1 %v10047_v45 }
 0x219   :  { %8868 = vmatprep.subr.bf16.mxu1 %v10064_v58 }
 0x21c   :  { %8870 = vmatpush3.bf16.msra.mxu1 %v10064_v58 }
 0x21d   :  { %8872 = vmatprep.subr.bf16.mxu1 %v10077_v12 }
 0x220   :  { %8874 = vmatpush3.bf16.msra.mxu1 %v10077_v12 }
 0x221   :  { %8876 = vmatprep.subr.bf16.mxu1 %v10092_v26 }
 0x224   :  { %8878 = vmatpush3.bf16.msra.mxu1 %v10092_v26 }
 0x225   :  { %8880 = vmatprep.subr.bf16.mxu1 %v9990_v62 }
 0x227   :  { %7539 = vmatmul.mubr.f32.vlgmr.msra.gmra.mrb[0].mxu1 %v763_v11  ;;  %v1368_v11 = vld [vmem:[#allocation5 + $0x60] sm:$0xff] }
 0x228   :  { %8882 = vmatpush3.bf16.msra.mxu1 %v9990_v62  ;;  %7573 = vmatprep.mubr.f32.mxu1 %v9998_v5  ;;  %v668_v62 = vld [vmem:[#allocation5 + $0x50] sm:$0xff]  ;;  %v1372_v15 = vsel %vm1370_vm3, %v1368_v11, 0 }
 0x229   :  { %8884 = vmatprep.subr.bf16.mxu1 %v10002_v9 }
 0x22c   :  { %8886 = vmatpush3.bf16.msra.mxu1 %v10002_v9 }
 0x22d   :  { %8888 = vmatprep.subr.bf16.mxu1 %v10038_v37 }
 0x230   :  { %8890 = vmatpush3.bf16.msra.mxu1 %v10038_v37 }
 0x231   :  { %8892 = vmatprep.subr.bf16.mxu1 %v10054_v47 }
 0x234   :  { %8894 = vmatpush3.bf16.msra.mxu1 %v10054_v47 }
 0x235   :  { %8896 = vmatprep.subr.bf16.mxu1 %v10069_v63 }
 0x238   :  { %8898 = vmatpush3.bf16.msra.mxu1 %v10069_v63  ;;  %v11887_v63 = vmov 0.0  }
 0x239   :  { %8900 = vmatprep.subr.bf16.mxu1 %v10082_v17  ;;  %7646 = vmatprep.mubr.msk.f32.mxu0 %vm9916_vm2, %v11887_v63 }
 0x23c   :  { %8902 = vmatpush3.bf16.msra.mxu1 %v10082_v17 }
 0x23d   :  { %8904 = vmatprep.subr.bf16.mxu1 %v10097_v29 }
 0x240   :  { %8906 = vmatpush3.bf16.msra.mxu1 %v10097_v29  ;;  %v10232_v29 = vand.u32 4294901760, %v1372_v15 }
 0x241   :  { %8908 = vmatprep.subr.bf16.mxu1 %v10104_v41 }
 0x242   :  { %v10240_v1 = vsub.f32 %v1372_v15, %v10232_v29  ;;  %v2412_v15 = vld [vmem:[#allocation5 + $0x100] sm:$0xff] }
 0x244   :  { %8910 = vmatpush3.bf16.msra.mxu1 %v10104_v41  ;;  %v1449_v16 = vand.u32 4294901760, %v10240_v1 }
 0x245   :  { %8912 = vmatprep.subr.bf16.mxu1 %v9980_v49 }
 0x246   :  { %v1450_v43 = vsub.f32 %v10240_v1, %v1449_v16 }
 0x247   :  { %7574 = vmatmul.mubr.f32.vlgmr.msra.gmra.mrb[0].mxu1 %v10045_v44 }
 0x248   :  { %8914 = vmatpush3.bf16.msra.mxu1 %v9980_v49  ;;  %7608 = vmatprep.mubr.f32.mxu1 %v9998_v5  ;;  %v11907_v49 = vmov 0.0|0.0  }
 0x249   :  { %8916 = vmatprep.subr.bf16.mxu1 %v9988_v59  ;;  %8955 = vmatprep.subr.bf16.mxu0 %v11907_v49 }
 0x24c   :  { %8918 = vmatpush3.bf16.msra.mxu1 %v9988_v59  ;;  %v669_v59 = vld [vmem:[#allocation5 + $0x58] sm:$0xff] }
 0x24d   :  { %8920 = vmatprep.subr.bf16.mxu1 %v10022_v24 }
 0x250   :  { %8922 = vmatpush3.bf16.msra.mxu1 %v10022_v24 }
 0x251   :  { %8924 = vmatprep.subr.bf16.mxu1 %v10031_v33 }
 0x254   :  { %8926 = vmatpush3.bf16.msra.mxu1 %v10031_v33 }
 0x255   :  { %8928 = vmatprep.subr.bf16.mxu1 %v10047_v45 }
 0x258   :  { %8930 = vmatpush3.bf16.msra.mxu1 %v10047_v45 }
 0x259   :  { %8932 = vmatprep.subr.bf16.mxu1 %v10064_v58 }
 0x25c   :  { %8934 = vmatpush3.bf16.msra.mxu1 %v10064_v58 }
 0x25d   :  { %8936 = vmatprep.subr.bf16.mxu1 %v10077_v12 }
 0x260   :  { %8938 = vmatpush3.bf16.msra.mxu1 %v10077_v12 }
 0x261   :  { %8940 = vmatprep.subr.bf16.mxu1 %v10092_v26 }
 0x264   :  { %8942 = vmatpush3.bf16.msra.mxu1 %v10092_v26 }
 0x265   :  { %8943 = vmatprep.subr.bf16.mxu1 %v11907_v49 }
 0x267   :  { %7609 = vmatmul.mubr.f32.vlgmr.msra.gmra.mrb[0].mxu1 %v10045_v44 }
 0x268   :  { %7627 = vmatprep.mubr.msk.f32.mxu1 %vm9916_vm2, %v11887_v63 }
 0x33a   :  { %v7610_v5 = vpop.f32.mrb[0].mxu1 }
 0x33b   :  { %v9655_v9 = vadd.f32 %v7610_v5, %v669_v59  ;;  %v1344_v10 = vpop.f32.mrb[1].mxu1  ;;  %v1451_v59 = vand.u32 4294901760, %v1450_v43 }
 0x33c   :  { %v9656_v13 = vadd.f32 %v1344_v10, %v668_v62 }
 0x33d   :  { %v1355_v24 = vmax.f32 %v9655_v9, 0.0 }
 0x33e   :  { %v1354_v25 = vmax.f32 %v9656_v13, 0.0 }
 0x33f   :  { %1358 = vrot.lane.b32.xlu1 %v1355_v24, %s9912_s1  ;;  %v1378_v27 = vand.u32 4294901760, %v1355_v24 }
 0x340   :  { %1356 = vrot.lane.b32.xlu0 %v1354_v25, %s9912_s1  ;;  %v1375_v33 = vand.u32 4294901760, %v1354_v25 }
 0x341   :  { %v10205_v34 = vsub.f32 %v1355_v24, %v1378_v27 }
 0x342   :  { %v10207_v37 = vpack.c.bf16 %v1378_v27, %v1375_v33  ;;  %v10209_v42 = vsub.f32 %v1354_v25, %v1375_v33 }
 0x343   :  { %1362 = vrot.lane.b32.xlu1 %v1355_v24, %s9913_s10  ;;  %v1467_v44 = vand.u32 4294901760, %v10205_v34 }
 0x344   :  { %1360 = vrot.lane.b32.xlu0 %v1354_v25, %s9913_s10  ;;  %8945 = vmatpush3.bf16.msra.mxu1 %v10207_v37  ;;  %v1460_v45 = vand.u32 4294901760, %v10209_v42  ;;  %v8968_v46 = vpack.c.bf16 %v10205_v34, %v10209_v42 }
 0x345   :  { %v1468_v47 = vsub.f32 %v10205_v34, %v1467_v44  ;;  %8946 = vmatprep.subr.bf16.mxu1 %v11907_v49 }
 0x346   :  { %v1461_v54 = vsub.f32 %v10209_v42, %v1460_v45  ;;  %v10221_v57 = vpack.c.bf16 %v1467_v44, %v1460_v45 }
 0x347   :  { %1366 = vrot.lane.b32.xlu1 %v1355_v24, %s9914_s11  ;;  %v1469_v58 = vand.u32 4294901760, %v1468_v47 }
 0x348   :  { %1364 = vrot.lane.b32.xlu0 %v1354_v25, %s9914_s11  ;;  %v1462_v60 = vand.u32 4294901760, %v1461_v54  ;;  %v1369_v54 = vld [vmem:[#allocation5 + $0x68] sm:$0xff] }
 0x34a   :  { %v8956_v6 = vpack.c.bf16 %v1469_v58, %v1462_v60 }
 0x34c   :  { %8957 = vmatpush3.bf16.msra.mxu0 %v8956_v6 }
 0x34d   :  { %8958 = vmatprep.subr.bf16.mxu0 %v11907_v49 }
 0x3b1   :  { %v1359_v12 = vpop.permute.xlu1 %1358 }
 0x3b2   :  { %v1384_v17 = vand.u32 4294901760, %v1359_v12  ;;  %v1357_v19 = vpop.permute.xlu0 %1356 }
 0x3b3   :  { %v1381_v26 = vand.u32 4294901760, %v1357_v19 }
 0x3b4   :  { %v10230_v28 = vsub.f32 %v1359_v12, %v1384_v17  ;;  %v2411_v12 = vld [vmem:[#allocation5 + $0xf8] sm:$0xff] }
 0x3b5   :  { %v10234_v41 = vpack.c.bf16 %v1384_v17, %v1381_v26  ;;  %v10236_v52 = vsub.f32 %v1357_v19, %v1381_v26  ;;  %v1363_v55 = vpop.permute.xlu1 %1362  ;;  %v2428_v17 = vand.u32 4294901760, %v2411_v12  ;;  %v2431_v19 = vand.u32 4294901760, %v2412_v15 }
 0x3b6   :  { %v1481_v30 = vand.u32 4294901760, %v10230_v28  ;;  %v1390_v61 = vand.u32 4294901760, %v1363_v55  ;;  %v1361_v39 = vpop.permute.xlu0 %1360 }
 0x3b7   :  { %v1474_v7 = vand.u32 4294901760, %v10236_v52  ;;  %v1387_v2 = vand.u32 4294901760, %v1361_v39  ;;  %8948 = vmatpush3.bf16.msra.mxu1 %v10234_v41  ;;  %v8971_v33 = vpack.c.bf16 %v10230_v28, %v10236_v52  ;;  %v10340_v26 = vpack.c.bf16 %v2431_v19, %v2428_v17 }
 0x3b8   :  { %v1482_v8 = vsub.f32 %v10230_v28, %v1481_v30  ;;  %v10247_v38 = vsub.f32 %v1363_v55, %v1390_v61  ;;  %8949 = vmatprep.subr.bf16.mxu1 %v11907_v49  ;;  %v10342_v28 = vsub.f32 %v2411_v12, %v2428_v17 }
 0x3b9   :  { %v1475_v20 = vsub.f32 %v10236_v52, %v1474_v7  ;;  %v10254_v50 = vpack.c.bf16 %v1390_v61, %v1387_v2  ;;  %v10256_v23 = vsub.f32 %v1361_v39, %v1387_v2  ;;  %v1367_v14 = vpop.permute.xlu1 %1366  ;;  %v8995_v34 = vpack.c.bf16 %v1481_v30, %v1474_v7  ;;  %v2414_v52 = vld [vmem:[#allocation5 + $0x110] sm:$0xff]  ;;  %v2415_v7 = vld [vmem:[#allocation5 + $0x118] sm:$0xff]  ;;  %v2416_v2 = vld [vmem:[#allocation5 + $0x120] sm:$0xff] }
 0x3ba   :  { %v1483_v53 = vand.u32 4294901760, %v1482_v8  ;;  %v1495_v36 = vand.u32 4294901760, %v10247_v38  ;;  %v1396_v40 = vand.u32 4294901760, %v1367_v14  ;;  %v1365_v0 = vpop.permute.xlu0 %1364  ;;  %v2437_v30 = vand.u32 4294901760, %v2414_v52 }
 0x3bb   :  { %v1476_v3 = vand.u32 4294901760, %v1475_v20  ;;  %v1488_v48 = vand.u32 4294901760, %v10256_v23  ;;  %v1393_v51 = vand.u32 4294901760, %v1365_v0  ;;  %8951 = vmatpush3.bf16.msra.mxu1 %v10254_v50  ;;  %v8974_v44 = vpack.c.bf16 %v10247_v38, %v10256_v23 }
 0x3bc   :  { %v1496_v18 = vsub.f32 %v10247_v38, %v1495_v36  ;;  %v1508_v31 = vsub.f32 %v1367_v14, %v1396_v40  ;;  %8952 = vmatprep.subr.bf16.mxu1 %v11907_v49  ;;  %v2440_v8 = vand.u32 4294901760, %v2415_v7  ;;  %v2443_v38 = vand.u32 4294901760, %v2416_v2  ;;  %v2418_v14 = vld [vmem:[#allocation5 + $0x130] sm:$0xff] }
 0x3bd   :  { %v1489_v21 = vsub.f32 %v10256_v23, %v1488_v48  ;;  %v10269_v32 = vpack.c.bf16 %v1396_v40, %v1393_v51  ;;  %v1501_v35 = vsub.f32 %v1365_v0, %v1393_v51  ;;  %v8959_v56 = vpack.c.bf16 %v1483_v53, %v1476_v3  ;;  %v2417_v23 = vld [vmem:[#allocation5 + $0x128] sm:$0xff]  ;;  %v2419_v3 = vld [vmem:[#allocation5 + $0x138] sm:$0xff] }
 0x3be   :  { %v1497_v22 = vand.u32 4294901760, %v1496_v18  ;;  %v1509_v4 = vand.u32 4294901760, %v1508_v31  ;;  %v8998_v42 = vpack.c.bf16 %v1495_v36, %v1488_v48  ;;  %v10358_v20 = vsub.f32 %v2415_v7, %v2440_v8  ;;  %v2420_v48 = vld [vmem:[#allocation5 + $0x140] sm:$0xff] }
 0x3bf   :  { %v1490_v62 = vand.u32 4294901760, %v1489_v21  ;;  %v1502_v5 = vand.u32 4294901760, %v1501_v35  ;;  %8954 = vmatpush3.bf16.msra.mxu1 %v10269_v32  ;;  %8960 = vmatpush3.bf16.msra.mxu0 %v8959_v56  ;;  %v8977_v45 = vpack.c.bf16 %v1508_v31, %v1501_v35  ;;  %v2446_v53 = vand.u32 4294901760, %v2417_v23 }
 0x3c0   :  { %v1510_v9 = vsub.f32 %v1508_v31, %v1509_v4  ;;  %8961 = vmatprep.subr.bf16.mxu0 %v11907_v49  ;;  %9051 = vmatprep.subr.bf16.mxu1 %v11907_v49  ;;  %v2449_v36 = vand.u32 4294901760, %v2418_v14  ;;  %v2452_v51 = vand.u32 4294901760, %v2419_v3  ;;  %v2455_v18 = vand.u32 4294901760, %v2420_v48 }
 0x3c1   :  { %v1503_v10 = vsub.f32 %v1501_v35, %v1502_v5  ;;  %v8962_v13 = vpack.c.bf16 %v1497_v22, %v1490_v62  ;;  %v10366_v0 = vsub.f32 %v2417_v23, %v2446_v53  ;;  %v1918_v35 = vld [vmem:[#allocation5 + $0x70] sm:$0xf] }
 0x3c2   :  { %v1511_v24 = vand.u32 4294901760, %v1510_v9  ;;  %7628 = vmatmul.mubr.f32.vlgmr.msra.gmra.mrb[2].mxu1 %v1451_v59  ;;  %v10364_v40 = vpack.c.bf16 %v2449_v36, %v2446_v53  ;;  %v10368_v43 = vsub.f32 %v2418_v14, %v2449_v36  ;;  %v10372_v31 = vpack.c.bf16 %v2455_v18, %v2452_v51  ;;  %v10417_v53 = vld [vmem:[#allocation5 + $0x188] sm:$0xff]  ;;  %v10419_v36 = vld [vmem:[#allocation5 + $0x190] sm:$0xff] }
 0x3c3   :  { %v1504_v25 = vand.u32 4294901760, %v1503_v10  ;;  %8963 = vmatpush3.bf16.msra.mxu0 %v8962_v13  ;;  %7823 = vmatprep.mubr.msk.f32.mxu1 %vm9916_vm2, %v11887_v63  ;;  %v10374_v21 = vsub.f32 %v2419_v3, %v2452_v51  ;;  %v1922_v56 = vsel %vm1920_vm4, %v1918_v35, 0  ;;  %v11889_v35 = vand.u32 4294901760, %v10419_v36 }
 0x3c4   :  { %8964 = vmatprep.subr.bf16.mxu0 %v11907_v49  ;;  %9053 = vmatpush3.bf16.msra.mxu1 %v10340_v26  ;;  %v10380_v22 = vand.u32 4294901760, %v1922_v56 }
 0x3c5   :  { %v8965_v27 = vpack.c.bf16 %v1511_v24, %v1504_v25  ;;  %9054 = vmatprep.subr.bf16.mxu1 %v11907_v49 }
 0x3c6   :  { %v1994_v59 = vsub.f32 %v1922_v56, %v10380_v22  ;;  %v10433_v56 = vld [vmem:[#allocation5 + $0x198] sm:$0xff] }
 0x3c7   :  { %8966 = vmatpush3.bf16.msra.mxu0 %v8965_v27 }
 0x3c8   :  { %8967 = vmatprep.subr.bf16.mxu0 %v11907_v49  ;;  %v1995_v10 = vand.u32 4294901760, %v1994_v59 }
 0x3ca   :  { %7647 = vmatmul.mubr.f32.vlgmr.msra.gmra.mrb[4].mxu0 %v10232_v29 }
 0x3cb   :  { %8969 = vmatpush3.bf16.msra.mxu0 %v8968_v46  ;;  %7665 = vmatprep.mubr.msk.f32.mxu0 %vm9916_vm2, %v11887_v63  ;;  %v9001_v46 = vpack.c.bf16 %v1509_v4, %v1502_v5 }
 0x3cc   :  { %8970 = vmatprep.subr.bf16.mxu0 %v11907_v49 }
 0x3cf   :  { %8972 = vmatpush3.bf16.msra.mxu0 %v8971_v33 }
 0x3d0   :  { %8973 = vmatprep.subr.bf16.mxu0 %v11907_v49 }
 0x3d3   :  { %8975 = vmatpush3.bf16.msra.mxu0 %v8974_v44 }
 0x3d4   :  { %8976 = vmatprep.subr.bf16.mxu0 %v11907_v49 }
 0x3d7   :  { %8978 = vmatpush3.bf16.msra.mxu0 %v8977_v45 }
 0x3d8   :  { %8979 = vmatprep.subr.bf16.mxu0 %v11907_v49 }
 0x3da   :  { %7666 = vmatmul.mubr.f32.vlgmr.msra.gmra.mrb[4].mxu0 %v10240_v1  ;;  %v10352_v1 = vsub.f32 %v2414_v52, %v2437_v30 }
 0x3db   :  { %8981 = vmatpush3.bf16.msra.mxu0 %v10207_v37  ;;  %7684 = vmatprep.mubr.msk.f32.mxu0 %vm9916_vm2, %v11887_v63 }
 0x3dc   :  { %8982 = vmatprep.subr.bf16.mxu0 %v11907_v49 }
 0x3df   :  { %8984 = vmatpush3.bf16.msra.mxu0 %v10234_v41 }
 0x3e0   :  { %8985 = vmatprep.subr.bf16.mxu0 %v11907_v49 }
 0x3e3   :  { %8987 = vmatpush3.bf16.msra.mxu0 %v10254_v50 }
 0x3e4   :  { %8988 = vmatprep.subr.bf16.mxu0 %v11907_v49 }
 0x3e7   :  { %8990 = vmatpush3.bf16.msra.mxu0 %v10269_v32 }
 0x3e8   :  { %8991 = vmatprep.subr.bf16.mxu0 %v11907_v49 }
 0x3ea   :  { %7685 = vmatmul.mubr.f32.vlgmr.msra.gmra.mrb[4].mxu0 %v1449_v16  ;;  %v10356_v16 = vpack.c.bf16 %v2443_v38, %v2440_v8  ;;  %v10410_v8 = vld [vmem:[#allocation5 + $0x180] sm:$0xff] }
 0x3eb   :  { %8993 = vmatpush3.bf16.msra.mxu0 %v10221_v57  ;;  %7703 = vmatprep.mubr.msk.f32.mxu0 %vm9916_vm2, %v11887_v63  ;;  %v11893_v14 = vand.u32 4294901760, %v10410_v8 }
 0x3ec   :  { %8994 = vmatprep.subr.bf16.mxu0 %v11907_v49 }
 0x3ed   :  { %v10429_v51 = vsub.f32 %v10410_v8, %v11893_v14 }
 0x3ef   :  { %8996 = vmatpush3.bf16.msra.mxu0 %v8995_v34  ;;  %v1996_v34 = vsub.f32 %v1994_v59, %v1995_v10  ;;  %12001 = vst [vmem:[#allocation15_spill] sm:$0xff] %v10429_v51 }
 0x3f0   :  { %8997 = vmatprep.subr.bf16.mxu0 %v11907_v49 }
 0x3f3   :  { %8999 = vmatpush3.bf16.msra.mxu0 %v8998_v42 }
 0x3f4   :  { %9000 = vmatprep.subr.bf16.mxu0 %v11907_v49 }
 0x3f7   :  { %9002 = vmatpush3.bf16.msra.mxu0 %v9001_v46 }
 0x3f8   :  { %9003 = vmatprep.subr.bf16.mxu0 %v11907_v49 }
 0x3fa   :  { %7704 = vmatmul.mubr.f32.vlgmr.msra.gmra.mrb[4].mxu0 %v10232_v29 }
 0x3fb   :  { %9005 = vmatpush3.bf16.msra.mxu0 %v10207_v37  ;;  %7722 = vmatprep.mubr.msk.f32.mxu0 %vm9916_vm2, %v11887_v63 }
 0x3fc   :  { %9006 = vmatprep.subr.bf16.mxu0 %v11907_v49 }
 0x3ff   :  { %9008 = vmatpush3.bf16.msra.mxu0 %v10234_v41  ;;  %v2413_v41 = vld [vmem:[#allocation5 + $0x108] sm:$0xff] }
 0x400   :  { %9009 = vmatprep.subr.bf16.mxu0 %v11907_v49  ;;  %v2434_v55 = vand.u32 4294901760, %v2413_v41 }
 0x402   :  { %v10348_v61 = vpack.c.bf16 %v2437_v30, %v2434_v55  ;;  %v10350_v39 = vsub.f32 %v2413_v41, %v2434_v55 }
 0x403   :  { %9011 = vmatpush3.bf16.msra.mxu0 %v10254_v50  ;;  %v10360_v50 = vsub.f32 %v2416_v2, %v2443_v38  ;;  %v10408_v2 = vld [vmem:[#allocation5 + $0x178] sm:$0xff] }
 0x404   :  { %9012 = vmatprep.subr.bf16.mxu0 %v11907_v49  ;;  %9056 = vmatpush3.bf16.msra.mxu1 %v10348_v61  ;;  %v11894_v23 = vand.u32 4294901760, %v10408_v2 }
 0x405   :  { %9057 = vmatprep.subr.bf16.mxu1 %v11907_v49 }
 0x407   :  { %9014 = vmatpush3.bf16.msra.mxu0 %v10269_v32  ;;  %v10376_v32 = vsub.f32 %v2420_v48, %v2455_v18  ;;  %v10424_v48 = vsub.f32 %v10408_v2, %v11894_v23  ;;  %v11892_v18 = vand.u32 4294901760, %v10417_v53 }
 0x408   :  { %9015 = vmatprep.subr.bf16.mxu0 %v11907_v49  ;;  %9059 = vmatpush3.bf16.msra.mxu1 %v10356_v16 }
 0x409   :  { %9060 = vmatprep.subr.bf16.mxu1 %v11907_v49  ;;  %12000 = vst [vmem:[#allocation14_spill] sm:$0xff] %v10424_v48 }
 0x40a   :  { %7723 = vmatmul.mubr.f32.vlgmr.msra.gmra.mrb[4].mxu0 %v10232_v29  ;;  %v10344_v29 = vsub.f32 %v2412_v15, %v2431_v19 }
 0x40b   :  { %7733 = vmatprep.mubr.msk.f32.mxu0 %vm9916_vm2, %v11887_v63 }
 0x40c   :  { %9062 = vmatpush3.bf16.msra.mxu1 %v10364_v40 }
 0x40d   :  { %9063 = vmatprep.subr.bf16.mxu1 %v11907_v49 }
 0x410   :  { %9065 = vmatpush3.bf16.msra.mxu1 %v10372_v31 }
 0x411   :  { %9066 = vmatprep.subr.bf16.mxu1 %v11907_v49 }
 0x495   :  { %v1453_v37 = vpop.f32.mrb[2].mxu1 }
 0x496   :  { %v7629_v47 = vpop.f32.mrb[3].mxu1  ;;  %v1454_v57 = vadd.f32 %v1453_v37, %v1369_v54 }
 0x4dd   :  { %v1907_v58 = vpop.f32.mrb[4].mxu0 }
 0x4de   :  { %v9658_v60 = vadd.f32 %v1907_v58, %v1454_v57  ;;  %v7724_v6 = vpop.f32.mrb[5].mxu0 }
 0x4e0   :  { %v10332_v11 = vmax.f32 %v9658_v60, 0.0  ;;  %v1997_v60 = vand.u32 4294901760, %v1996_v34 }
 0x4e2   :  { %1914 = vrot.lane.b32.xlu1 %v10332_v11, %s9913_s10  ;;  %1912 = vrot.lane.b32.xlu0 %v10332_v11, %s9912_s1  ;;  %v1925_v4 = vand.u32 4294901760, %v10332_v11 }
 0x4e4   :  { %v2005_v62 = vsub.f32 %v10332_v11, %v1925_v4 }
 0x4e6   :  { %1916 = vrot.lane.b32.xlu0 %v10332_v11, %s9914_s11  ;;  %v2006_v25 = vand.u32 4294901760, %v2005_v62 }
 0x4e8   :  { %v2007_v47 = vsub.f32 %v2005_v62, %v2006_v25 }
 0x4ea   :  { %v2008_v15 = vand.u32 4294901760, %v2007_v47  ;;  %v10483_v47 = vld [vmem:[#allocation5 + $0x1c0] sm:$0xff] }
 0x554   :  { %v1915_v5 = vpop.permute.xlu1 %1914  ;;  %v1913_v9 = vpop.permute.xlu0 %1912 }
 0x555   :  { %v1931_v13 = vand.u32 4294901760, %v1915_v5  ;;  %v1928_v24 = vand.u32 4294901760, %v1913_v9 }
 0x557   :  { %v2019_v27 = vsub.f32 %v1915_v5, %v1931_v13  ;;  %v10385_v33 = vpack.c.bf16 %v1928_v24, %v1925_v4  ;;  %v2012_v44 = vsub.f32 %v1913_v9, %v1928_v24  ;;  %v10435_v4 = vld [vmem:[#allocation5 + $0x1a0] sm:$0xff]  ;;  %v11878_v5 = vand.u32 4294901760, %v10424_v48  ;;  %v10456_v24 = vld [vmem:[#allocation5 + $0x1a8] sm:$0xff] }
 0x558   :  { %v1917_v45 = vpop.permute.xlu0 %1916  ;;  %v11877_v9 = vand.u32 4294901760, %v10429_v51  ;;  %v12049_v48 = vpack.c.bf16 %v10352_v1, %v10350_v39 }
 0x559   :  { %v2020_v42 = vand.u32 4294901760, %v2019_v27  ;;  %v2013_v46 = vand.u32 4294901760, %v2012_v44  ;;  %v1934_v37 = vand.u32 4294901760, %v1917_v45  ;;  %9017 = vmatpush3.bf16.msra.mxu0 %v10385_v33  ;;  %v9028_v30 = vpack.c.bf16 %v2012_v44, %v2005_v62 }
 0x55a   :  { %9018 = vmatprep.subr.bf16.mxu0 %v11907_v49  ;;  %v11885_v62 = vand.u32 4294901760, %v10435_v4  ;;  %v9292_v34 = vpack.c.bf16 %v11877_v9, %v11878_v5 }
 0x55b   :  { %v2014_v54 = vsub.f32 %v2012_v44, %v2013_v46  ;;  %v10389_v57 = vpack.c.bf16 %v1934_v37, %v1931_v13  ;;  %v2026_v58 = vsub.f32 %v1917_v45, %v1934_v37  ;;  %v2021_v6 = vsub.f32 %v2019_v27, %v2020_v42  ;;  %v10481_v37 = vld [vmem:[#allocation5 + $0x1b8] sm:$0xff] }
 0x55c   :  { %v9040_v38 = vpack.c.bf16 %v2013_v46, %v2006_v25  ;;  %v10454_v13 = vsub.f32 %v10419_v36, %v11889_v35  ;;  %v10458_v25 = vld [vmem:[#allocation5 + $0x1b0] sm:$0xff]  ;;  %v11884_v44 = vand.u32 4294901760, %v10456_v24 }
 0x55d   :  { %v2015_v11 = vand.u32 4294901760, %v2014_v54  ;;  %v2027_v12 = vand.u32 4294901760, %v2026_v58  ;;  %9020 = vmatpush3.bf16.msra.mxu0 %v10389_v57  ;;  %v2022_v41 = vand.u32 4294901760, %v2021_v6  ;;  %v9031_v7 = vpack.c.bf16 %v2026_v58, %v2019_v27 }
 0x55e   :  { %9021 = vmatprep.subr.bf16.mxu0 %v11907_v49  ;;  %12003 = vst [vmem:[#allocation17_spill] sm:$0xff] %v10454_v13  ;;  %v11883_v45 = vand.u32 4294901760, %v10458_v25  ;;  %v11873_v46 = vand.u32 4294901760, %v10454_v13  ;;  %v11882_v6 = vand.u32 4294901760, %v10481_v37 }
 0x55f   :  { %v2028_v17 = vsub.f32 %v2026_v58, %v2027_v12  ;;  %v9022_v19 = vpack.c.bf16 %v2015_v11, %v2008_v15  ;;  %v9043_v3 = vpack.c.bf16 %v2027_v12, %v2020_v42  ;;  %v10491_v58 = vsub.f32 %v10456_v24, %v11884_v44  ;;  %v10507_v12 = vld [vmem:[#allocation5 + $0x1c8] sm:$0xff]  ;;  %v10509_v15 = vld [vmem:[#allocation5 + $0x1d0] sm:$0xff] }
 0x560   :  { %7734 = vmatmul.mubr.f32.vlgmr.msra.gmra.mrb[6].mxu0 %v1997_v60  ;;  %v10496_v60 = vsub.f32 %v10458_v25, %v11883_v45  ;;  %v11881_v11 = vand.u32 4294901760, %v10483_v47 }
 0x561   :  { %v2029_v52 = vand.u32 4294901760, %v2028_v17  ;;  %9023 = vmatpush3.bf16.msra.mxu0 %v9022_v19  ;;  %7744 = vmatprep.mubr.msk.f32.mxu0 %vm9916_vm2, %v11887_v63  ;;  %12006 = vst [vmem:[#allocation20_spill] sm:$0xff] %v10491_v58  ;;  %v11869_v19 = vand.u32 4294901760, %v10491_v58 }
 0x562   :  { %9024 = vmatprep.subr.bf16.mxu0 %v11907_v49  ;;  %12007 = vst [vmem:[#allocation21_spill] sm:$0xff] %v10496_v60 }
 0x563   :  { %v9025_v55 = vpack.c.bf16 %v2029_v52, %v2022_v41  ;;  %v11868_v41 = vand.u32 4294901760, %v10496_v60  ;;  %v10520_v52 = vsub.f32 %v10481_v37, %v11882_v6 }
 0x565   :  { %9026 = vmatpush3.bf16.msra.mxu0 %v9025_v55  ;;  %12008 = vst [vmem:[#allocation22_spill] sm:$0xff] %v10520_v52  ;;  %v10525_v55 = vsub.f32 %v10483_v47, %v11881_v11  ;;  %v2422_v11 = vld [vmem:[#allocation5 + $0x150] sm:$0xff] }
 0x566   :  { %9027 = vmatprep.subr.bf16.mxu0 %v11907_v49  ;;  %v2461_v44 = vand.u32 4294901760, %v2422_v11 }
 0x567   :  { %12009 = vst [vmem:[#allocation23_spill] sm:$0xff] %v10525_v55 }
 0x568   :  { %7745 = vmatmul.mubr.f32.vlgmr.msra.gmra.mrb[6].mxu0 %v10380_v22 }
 0x569   :  { %9029 = vmatpush3.bf16.msra.mxu0 %v9028_v30  ;;  %7755 = vmatprep.mubr.msk.f32.mxu0 %vm9916_vm2, %v11887_v63  ;;  %v11880_v30 = vand.u32 4294901760, %v10507_v12 }
 0x56a   :  { %9030 = vmatprep.subr.bf16.mxu0 %v11907_v49 }
 0x56d   :  { %9032 = vmatpush3.bf16.msra.mxu0 %v9031_v7  ;;  %v11879_v7 = vand.u32 4294901760, %v10509_v15 }
 0x56e   :  { %9033 = vmatprep.subr.bf16.mxu0 %v11907_v49 }
 0x570   :  { %7756 = vmatmul.mubr.f32.vlgmr.msra.gmra.mrb[6].mxu0 %v1994_v59  ;;  %v11886_v59 = vand.u32 4294901760, %v10433_v56 }
 0x571   :  { %9035 = vmatpush3.bf16.msra.mxu0 %v10385_v33  ;;  %7766 = vmatprep.mubr.msk.f32.mxu0 %vm9916_vm2, %v11887_v63 }
 0x572   :  { %9036 = vmatprep.subr.bf16.mxu0 %v11907_v49  ;;  %v10464_v27 = vsub.f32 %v10433_v56, %v11886_v59 }
 0x574   :  { %12004 = vst [vmem:[#allocation18_spill] sm:$0xff] %v10464_v27  ;;  %v11870_v54 = vand.u32 4294901760, %v10464_v27 }
 0x575   :  { %9038 = vmatpush3.bf16.msra.mxu0 %v10389_v57 }
 0x576   :  { %9039 = vmatprep.subr.bf16.mxu0 %v11907_v49 }
 0x578   :  { %7767 = vmatmul.mubr.f32.vlgmr.msra.gmra.mrb[6].mxu0 %v1995_v10  ;;  %v10449_v10 = vsub.f32 %v10417_v53, %v11892_v18  ;;  %v2424_v18 = vld [vmem:[#allocation5 + $0x160] sm:$0xff] }
 0x579   :  { %9041 = vmatpush3.bf16.msra.mxu0 %v9040_v38  ;;  %7777 = vmatprep.mubr.msk.f32.mxu0 %vm9916_vm2, %v11887_v63  ;;  %v9301_v38 = vpack.c.bf16 %v11868_v41, %v11869_v19  ;;  %v2467_v23 = vand.u32 4294901760, %v2424_v18 }
 0x57a   :  { %9042 = vmatprep.subr.bf16.mxu0 %v11907_v49  ;;  %12002 = vst [vmem:[#allocation16_spill] sm:$0xff] %v10449_v10  ;;  %v11876_v42 = vand.u32 4294901760, %v10449_v10 }
 0x57d   :  { %9044 = vmatpush3.bf16.msra.mxu0 %v9043_v3  ;;  %v11872_v3 = vand.u32 4294901760, %v10520_v52 }
 0x57e   :  { %9045 = vmatprep.subr.bf16.mxu0 %v11907_v49 }
 0x580   :  { %7778 = vmatmul.mubr.f32.vlgmr.msra.gmra.mrb[6].mxu0 %v10380_v22 }
 0x581   :  { %9047 = vmatpush3.bf16.msra.mxu0 %v10385_v33  ;;  %7788 = vmatprep.mubr.msk.f32.mxu0 %vm9916_vm2, %v11887_v63  ;;  %v10469_v33 = vsub.f32 %v10435_v4, %v11885_v62 }
 0x582   :  { %9048 = vmatprep.subr.bf16.mxu0 %v11907_v49 }
 0x583   :  { %12005 = vst [vmem:[#allocation19_spill] sm:$0xff] %v10469_v33 }
 0x585   :  { %9050 = vmatpush3.bf16.msra.mxu0 %v10389_v57  ;;  %v11867_v57 = vand.u32 4294901760, %v10469_v33 }
 0x586   :  { %9291 = vmatprep.subr.bf16.mxu0 %v11907_v49 }
 0x587   :  { %v9298_v17 = vpack.c.bf16 %v11867_v57, %v11870_v54  ;;  %v10544_v57 = vsub.f32 %v10509_v15, %v11879_v7 }
 0x588   :  { %7789 = vmatmul.mubr.f32.vlgmr.msra.gmra.mrb[6].mxu0 %v10380_v22  ;;  %v9295_v22 = vpack.c.bf16 %v11873_v46, %v11876_v42 }
 0x589   :  { %9293 = vmatpush3.bf16.msra.mxu0 %v9292_v34  ;;  %8173 = vmatprep.mubr.msk.f32.mxu0 %vm9916_vm2, %v11887_v63  ;;  %v11871_v34 = vand.u32 4294901760, %v10525_v55  ;;  %12011 = vst [vmem:[#allocation25_spill] sm:$0xff] %v10544_v57  ;;  %v11874_v19 = vand.u32 4294901760, %v10544_v57  ;;  %v2426_v57 = vld [vmem:[#allocation5 + $0x170] sm:$0xff] }
 0x58a   :  { %9294 = vmatprep.subr.bf16.mxu0 %v11907_v49 }
 0x58d   :  { %9296 = vmatpush3.bf16.msra.mxu0 %v9295_v22  ;;  %v10539_v22 = vsub.f32 %v10507_v12, %v11880_v30  ;;  %v2421_v30 = vld [vmem:[#allocation5 + $0x148] sm:$0xff] }
 0x58e   :  { %9297 = vmatprep.subr.bf16.mxu0 %v11907_v49  ;;  %v2458_v45 = vand.u32 4294901760, %v2421_v30 }
 0x58f   :  { %12010 = vst [vmem:[#allocation24_spill] sm:$0xff] %v10539_v22  ;;  %v11875_v41 = vand.u32 4294901760, %v10539_v22 }
 0x590   :  { %v10598_v63 = vpack.c.bf16 %v2461_v44, %v2458_v45 }
 0x591   :  { %9299 = vmatpush3.bf16.msra.mxu0 %v9298_v17  ;;  %v9304_v17 = vpack.c.bf16 %v11871_v34, %v11872_v3  ;;  %v9307_v54 = vpack.c.bf16 %v11874_v19, %v11875_v41  ;;  %v10562_v34 = vld [vmem:[#allocation5 + $0x1e0] sm:$0xff]  ;;  %v10578_v41 = vld [vmem:[#allocation5 + $0x1f0] sm:$0xff] }
 0x592   :  { %9300 = vmatprep.subr.bf16.mxu0 %v11907_v49  ;;  %v11896_v46 = vand.u32 4294901760, %v10562_v34  ;;  %v11897_v7 = vand.u32 4294901760, %v10578_v41  ;;  %9068 = vmatpush3.bf16.msra.mxu1 %v10598_v63 }
 0x593   :  { %9069 = vmatprep.subr.bf16.mxu1 %v11907_v49 }
 0x594   :  { %v10574_v19 = vsub.f32 %v10562_v34, %v11896_v46  ;;  %v10596_v59 = vsub.f32 %v10578_v41, %v11897_v7  ;;  %v10606_v46 = vsub.f32 %v2422_v11, %v2461_v44  ;;  %v11912_v11 = vand.u32 4294901760, %v10342_v28 }
 0x595   :  { %9302 = vmatpush3.bf16.msra.mxu0 %v9301_v38  ;;  %v10560_v38 = vld [vmem:[#allocation5 + $0x1d8] sm:$0xff] }
 0x596   :  { %9303 = vmatprep.subr.bf16.mxu0 %v11907_v49  ;;  %v11898_v3 = vand.u32 4294901760, %v10560_v38  ;;  %12013 = vst [vmem:[#allocation27_spill] sm:$0xff] %v10574_v19  ;;  %v11890_v9 = vand.u32 4294901760, %v10574_v19  ;;  %12015 = vst [vmem:[#allocation29_spill] sm:$0xff] %v10596_v59  ;;  %v10617_v19 = vsub.f32 %v2424_v18, %v2467_v23  ;;  %v2522_v18 = vsub.f32 %v10342_v28, %v11912_v11 }
 0x598   :  { %v11938_v33 = vand.u32 4294901760, %v10617_v19 }
 0x599   :  { %9305 = vmatpush3.bf16.msra.mxu0 %v9304_v17  ;;  %v10569_v17 = vsub.f32 %v10560_v38, %v11898_v3 }
 0x59a   :  { %9306 = vmatprep.subr.bf16.mxu0 %v11907_v49 }
 0x59b   :  { %12012 = vst [vmem:[#allocation26_spill] sm:$0xff] %v10569_v17  ;;  %v11891_v42 = vand.u32 4294901760, %v10569_v17  ;;  %v2425_v17 = vld [vmem:[#allocation5 + $0x168] sm:$0xff] }
 0x59c   :  { %v2470_v44 = vand.u32 4294901760, %v2425_v17 }
 0x59d   :  { %9308 = vmatpush3.bf16.msra.mxu0 %v9307_v54  ;;  %v10576_v54 = vld [vmem:[#allocation5 + $0x1e8] sm:$0xff]  ;;  %v9310_v6 = vpack.c.bf16 %v11890_v9, %v11891_v42  ;;  %v11905_v9 = vand.u32 4294901760, %v10596_v59  ;;  %v2423_v42 = vld [vmem:[#allocation5 + $0x158] sm:$0xff]  ;;  %v12016_v59 = vmov 0.0|0.0  }
 0x59e   :  { %9309 = vmatprep.subr.bf16.mxu0 %v11907_v49  ;;  %v11895_v5 = vand.u32 4294901760, %v10576_v54  ;;  %v2464_v14 = vand.u32 4294901760, %v2423_v42 }
 0x5a0   :  { %v10591_v62 = vsub.f32 %v10576_v54, %v11895_v5  ;;  %v10604_v5 = vsub.f32 %v2421_v30, %v2458_v45  ;;  %v10613_v7 = vpack.c.bf16 %v2467_v23, %v2464_v14  ;;  %v10615_v3 = vsub.f32 %v2423_v42, %v2464_v14 }
 0x5a1   :  { %9311 = vmatpush3.bf16.msra.mxu0 %v9310_v6  ;;  %v2473_v45 = vand.u32 4294901760, %v2426_v57  ;;  %v11911_v30 = vand.u32 4294901760, %v10344_v29  ;;  %v10626_v14 = vsub.f32 %v2425_v17, %v2470_v44 }
 0x5a2   :  { %12014 = vst [vmem:[#allocation28_spill] sm:$0xff] %v10591_v62  ;;  %v11906_v35 = vand.u32 4294901760, %v10591_v62  ;;  %9312 = vmatprep.subr.bf16.mxu0 %v11907_v49  ;;  %9071 = vmatpush3.bf16.msra.mxu1 %v10613_v7  ;;  %v11922_v62 = vand.u32 4294901760, %v10360_v50 }
 0x5a3   :  { %9072 = vmatprep.subr.bf16.mxu1 %v11907_v49  ;;  %v10628_v23 = vsub.f32 %v2426_v57, %v2473_v45  ;;  %v2529_v42 = vsub.f32 %v10344_v29, %v11911_v30 }
 0x5a4   :  { %v9313_v6 = vpack.c.bf16 %v11905_v9, %v11906_v35  ;;  %v10624_v9 = vpack.c.bf16 %v2473_v45, %v2470_v44  ;;  %v11917_v35 = vand.u32 4294901760, %v10350_v39 }
 0x5a5   :  { %v2530_v17 = vand.u32 4294901760, %v2529_v42 }
 0x5a6   :  { %9314 = vmatpush3.bf16.msra.mxu0 %v9313_v6  ;;  %9074 = vmatpush3.bf16.msra.mxu1 %v10624_v9  ;;  %v2523_v6 = vand.u32 4294901760, %v2522_v18  ;;  %v2536_v57 = vsub.f32 %v10350_v39, %v11917_v35  ;;  %v11920_v18 = vand.u32 4294901760, %v10358_v20  ;;  %v2557_v35 = vsub.f32 %v10360_v50, %v11922_v62 }
 0x5a7   :  { %9315 = vmatprep.subr.bf16.mxu0 %v11907_v49  ;;  %v11921_v49 = vand.u32 4294901760, %v10352_v1  ;;  %9075 = vmatprep.subr.bf16.mxu1 %v12016_v59  ;;  %v11928_v62 = vand.u32 4294901760, %v10374_v21 }
 0x5a8   :  { %v10646_v45 = vpack.c.bf16 %v2530_v17, %v2523_v6  ;;  %v2537_v30 = vand.u32 4294901760, %v2536_v57  ;;  %v2550_v42 = vsub.f32 %v10358_v20, %v11920_v18  ;;  %v11925_v6 = vand.u32 4294901760, %v10366_v0 }
 0x5a9   :  { %v2543_v44 = vsub.f32 %v10352_v1, %v11921_v49  ;;  %v11930_v17 = vand.u32 4294901760, %v10368_v43  ;;  %v2558_v57 = vand.u32 4294901760, %v2557_v35  ;;  %v2578_v35 = vsub.f32 %v10374_v21, %v11928_v62 }
 0x5aa   :  { %v2551_v55 = vand.u32 4294901760, %v2550_v42  ;;  %v11929_v42 = vand.u32 4294901760, %v10376_v32  ;;  %v12017_v62 = vand.u32 4294901760, %v10560_v38 }
 0x5ab   :  { %v2544_v11 = vand.u32 4294901760, %v2543_v44  ;;  %v2564_v44 = vsub.f32 %v10366_v0, %v11925_v6  ;;  %v2579_v60 = vand.u32 4294901760, %v2578_v35 }
 0x5ac   :  { %v2585_v6 = vsub.f32 %v10376_v32, %v11929_v42  ;;  %v12018_v42 = vand.u32 4294901760, %v10562_v34  ;;  %v12020_v34 = vand.u32 4294901760, %v10576_v54 }
 0x5ad   :  { %v10650_v22 = vpack.c.bf16 %v2544_v11, %v2537_v30  ;;  %v2571_v11 = vsub.f32 %v10368_v43, %v11930_v17  ;;  %v10666_v30 = vpack.c.bf16 %v2558_v57, %v2551_v55  ;;  %v2565_v18 = vand.u32 4294901760, %v2564_v44 }
 0x5ae   :  { %v11942_v55 = vand.u32 4294901760, %v10604_v5  ;;  %v11937_v57 = vand.u32 4294901760, %v10606_v46  ;;  %v2586_v44 = vand.u32 4294901760, %v2585_v6  ;;  %v10692_v35 = vpack.c.bf16 %v12018_v42, %v12017_v62 }
 0x5af   :  { %v2572_v49 = vand.u32 4294901760, %v2571_v11  ;;  %v11941_v6 = vand.u32 4294901760, %v10615_v3  ;;  %v12021_v62 = vand.u32 4294901760, %v10578_v41 }
 0x5b0   :  { %v2592_v11 = vsub.f32 %v10604_v5, %v11942_v55  ;;  %12019 = vst [vmem:[#allocation30_spill] sm:$0xff] %v10692_v35 }
 0x5b1   :  { %v10670_v52 = vpack.c.bf16 %v2572_v49, %v2565_v18  ;;  %v2599_v49 = vsub.f32 %v10606_v46, %v11937_v57  ;;  %v10686_v18 = vpack.c.bf16 %v2586_v44, %v2579_v60  ;;  %v2606_v57 = vsub.f32 %v10615_v3, %v11941_v6 }
 0x5b2   :  { %v2593_v17 = vand.u32 4294901760, %v2592_v11  ;;  %v2613_v60 = vsub.f32 %v10617_v19, %v11938_v33  ;;  %v10708_v38 = vpack.c.bf16 %v12021_v62, %v12020_v34  ;;  %v11939_v44 = vand.u32 4294901760, %v10626_v14 }
 0x5b3   :  { %v2600_v58 = vand.u32 4294901760, %v2599_v49  ;;  %v2607_v42 = vand.u32 4294901760, %v2606_v57  ;;  %v12025_v62 = vand.u32 4294901760, %v10408_v2  ;;  %v12029_v2 = vand.u32 4294901760, %v10417_v53  ;;  %v10854_v57 = vld [vmem:[#allocation5 + $0x240] sm:$0xff] }
 0x5b4   :  { %12022 = vst [vmem:[#allocation31_spill] sm:$0xff] %v10708_v38  ;;  %v2620_v11 = vsub.f32 %v10626_v14, %v11939_v44  ;;  %v12034_v53 = vand.u32 4294901760, %v10435_v4  ;;  %v12039_v4 = vand.u32 4294901760, %v10481_v37  ;;  %v3730_v37 = vld [vmem:[#allocation5 + $0x1f8] sm:$0xff]  ;;  %v3776_v10 = vand.u32 4294901760, %v10854_v57 }
 0x5b5   :  { %v10696_v27 = vpack.c.bf16 %v2600_v58, %v2593_v17  ;;  %v11940_v58 = vand.u32 4294901760, %v10628_v23  ;;  %v2614_v17 = vand.u32 4294901760, %v2613_v60 }
 0x5b6   :  { %v2621_v54 = vand.u32 4294901760, %v2620_v11 }
 0x5b7   :  { %v2627_v49 = vsub.f32 %v10628_v23, %v11940_v58  ;;  %v10718_v33 = vpack.c.bf16 %v2614_v17, %v2607_v42  ;;  %v12026_v17 = vand.u32 4294901760, %v10410_v8  ;;  %v12030_v8 = vand.u32 4294901760, %v10419_v36 }
 0x5b8   :  { %v12036_v36 = vand.u32 4294901760, %v10456_v24  ;;  %v12042_v24 = vand.u32 4294901760, %v10507_v12  ;;  %v3749_v12 = vand.u32 4294901760, %v3730_v37 }
 0x5b9   :  { %v2628_v41 = vand.u32 4294901760, %v2627_v49  ;;  %v10748_v60 = vpack.c.bf16 %v12026_v17, %v12025_v62  ;;  %v10765_v62 = vpack.c.bf16 %v12030_v8, %v12029_v2  ;;  %v12032_v17 = vmov 0.0  }
 0x5bb   :  { %v10720_v34 = vpack.c.bf16 %v2628_v41, %v2621_v54  ;;  %v1919_v54 = vld [vmem:[#allocation5 + $0x78] sm:$0xf]  ;;  %12027 = vst [vmem:[#allocation34_spill] sm:$0xff] %v10748_v60  ;;  %12031 = vst [vmem:[#allocation36_spill] sm:$0xff] %v10765_v62 }
 0x65b   :  { %v2405_v41 = vpop.f32.mrb[6].mxu0 }
 0x65c   :  { %v9659_v58 = vadd.f32 %v2405_v41, %v1919_v54  ;;  %v7790_v6 = vpop.f32.mrb[7].mxu0 }
 0x65e   :  { %v10738_v55 = vmax.f32 %v9659_v58, 0.0 }
 0x660   :  { %12023 = vst [vmem:[#allocation32_spill] sm:$0xff] %v10738_v55  ;;  %v10741_v44 = vand.u32 4294901760, %v10738_v55  ;;  %v11943_v42 = vrot.slane %v10738_v55, 1  ;;  %v3746_v51 = vrot.slane %v10738_v55, 2 }
 0x662   :  { %12024 = vst [vmem:[#allocation33_spill] sm:$0xff] %v10741_v44  ;;  %v10752_v49 = vand.u32 4294901760, %v11943_v42  ;;  %v10756_v6 = vsub.f32 %v10738_v55, %v10741_v44  ;;  %v12033_v42 = vand.u32 4294901760, %v10433_v56  ;;  %v12037_v56 = vand.u32 4294901760, %v10458_v25  ;;  %v10889_v55 = vld [vmem:[#allocation5 + $0x258] sm:$0xff] }
 0x663   :  { %v12043_v25 = vand.u32 4294901760, %v10509_v15 }
 0x664   :  { %12028 = vst [vmem:[#allocation35_spill] sm:$0xff] %v10752_v49  ;;  %8174 = vmatmul.mubr.f32.vlgmr.msra.gmra.mrb[8].mxu0 %v10752_v49  ;;  %v11944_v58 = vand.u32 4294901760, %v10756_v6  ;;  %v10778_v11 = vpack.c.bf16 %v12034_v53, %v12033_v42  ;;  %v10790_v2 = vpack.c.bf16 %v12037_v56, %v12036_v36  ;;  %v10827_v53 = vld [vmem:[#allocation5 + $0x220] sm:$0xff] }
 0x665   :  { %9317 = vmatpush3.bf16.msra.mxu0 %v10748_v60  ;;  %8208 = vmatprep.mubr.msk.f32.mxu0 %vm9916_vm2, %v12032_v17  ;;  %v3764_v56 = vand.u32 4294901760, %v10827_v53 }
 0x666   :  { %9318 = vmatprep.subr.bf16.mxu0 %v12016_v59  ;;  %v2511_v54 = vsub.f32 %v10756_v6, %v11944_v58  ;;  %12035 = vst [vmem:[#allocation37_spill] sm:$0xff] %v10778_v11  ;;  %12038 = vst [vmem:[#allocation38_spill] sm:$0xff] %v10790_v2  ;;  %v10852_v58 = vld [vmem:[#allocation5 + $0x238] sm:$0xff] }
 0x667   :  { %v3773_v13 = vand.u32 4294901760, %v10852_v58 }
 0x668   :  { %v2512_v41 = vand.u32 4294901760, %v2511_v54 }
 0x669   :  { %9320 = vmatpush3.bf16.msra.mxu0 %v10765_v62 }
 0x66a   :  { %7824 = vmatmul.mubr.f32.vlgmr.msra.gmra.mrb[4].mxu1 %v2512_v41  ;;  %9321 = vmatprep.subr.bf16.mxu0 %v12016_v59  ;;  %v3734_v41 = vld [vmem:[#allocation5 + $0x218] sm:$0xff] }
 0x66b   :  { %9077 = vmatpush3.bf16.msra.mxu1 %v10646_v45  ;;  %7858 = vmatprep.mubr.msk.f32.mxu1 %vm9916_vm2, %v12032_v17  ;;  %v12040_v45 = vand.u32 4294901760, %v10483_v47  ;;  %v3731_v47 = vld [vmem:[#allocation5 + $0x200] sm:$0xff]  ;;  %v3761_v36 = vand.u32 4294901760, %v3734_v41 }
 0x66c   :  { %9078 = vmatprep.subr.bf16.mxu1 %v12016_v59  ;;  %v3752_v15 = vand.u32 4294901760, %v3731_v47 }
 0x66d   :  { %9323 = vmatpush3.bf16.msra.mxu0 %v10778_v11  ;;  %v10800_v42 = vpack.c.bf16 %v12040_v45, %v12039_v4  ;;  %v10839_v4 = vld [vmem:[#allocation5 + $0x228] sm:$0xff]  ;;  %v10841_v45 = vld [vmem:[#allocation5 + $0x230] sm:$0xff]  ;;  %v10891_v11 = vld [vmem:[#allocation5 + $0x260] sm:$0xff] }
 0x66e   :  { %9324 = vmatprep.subr.bf16.mxu0 %v12016_v59  ;;  %v10824_v8 = vpack.c.bf16 %v3752_v15, %v3749_v12 }
 0x66f   :  { %9080 = vmatpush3.bf16.msra.mxu1 %v10650_v22  ;;  %12041 = vst [vmem:[#allocation39_spill] sm:$0xff] %v10800_v42  ;;  %v10810_v22 = vpack.c.bf16 %v12043_v25, %v12042_v24  ;;  %v3767_v24 = vand.u32 4294901760, %v10839_v4  ;;  %v11959_v25 = vand.u32 4294901760, %v10841_v45 }
 0x670   :  { %9081 = vmatprep.subr.bf16.mxu1 %v12016_v59 }
 0x671   :  { %9326 = vmatpush3.bf16.msra.mxu0 %v10790_v2  ;;  %12044 = vst [vmem:[#allocation40_spill] sm:$0xff] %v10810_v22  ;;  %v12054_v2 = vpack.c.bf16 %v10368_v43, %v10366_v0 }
 0x672   :  { %9327 = vmatprep.subr.bf16.mxu0 %v12016_v59 }
 0x673   :  { %9083 = vmatpush3.bf16.msra.mxu1 %v10666_v30  ;;  %v3732_v30 = vld [vmem:[#allocation5 + $0x208] sm:$0xff] }
 0x674   :  { %9084 = vmatprep.subr.bf16.mxu1 %v12016_v59  ;;  %v3755_v54 = vand.u32 4294901760, %v3732_v30 }
 0x675   :  { %9329 = vmatpush3.bf16.msra.mxu0 %v10800_v42 }
 0x676   :  { %9330 = vmatprep.subr.bf16.mxu0 %v12016_v59 }
 0x677   :  { %9086 = vmatpush3.bf16.msra.mxu1 %v10670_v52  ;;  %v3733_v52 = vld [vmem:[#allocation5 + $0x210] sm:$0xff] }
 0x678   :  { %9087 = vmatprep.subr.bf16.mxu1 %v12016_v59 }
 0x679   :  { %9332 = vmatpush3.bf16.msra.mxu0 %v10810_v22  ;;  %v10878_v22 = vsub.f32 %v3730_v37, %v3749_v12  ;;  %v12051_v37 = vpack.c.bf16 %v10360_v50, %v10358_v20 }
 0x67a   :  { %9333 = vmatprep.subr.bf16.mxu0 %v12016_v59 }
 0x67b   :  { %9089 = vmatpush3.bf16.msra.mxu1 %v10686_v18  ;;  %v3758_v18 = vand.u32 4294901760, %v3733_v52 }
 0x67c   :  { %9090 = vmatprep.subr.bf16.mxu1 %v12016_v59 }
 0x67d   :  { %9335 = vmatpush3.bf16.msra.mxu0 %v10692_v35  ;;  %v10870_v35 = vld [vmem:[#allocation5 + $0x248] sm:$0xff]  ;;  %v10900_v12 = vsub.f32 %v3733_v52, %v3758_v18  ;;  %v10915_v52 = vld [vmem:[#allocation5 + $0x270] sm:$0xff] }
 0x67e   :  { %9336 = vmatprep.subr.bf16.mxu0 %v12016_v59  ;;  %v3779_v42 = vand.u32 4294901760, %v10870_v35 }
 0x67f   :  { %9092 = vmatpush3.bf16.msra.mxu1 %v10696_v27  ;;  %v10833_v27 = vpack.c.bf16 %v3758_v18, %v3755_v54  ;;  %v10920_v18 = vsub.f32 %v3734_v41, %v3761_v36  ;;  %v10935_v41 = vsub.f32 %v10827_v53, %v3764_v56  ;;  %v12059_v53 = vpack.c.bf16 %v10376_v32, %v10374_v21 }
 0x680   :  { %9093 = vmatprep.subr.bf16.mxu1 %v12016_v59 }
 0x681   :  { %9338 = vmatpush3.bf16.msra.mxu0 %v10708_v38  ;;  %12045 = vst [vmem:[#allocation41_spill] sm:$0xff] %v10833_v27  ;;  %v10865_v38 = vpack.c.bf16 %v11959_v25, %v3767_v24  ;;  %v10880_v25 = vsub.f32 %v3731_v47, %v3752_v15  ;;  %v10898_v47 = vsub.f32 %v3732_v30, %v3755_v54  ;;  %v11980_v15 = vand.u32 4294901760, %v10878_v22  ;;  %v10913_v30 = vld [vmem:[#allocation5 + $0x268] sm:$0xff] }
 0x682   :  { %9339 = vmatprep.subr.bf16.mxu0 %v12016_v59 }
 0x683   :  { %9095 = vmatpush3.bf16.msra.mxu1 %v10718_v33  ;;  %v10846_v33 = vpack.c.bf16 %v3764_v56, %v3761_v36  ;;  %12048 = vst [vmem:[#allocation43_spill] sm:$0xff] %v10865_v38  ;;  %v12057_v36 = vand.u32 4294901760, %v10891_v11 }
 0x684   :  { %8209 = vmatmul.mubr.f32.vlgmr.msra.gmra.mrb[8].mxu0 %v10752_v49  ;;  %9096 = vmatprep.subr.bf16.mxu1 %v12016_v59  ;;  %v10884_v49 = vpack.c.bf16 %v3776_v10, %v3773_v13 }
 0x685   :  { %9341 = vmatpush3.bf16.msra.mxu0 %v10824_v8  ;;  %8243 = vmatprep.mubr.msk.f32.mxu0 %vm9916_vm2, %v12032_v17  ;;  %12046 = vst [vmem:[#allocation42_spill] sm:$0xff] %v10846_v33 }
 0x686   :  { %9342 = vmatprep.subr.bf16.mxu0 %v12016_v59  ;;  %12050 = vst [vmem:[#allocation44_spill] sm:$0xff] %v10884_v49 }
 0x687   :  { %9098 = vmatpush3.bf16.msra.mxu1 %v10720_v34  ;;  %v12047_v34 = vpack.c.bf16 %v10344_v29, %v10342_v28 }
 0x688   :  { %9099 = vmatprep.subr.bf16.mxu1 %v12016_v59 }
 0x689   :  { %9344 = vmatpush3.bf16.msra.mxu0 %v10833_v27  ;;  %v10978_v27 = vsub.f32 %v10852_v58, %v3773_v13  ;;  %v12066_v13 = vand.u32 4294901760, %v10935_v41 }
 0x68a   :  { %7859 = vmatmul.mubr.f32.vlgmr.msra.gmra.mrb[4].mxu1 %v10741_v44  ;;  %9345 = vmatprep.subr.bf16.mxu0 %v12016_v59  ;;  %v12060_v44 = vand.u32 4294901760, %v10900_v12 }
 0x68b   :  { %9101 = vmatpush3.bf16.msra.mxu1 %v12047_v34  ;;  %7893 = vmatprep.mubr.msk.f32.mxu1 %vm9916_vm2, %v12032_v17  ;;  %v10872_v34 = vld [vmem:[#allocation5 + $0x250] sm:$0xff]  ;;  %v3878_v58 = vsub.f32 %v10935_v41, %v12066_v13 }
 0x68c   :  { %9102 = vmatprep.subr.bf16.mxu1 %v12016_v59  ;;  %v12052_v62 = vand.u32 4294901760, %v10872_v34 }
 0x68d   :  { %9347 = vmatpush3.bf16.msra.mxu0 %v10846_v33 }
 0x68e   :  { %9348 = vmatprep.subr.bf16.mxu0 %v12016_v59  ;;  %v10908_v60 = vpack.c.bf16 %v12052_v62, %v3779_v42  ;;  %v3843_v62 = vsub.f32 %v10878_v22, %v11980_v15  ;;  %v3791_v15 = vand.u32 4294901760, %v10913_v30 }
 0x68f   :  { %9104 = vmatpush3.bf16.msra.mxu1 %v12049_v48  ;;  %v10893_v48 = vand.u32 4294901760, %v3746_v51 }
 0x690   :  { %9105 = vmatprep.subr.bf16.mxu1 %v12016_v59  ;;  %12053 = vst [vmem:[#allocation45_spill] sm:$0xff] %v10908_v60  ;;  %v3844_v56 = vand.u32 4294901760, %v3843_v62 }
 0x691   :  { %9350 = vmatpush3.bf16.msra.mxu0 %v10865_v38  ;;  %v10918_v54 = vsub.f32 %v3746_v51, %v10893_v48  ;;  %v10949_v51 = vsub.f32 %v10839_v4, %v3767_v24  ;;  %v12062_v24 = vand.u32 4294901760, %v10915_v52 }
 0x692   :  { %9351 = vmatprep.subr.bf16.mxu0 %v12016_v59 }
 0x693   :  { %9107 = vmatpush3.bf16.msra.mxu1 %v12051_v37  ;;  %v12055_v37 = vand.u32 4294901760, %v10880_v25 }
 0x694   :  { %9108 = vmatprep.subr.bf16.mxu1 %v12016_v59 }
 0x695   :  { %9353 = vmatpush3.bf16.msra.mxu0 %v10884_v49  ;;  %v3850_v38 = vsub.f32 %v10880_v25, %v12055_v37  ;;  %v11985_v49 = vand.u32 4294901760, %v10898_v47  ;;  %v12061_v37 = vand.u32 4294901760, %v10841_v45 }
 0x696   :  { %9354 = vmatprep.subr.bf16.mxu0 %v12016_v59 }
 0x697   :  { %9110 = vmatpush3.bf16.msra.mxu1 %v12054_v2  ;;  %v12056_v2 = vand.u32 4294901760, %v10889_v55  ;;  %v10964_v4 = vsub.f32 %v10841_v45, %v12061_v37  ;;  %v12064_v45 = vpack.c.bf16 %v10606_v46, %v10604_v5  ;;  %v10984_v37 = vsub.f32 %v10854_v57, %v3776_v10 }
 0x698   :  { %9111 = vmatprep.subr.bf16.mxu1 %v12016_v59 }
 0x699   :  { %9356 = vmatpush3.bf16.msra.mxu0 %v10908_v60  ;;  %v10942_v33 = vpack.c.bf16 %v12057_v36, %v12056_v2  ;;  %v3851_v2 = vand.u32 4294901760, %v3850_v38  ;;  %v3857_v36 = vsub.f32 %v10898_v47, %v11985_v49  ;;  %v3864_v60 = vsub.f32 %v10900_v12, %v12060_v44 }
 0x69a   :  { %9357 = vmatprep.subr.bf16.mxu0 %v12016_v59  ;;  %v12063_v49 = vand.u32 4294901760, %v10918_v54  ;;  %v11990_v10 = vand.u32 4294901760, %v10964_v4  ;;  %v3905_v13 = vand.u32 4294901760, %v10984_v37 }
 0x69b   :  { %12058 = vst [vmem:[#allocation46_spill] sm:$0xff] %v10942_v33  ;;  %9113 = vmatpush3.bf16.msra.mxu1 %v12059_v53  ;;  %v10969_v53 = vpack.c.bf16 %v12062_v24, %v3791_v15  ;;  %v9364_v24 = vpack.c.bf16 %v3851_v2, %v3844_v56  ;;  %v3858_v62 = vand.u32 4294901760, %v3857_v36  ;;  %v3865_v38 = vand.u32 4294901760, %v3864_v60 }
 0x69c   :  { %9114 = vmatprep.subr.bf16.mxu1 %v12016_v59  ;;  %v3832_v44 = vsub.f32 %v10918_v54, %v12063_v49  ;;  %v10998_v56 = vsub.f32 %v10870_v35, %v3779_v42  ;;  %v12067_v60 = vpack.c.bf16 %v10617_v19, %v10615_v3  ;;  %v3879_v42 = vand.u32 4294901760, %v3878_v58 }
 0x69d   :  { %9359 = vmatpush3.bf16.msra.mxu0 %v10942_v33  ;;  %v12065_v33 = vand.u32 4294901760, %v10920_v18  ;;  %v9367_v36 = vpack.c.bf16 %v3865_v38, %v3858_v62  ;;  %v12069_v38 = vand.u32 4294901760, %v10889_v55  ;;  %v3906_v58 = vsub.f32 %v10984_v37, %v3905_v13 }
 0x69e   :  { %9360 = vmatprep.subr.bf16.mxu0 %v12016_v59  ;;  %v3833_v57 = vand.u32 4294901760, %v3832_v44  ;;  %v11992_v44 = vand.u32 4294901760, %v10978_v27 }
 0x69f   :  { %9116 = vmatpush3.bf16.msra.mxu1 %v12064_v45  ;;  %v3871_v49 = vsub.f32 %v10920_v18, %v12065_v33  ;;  %v11991_v45 = vand.u32 4294901760, %v10949_v51  ;;  %v12068_v33 = vand.u32 4294901760, %v10872_v34  ;;  %v11023_v62 = vsub.f32 %v10889_v55, %v12069_v38 }
 0x6a0   :  { %9117 = vmatprep.subr.bf16.mxu1 %v12016_v59  ;;  %v12071_v55 = vand.u32 4294901760, %v10891_v11 }
 0x6a1   :  { %9362 = vmatpush3.bf16.msra.mxu0 %v10969_v53  ;;  %v11006_v2 = vsub.f32 %v10872_v34, %v12068_v33  ;;  %v3872_v35 = vand.u32 4294901760, %v3871_v49  ;;  %v3892_v34 = vsub.f32 %v10964_v4, %v11990_v10  ;;  %v3899_v49 = vsub.f32 %v10978_v27, %v11992_v44 }
 0x6a2   :  { %9363 = vmatprep.subr.bf16.mxu0 %v12016_v59  ;;  %v11040_v38 = vsub.f32 %v10891_v11, %v12071_v55  ;;  %v11045_v44 = vsub.f32 %v10913_v30, %v3791_v15  ;;  %v3907_v55 = vand.u32 4294901760, %v3906_v58  ;;  %v12072_v15 = vand.u32 4294901760, %v10915_v52 }
 0x6a3   :  { %9119 = vmatpush3.bf16.msra.mxu1 %v12067_v60  ;;  %v3885_v60 = vsub.f32 %v10949_v51, %v11991_v45  ;;  %v11993_v33 = vand.u32 4294901760, %v11006_v2  ;;  %v3893_v45 = vand.u32 4294901760, %v3892_v34  ;;  %v3900_v11 = vand.u32 4294901760, %v3899_v49 }
 0x6a4   :  { %8244 = vmatmul.mubr.f32.vlgmr.msra.gmra.mrb[8].mxu0 %v3833_v57  ;;  %9120 = vmatprep.subr.bf16.mxu1 %v12016_v59  ;;  %v3912_v57 = vand.u32 4294901760, %v10998_v56  ;;  %v11060_v30 = vsub.f32 %v10915_v52, %v12072_v15  ;;  %v3933_v34 = vand.u32 4294901760, %v11040_v38 }
 0x6a5   :  { %9365 = vmatpush3.bf16.msra.mxu0 %v9364_v24  ;;  %8278 = vmatprep.mubr.msk.f32.mxu0 %vm9916_vm2, %v12032_v17  ;;  %v12070_v24 = vpack.c.bf16 %v10628_v23, %v10626_v14  ;;  %v3886_v10 = vand.u32 4294901760, %v3885_v60  ;;  %v3926_v60 = vand.u32 4294901760, %v11023_v62  ;;  %v9376_v49 = vpack.c.bf16 %v3907_v55, %v3900_v11 }
 0x6a6   :  { %9366 = vmatprep.subr.bf16.mxu0 %v12016_v59 }
 0x6a7   :  { %9122 = vmatpush3.bf16.msra.mxu1 %v12070_v24  ;;  %v9370_v24 = vpack.c.bf16 %v3879_v42, %v3872_v35  ;;  %v3920_v35 = vsub.f32 %v11006_v2, %v11993_v33  ;;  %v9373_v42 = vpack.c.bf16 %v3893_v45, %v3886_v10  ;;  %v3927_v52 = vsub.f32 %v11023_v62, %v3926_v60 }
 0x6a8   :  { %9123 = vmatprep.subr.bf16.mxu1 %v12016_v59  ;;  %v3934_v45 = vsub.f32 %v11040_v38, %v3933_v34  ;;  %v3940_v10 = vand.u32 4294901760, %v11045_v44 }
 0x6a9   :  { %9368 = vmatpush3.bf16.msra.mxu0 %v9367_v36  ;;  %v3913_v36 = vsub.f32 %v10998_v56, %v3912_v57  ;;  %v3921_v33 = vand.u32 4294901760, %v3920_v35  ;;  %v3928_v55 = vand.u32 4294901760, %v3927_v52  ;;  %v9388_v52 = vpack.c.bf16 %v10880_v25, %v10878_v22 }
 0x6aa   :  { %7894 = vmatmul.mubr.f32.vlgmr.msra.gmra.mrb[4].mxu1 %v10756_v6  ;;  %9369 = vmatprep.subr.bf16.mxu0 %v12016_v59  ;;  %v3941_v35 = vsub.f32 %v11045_v44, %v3940_v10 }
 0x6ab   :  { %9125 = vmatpush3.bf16.msra.mxu1 %v10340_v26  ;;  %7928 = vmatprep.mubr.msk.f32.mxu1 %vm9916_vm2, %v12032_v17  ;;  %v3914_v58 = vand.u32 4294901760, %v3913_v36  ;;  %v3935_v36 = vand.u32 4294901760, %v3934_v45  ;;  %v9391_v45 = vpack.c.bf16 %v10900_v12, %v10898_v47 }
 0x6ac   :  { %9126 = vmatprep.subr.bf16.mxu1 %v12016_v59 }
 0x6ad   :  { %9371 = vmatpush3.bf16.msra.mxu0 %v9370_v24  ;;  %v3947_v24 = vand.u32 4294901760, %v11060_v30  ;;  %v9379_v11 = vpack.c.bf16 %v3921_v33, %v3914_v58  ;;  %v3942_v33 = vand.u32 4294901760, %v3941_v35  ;;  %v9394_v35 = vpack.c.bf16 %v10935_v41, %v10920_v18 }
 0x6ae   :  { %9372 = vmatprep.subr.bf16.mxu0 %v12016_v59 }
 0x6af   :  { %9128 = vmatpush3.bf16.msra.mxu1 %v10348_v61  ;;  %v3948_v15 = vsub.f32 %v11060_v30, %v3947_v24 }
 0x6b0   :  { %9129 = vmatprep.subr.bf16.mxu1 %v12016_v59 }
 0x6b1   :  { %9374 = vmatpush3.bf16.msra.mxu0 %v9373_v42  ;;  %v9382_v42 = vpack.c.bf16 %v3935_v36, %v3928_v55  ;;  %v12074_v55 = vand.u32 4294901760, %v10344_v29  ;;  %v9397_v29 = vpack.c.bf16 %v10964_v4, %v10949_v51 }
 0x6b2   :  { %9375 = vmatprep.subr.bf16.mxu0 %v12016_v59 }
 0x6b3   :  { %9131 = vmatpush3.bf16.msra.mxu1 %v10356_v16 }
 0x6b4   :  { %9132 = vmatprep.subr.bf16.mxu1 %v12016_v59 }
 0x6b5   :  { %9377 = vmatpush3.bf16.msra.mxu0 %v9376_v49  ;;  %v3949_v49 = vand.u32 4294901760, %v3948_v15  ;;  %v12075_v15 = vand.u32 4294901760, %v10756_v6  ;;  %v12078_v6 = vand.u32 4294901760, %v10358_v20  ;;  %v9403_v20 = vpack.c.bf16 %v11006_v2, %v10998_v56  ;;  %v12113_v56 = vld [vmem:[#allocation35_spill] sm:$0xff] }
 0x6b6   :  { %9378 = vmatprep.subr.bf16.mxu0 %v12016_v59 }
 0x6b7   :  { %9134 = vmatpush3.bf16.msra.mxu1 %v10364_v40  ;;  %v9385_v58 = vpack.c.bf16 %v3949_v49, %v3942_v33  ;;  %v12077_v33 = vand.u32 4294901760, %v10352_v1  ;;  %v12079_v49 = vand.u32 4294901760, %v10360_v50  ;;  %v9400_v1 = vpack.c.bf16 %v10984_v37, %v10978_v27  ;;  %v12112_v37 = vld [vmem:[#allocation39_spill] sm:$0xff] }
 0x6b8   :  { %9135 = vmatprep.subr.bf16.mxu1 %v12016_v59  ;;  %v12082_v50 = vand.u32 4294901760, %v10374_v21  ;;  %v9409_v21 = vpack.c.bf16 %v11060_v30, %v11045_v44  ;;  %v12121_v44 = vld [vmem:[#allocation30_spill] sm:$0xff] }
 0x6b9   :  { %9380 = vmatpush3.bf16.msra.mxu0 %v9379_v11  ;;  %v12073_v11 = vand.u32 4294901760, %v10342_v28 }
 0x6ba   :  { %9381 = vmatprep.subr.bf16.mxu0 %v12016_v59 }
 0x6bb   :  { %9137 = vmatpush3.bf16.msra.mxu1 %v10372_v31  ;;  %v9148_v36 = vpack.c.bf16 %v12074_v55, %v12073_v11  ;;  %v12083_v11 = vand.u32 4294901760, %v10376_v32  ;;  %v12086_v32 = vand.u32 4294901760, %v10615_v3  ;;  %v12091_v3 = vld [vmem:[#allocation33_spill] sm:$0xff] }
 0x6bc   :  { %9138 = vmatprep.subr.bf16.mxu1 %v12016_v59 }
 0x6bd   :  { %9383 = vmatpush3.bf16.msra.mxu0 %v9382_v42  ;;  %v12076_v42 = vand.u32 4294901760, %v10350_v39  ;;  %v9154_v39 = vpack.c.bf16 %v12079_v49, %v12078_v6  ;;  %v9160_v55 = vpack.c.bf16 %v12083_v11, %v12082_v50  ;;  %v12101_v6 = vand.u32 4294901760, %v10900_v12 }
 0x6be   :  { %9384 = vmatprep.subr.bf16.mxu0 %v12016_v59  ;;  %v12106_v12 = vand.u32 4294901760, %v10964_v4 }
 0x6bf   :  { %9140 = vmatpush3.bf16.msra.mxu1 %v10598_v63  ;;  %v9151_v28 = vpack.c.bf16 %v12077_v33, %v12076_v42 }
 0x6c0   :  { %9141 = vmatprep.subr.bf16.mxu1 %v12016_v59 }
 0x6c1   :  { %9386 = vmatpush3.bf16.msra.mxu0 %v9385_v58  ;;  %v12080_v58 = vand.u32 4294901760, %v10366_v0  ;;  %v9406_v0 = vpack.c.bf16 %v11040_v38, %v11023_v62  ;;  %v9457_v62 = vpack.c.bf16 %v3947_v24, %v3940_v10  ;;  %v12116_v38 = vld [vmem:[#allocation40_spill] sm:$0xff] }
 0x6c2   :  { %9387 = vmatprep.subr.bf16.mxu0 %v12016_v59  ;;  %v12122_v24 = vld [vmem:[#allocation16_spill] sm:$0xff] }
 0x6c3   :  { %9143 = vmatpush3.bf16.msra.mxu1 %v10613_v7 }
 0x6c4   :  { %8279 = vmatmul.mubr.f32.vlgmr.msra.gmra.mrb[8].mxu0 %v10893_v48  ;;  %9144 = vmatprep.subr.bf16.mxu1 %v12016_v59 }
 0x6c5   :  { %9389 = vmatpush3.bf16.msra.mxu0 %v9388_v52  ;;  %8313 = vmatprep.mubr.msk.f32.mxu0 %vm9916_vm2, %v12032_v17  ;;  %v12081_v52 = vand.u32 4294901760, %v10368_v43  ;;  %v12084_v43 = vand.u32 4294901760, %v10604_v5  ;;  %v12088_v5 = vand.u32 4294901760, %v10626_v14  ;;  %v12092_v14 = vld [vmem:[#allocation42_spill] sm:$0xff] }
 0x6c6   :  { %9390 = vmatprep.subr.bf16.mxu0 %v12016_v59 }
 0x6c7   :  { %9146 = vmatpush3.bf16.msra.mxu1 %v10624_v9 }
 0x6c8   :  { %9147 = vmatprep.subr.bf16.mxu1 %v12016_v59 }
 0x6c9   :  { %9392 = vmatpush3.bf16.msra.mxu0 %v9391_v45  ;;  %v9157_v45 = vpack.c.bf16 %v12081_v52, %v12080_v58  ;;  %v12111_v58 = vld [vmem:[#allocation38_spill] sm:$0xff] }
 0x6ca   :  { %7929 = vmatmul.mubr.f32.vlgmr.msra.gmra.mrb[4].mxu1 %v12075_v15  ;;  %9393 = vmatprep.subr.bf16.mxu0 %v12016_v59  ;;  %v12087_v15 = vand.u32 4294901760, %v10617_v19  ;;  %v12090_v19 = vld [vmem:[#allocation41_spill] sm:$0xff] }
 0x6cb   :  { %9149 = vmatpush3.bf16.msra.mxu1 %v9148_v36  ;;  %7963 = vmatprep.mubr.msk.f32.mxu1 %vm9916_vm2, %v12032_v17  ;;  %v12085_v36 = vand.u32 4294901760, %v10606_v46  ;;  %v12089_v46 = vand.u32 4294901760, %v10628_v23  ;;  %v12093_v23 = vld [vmem:[#allocation43_spill] sm:$0xff] }
 0x6cc   :  { %9150 = vmatprep.subr.bf16.mxu1 %v12016_v59  ;;  %v9166_v42 = vpack.c.bf16 %v12087_v15, %v12086_v32  ;;  %v12126_v32 = vld [vmem:[#allocation18_spill] sm:$0xff] }
 0x6cd   :  { %9395 = vmatpush3.bf16.msra.mxu0 %v9394_v35  ;;  %v9163_v35 = vpack.c.bf16 %v12085_v36, %v12084_v43  ;;  %v9169_v33 = vpack.c.bf16 %v12089_v46, %v12088_v5  ;;  %v12124_v43 = vld [vmem:[#allocation17_spill] sm:$0xff]  ;;  %v12127_v15 = vand.u32 4294901760, %v12126_v32  ;;  %v12128_v5 = vld [vmem:[#allocation19_spill] sm:$0xff] }
 0x6ce   :  { %9396 = vmatprep.subr.bf16.mxu0 %v12016_v59  ;;  %v12125_v36 = vand.u32 4294901760, %v12124_v43  ;;  %v12129_v46 = vand.u32 4294901760, %v12128_v5 }
 0x6cf   :  { %9152 = vmatpush3.bf16.msra.mxu1 %v9151_v28  ;;  %v12095_v28 = vld [vmem:[#allocation45_spill] sm:$0xff] }
 0x6d0   :  { %9153 = vmatprep.subr.bf16.mxu1 %v12016_v59 }
 0x6d1   :  { %9398 = vmatpush3.bf16.msra.mxu0 %v9397_v29 }
 0x6d2   :  { %9399 = vmatprep.subr.bf16.mxu0 %v12016_v59 }
 0x6d3   :  { %9155 = vmatpush3.bf16.msra.mxu1 %v9154_v39 }
 0x6d4   :  { %9156 = vmatprep.subr.bf16.mxu1 %v12016_v59 }
 0x6d5   :  { %9401 = vmatpush3.bf16.msra.mxu0 %v9400_v1  ;;  %v12109_v1 = vld [vmem:[#allocation37_spill] sm:$0xff] }
 0x6d6   :  { %9402 = vmatprep.subr.bf16.mxu0 %v12016_v59 }
 0x6d7   :  { %9158 = vmatpush3.bf16.msra.mxu1 %v9157_v45  ;;  %v12119_v45 = vld [vmem:[#allocation15_spill] sm:$0xff] }
 0x6d8   :  { %9159 = vmatprep.subr.bf16.mxu1 %v12016_v59 }
 0x6d9   :  { %9404 = vmatpush3.bf16.msra.mxu0 %v9403_v20  ;;  %v12120_v20 = vand.u32 4294901760, %v12119_v45 }
 0x6da   :  { %9405 = vmatprep.subr.bf16.mxu0 %v12016_v59 }
 0x6db   :  { %9161 = vmatpush3.bf16.msra.mxu1 %v9160_v55  ;;  %v3190_v50 = vsub.f32 %v12119_v45, %v12120_v20  ;;  %v12123_v55 = vand.u32 4294901760, %v12122_v24  ;;  %v12141_v20 = vld [vmem:[#allocation25_spill] sm:$0xff] }
 0x6dc   :  { %9162 = vmatprep.subr.bf16.mxu1 %v12016_v59 }
 0x6dd   :  { %9407 = vmatpush3.bf16.msra.mxu0 %v9406_v0  ;;  %v3191_v10 = vand.u32 4294901760, %v3190_v50  ;;  %v3197_v0 = vsub.f32 %v12122_v24, %v12123_v55  ;;  %v12142_v50 = vand.u32 4294901760, %v12141_v20 }
 0x6de   :  { %9408 = vmatprep.subr.bf16.mxu0 %v12016_v59 }
 0x6df   :  { %9164 = vmatpush3.bf16.msra.mxu1 %v9163_v35  ;;  %v3204_v35 = vsub.f32 %v12124_v43, %v12125_v36 }
 0x6e0   :  { %9165 = vmatprep.subr.bf16.mxu1 %v12016_v59 }
 0x6e1   :  { %9410 = vmatpush3.bf16.msra.mxu0 %v9409_v21 }
 0x6e2   :  { %9411 = vmatprep.subr.bf16.mxu0 %v12016_v59 }
 0x6e3   :  { %9167 = vmatpush3.bf16.msra.mxu1 %v9166_v42  ;;  %v3211_v42 = vsub.f32 %v12126_v32, %v12127_v15 }
 0x6e4   :  { %8314 = vmatmul.mubr.f32.vlgmr.msra.gmra.mrb[8].mxu0 %v10918_v54  ;;  %9168 = vmatprep.subr.bf16.mxu1 %v12016_v59 }
 0x6e5   :  { %9413 = vmatpush3.bf16.msra.mxu0 %v10824_v8  ;;  %8348 = vmatprep.mubr.msk.f32.mxu0 %vm9916_vm2, %v12032_v17 }
 0x6e6   :  { %9414 = vmatprep.subr.bf16.mxu0 %v12016_v59 }
 0x6e7   :  { %9170 = vmatpush3.bf16.msra.mxu1 %v9169_v33  ;;  %v3218_v33 = vsub.f32 %v12128_v5, %v12129_v46  ;;  %v12145_v46 = vld [vmem:[#allocation27_spill] sm:$0xff] }
 0x6e8   :  { %9171 = vmatprep.subr.bf16.mxu1 %v12016_v59 }
 0x6e9   :  { %9416 = vmatpush3.bf16.msra.mxu0 %v12090_v19 }
 0x6ea   :  { %7964 = vmatmul.mubr.f32.vlgmr.msra.gmra.mrb[4].mxu1 %v12091_v3  ;;  %9417 = vmatprep.subr.bf16.mxu0 %v12016_v59 }
 0x6eb   :  { %9173 = vmatpush3.bf16.msra.mxu1 %v10340_v26  ;;  %7998 = vmatprep.mubr.msk.f32.mxu1 %vm9916_vm2, %v12032_v17  ;;  %v12094_v26 = vld [vmem:[#allocation44_spill] sm:$0xff] }
 0x6ec   :  { %9174 = vmatprep.subr.bf16.mxu1 %v12016_v59 }
 0x6ed   :  { %9419 = vmatpush3.bf16.msra.mxu0 %v12092_v14 }
 0x6ee   :  { %9420 = vmatprep.subr.bf16.mxu0 %v12016_v59 }
 0x6ef   :  { %9176 = vmatpush3.bf16.msra.mxu1 %v10348_v61  ;;  %v12096_v61 = vld [vmem:[#allocation46_spill] sm:$0xff] }
 0x6f0   :  { %9177 = vmatprep.subr.bf16.mxu1 %v12016_v59 }
 0x6f1   :  { %9422 = vmatpush3.bf16.msra.mxu0 %v12093_v23 }
 0x6f2   :  { %9423 = vmatprep.subr.bf16.mxu0 %v12016_v59 }
 0x6f3   :  { %9179 = vmatpush3.bf16.msra.mxu1 %v10356_v16  ;;  %v12097_v16 = vand.u32 4294901760, %v10878_v22  ;;  %v12103_v22 = vand.u32 4294901760, %v10935_v41  ;;  %v12108_v41 = vand.u32 4294901760, %v10978_v27  ;;  %v9454_v27 = vpack.c.bf16 %v3933_v34, %v3926_v60  ;;  %v12117_v60 = vld [vmem:[#allocation14_spill] sm:$0xff] }
 0x6f4   :  { %9180 = vmatprep.subr.bf16.mxu1 %v12016_v59  ;;  %v12118_v34 = vand.u32 4294901760, %v12117_v60 }
 0x6f5   :  { %9425 = vmatpush3.bf16.msra.mxu0 %v12094_v26  ;;  %v9448_v39 = vpack.c.bf16 %v3905_v13, %v12108_v41  ;;  %v12114_v13 = vld [vmem:[#allocation32_spill] sm:$0xff] }
 0x6f6   :  { %9426 = vmatprep.subr.bf16.mxu0 %v12016_v59  ;;  %v3183_v52 = vsub.f32 %v12117_v60, %v12118_v34 }
 0x6f7   :  { %9182 = vmatpush3.bf16.msra.mxu1 %v10364_v40  ;;  %v12098_v40 = vand.u32 4294901760, %v10880_v25 }
 0x6f8   :  { %9183 = vmatprep.subr.bf16.mxu1 %v12016_v59  ;;  %v3184_v30 = vand.u32 4294901760, %v3183_v52 }
 0x6f9   :  { %9428 = vmatpush3.bf16.msra.mxu0 %v12095_v28  ;;  %v9436_v29 = vpack.c.bf16 %v12098_v40, %v12097_v16  ;;  %v3198_v40 = vand.u32 4294901760, %v3197_v0 }
 0x6fa   :  { %9429 = vmatprep.subr.bf16.mxu0 %v12016_v59  ;;  %v9220_v16 = vpack.c.bf16 %v3191_v10, %v3184_v30  ;;  %v3260_v30 = vsub.f32 %v12141_v20, %v12142_v50  ;;  %v11370_v50 = vld [vmem:[#allocation5 + $0x2a0] sm:$0xff] }
 0x6fb   :  { %9185 = vmatpush3.bf16.msra.mxu1 %v10372_v31  ;;  %v12099_v31 = vand.u32 4294901760, %v10918_v54 }
 0x6fc   :  { %9186 = vmatprep.subr.bf16.mxu1 %v12016_v59  ;;  %v3261_v36 = vand.u32 4294901760, %v3260_v30 }
 0x6fd   :  { %9431 = vmatpush3.bf16.msra.mxu0 %v12096_v61 }
 0x6fe   :  { %9432 = vmatprep.subr.bf16.mxu0 %v12016_v59 }
 0x6ff   :  { %9188 = vmatpush3.bf16.msra.mxu1 %v10598_v63  ;;  %v12100_v63 = vand.u32 4294901760, %v10898_v47  ;;  %v12104_v47 = vld [vmem:[#allocation34_spill] sm:$0xff] }
 0x700   :  { %9189 = vmatprep.subr.bf16.mxu1 %v12016_v59 }
 0x701   :  { %9434 = vmatpush3.bf16.msra.mxu0 %v10969_v53  ;;  %v9439_v49 = vpack.c.bf16 %v12101_v6, %v12100_v63  ;;  %v3219_v63 = vand.u32 4294901760, %v3218_v33  ;;  %v12146_v33 = vand.u32 4294901760, %v12145_v46 }
 0x702   :  { %9435 = vmatprep.subr.bf16.mxu0 %v12016_v59 }
 0x703   :  { %9191 = vmatpush3.bf16.msra.mxu1 %v10613_v7  ;;  %v12102_v7 = vand.u32 4294901760, %v10920_v18  ;;  %v12107_v18 = vld [vmem:[#allocation36_spill] sm:$0xff] }
 0x704   :  { %8349 = vmatmul.mubr.f32.vlgmr.msra.gmra.mrb[8].mxu0 %v12099_v31  ;;  %9192 = vmatprep.subr.bf16.mxu1 %v12016_v59 }
 0x705   :  { %9437 = vmatpush3.bf16.msra.mxu0 %v9436_v29  ;;  %8383 = vmatprep.mubr.msk.f32.mxu0 %vm9916_vm2, %v12032_v17  ;;  %v9442_v25 = vpack.c.bf16 %v12103_v22, %v12102_v7  ;;  %v3205_v29 = vand.u32 4294901760, %v3204_v35 }
 0x706   :  { %9438 = vmatprep.subr.bf16.mxu0 %v12016_v59 }
 0x707   :  { %9194 = vmatpush3.bf16.msra.mxu1 %v10624_v9  ;;  %v12105_v9 = vand.u32 4294901760, %v10949_v51  ;;  %v12110_v51 = vand.u32 4294901760, %v11006_v2  ;;  %v12115_v2 = vrot.slane %v12114_v13, 1  ;;  %v9223_v6 = vpack.c.bf16 %v3205_v29, %v3198_v40  ;;  %v11342_v40 = vld [vmem:[#allocation5 + $0x278] sm:$0xff]  ;;  %v11344_v29 = vld [vmem:[#allocation5 + $0x280] sm:$0xff] }
 0x708   :  { %9195 = vmatprep.subr.bf16.mxu1 %v12016_v59 }
 0x709   :  { %9440 = vmatpush3.bf16.msra.mxu0 %v9439_v49  ;;  %v9445_v54 = vpack.c.bf16 %v12106_v12, %v12105_v9  ;;  %v9451_v4 = vpack.c.bf16 %v12110_v51, %v3912_v57  ;;  %v11260_v57 = vsub.f32 %v12115_v2, %v12113_v56  ;;  %v12131_v49 = vld [vmem:[#allocation20_spill] sm:$0xff] }
 0x70a   :  { %7999 = vmatmul.mubr.f32.vlgmr.msra.gmra.mrb[4].mxu1 %v12091_v3  ;;  %9441 = vmatprep.subr.bf16.mxu0 %v12016_v59  ;;  %v12130_v3 = vld [vmem:[#allocation31_spill] sm:$0xff]  ;;  %v12132_v7 = vand.u32 4294901760, %v12131_v49 }
 0x70b   :  { %9197 = vmatpush3.bf16.msra.mxu1 %v12104_v47  ;;  %8033 = vmatprep.mubr.msk.f32.mxu1 %vm9916_vm2, %v12032_v17  ;;  %v11996_v11 = vand.u32 4294901760, %v11260_v57 }
 0x70c   :  { %9198 = vmatprep.subr.bf16.mxu1 %v12016_v59  ;;  %v3225_v22 = vsub.f32 %v12131_v49, %v12132_v7 }
 0x70d   :  { %9443 = vmatpush3.bf16.msra.mxu0 %v9442_v25  ;;  %v3172_v21 = vsub.f32 %v11260_v57, %v11996_v11  ;;  %v12133_v25 = vld [vmem:[#allocation21_spill] sm:$0xff] }
 0x70e   :  { %9444 = vmatprep.subr.bf16.mxu0 %v12016_v59  ;;  %v12134_v9 = vand.u32 4294901760, %v12133_v25 }
 0x70f   :  { %9200 = vmatpush3.bf16.msra.mxu1 %v12107_v18  ;;  %v3173_v31 = vand.u32 4294901760, %v3172_v21  ;;  %v12143_v21 = vld [vmem:[#allocation26_spill] sm:$0xff] }
 0x710   :  { %9201 = vmatprep.subr.bf16.mxu1 %v12016_v59  ;;  %v3232_v12 = vsub.f32 %v12133_v25, %v12134_v9  ;;  %v12144_v15 = vand.u32 4294901760, %v12143_v21 }
 0x711   :  { %9446 = vmatpush3.bf16.msra.mxu0 %v9445_v54  ;;  %v3226_v54 = vand.u32 4294901760, %v3225_v22  ;;  %v12149_v22 = vld [vmem:[#allocation29_spill] sm:$0xff] }
 0x712   :  { %9447 = vmatprep.subr.bf16.mxu0 %v12016_v59  ;;  %v3233_v41 = vand.u32 4294901760, %v3232_v12  ;;  %v12150_v9 = vand.u32 4294901760, %v12149_v22 }
 0x713   :  { %9203 = vmatpush3.bf16.msra.mxu1 %v12109_v1 }
 0x714   :  { %9204 = vmatprep.subr.bf16.mxu1 %v12016_v59  ;;  %v9229_v10 = vpack.c.bf16 %v3233_v41, %v3226_v54  ;;  %v3288_v12 = vsub.f32 %v12149_v22, %v12150_v9  ;;  %v11357_v54 = vld [vmem:[#allocation5 + $0x288] sm:$0xff]  ;;  %v11359_v41 = vld [vmem:[#allocation5 + $0x290] sm:$0xff] }
 0x715   :  { %9449 = vmatpush3.bf16.msra.mxu0 %v9448_v39  ;;  %v12135_v39 = vld [vmem:[#allocation22_spill] sm:$0xff] }
 0x716   :  { %9450 = vmatprep.subr.bf16.mxu0 %v12016_v59  ;;  %v12136_v51 = vand.u32 4294901760, %v12135_v39 }
 0x717   :  { %9206 = vmatpush3.bf16.msra.mxu1 %v12111_v58 }
 0x718   :  { %9207 = vmatprep.subr.bf16.mxu1 %v12016_v59 }
 0x719   :  { %9452 = vmatpush3.bf16.msra.mxu0 %v9451_v4  ;;  %v3239_v4 = vsub.f32 %v12135_v39, %v12136_v51 }
 0x71a   :  { %9453 = vmatprep.subr.bf16.mxu0 %v12016_v59 }
 0x71b   :  { %9209 = vmatpush3.bf16.msra.mxu1 %v12112_v37  ;;  %v3240_v55 = vand.u32 4294901760, %v3239_v4 }
 0x71c   :  { %9210 = vmatprep.subr.bf16.mxu1 %v12016_v59 }
 0x71d   :  { %9455 = vmatpush3.bf16.msra.mxu0 %v9454_v27  ;;  %v12137_v27 = vld [vmem:[#allocation23_spill] sm:$0xff] }
 0x71e   :  { %9456 = vmatprep.subr.bf16.mxu0 %v12016_v59  ;;  %v12138_v2 = vand.u32 4294901760, %v12137_v27 }
 0x71f   :  { %9212 = vmatpush3.bf16.msra.mxu1 %v12116_v38 }
 0x720   :  { %9213 = vmatprep.subr.bf16.mxu1 %v12016_v59 }
 0x721   :  { %9458 = vmatpush3.bf16.msra.mxu0 %v9457_v62  ;;  %v3246_v62 = vsub.f32 %v12137_v27, %v12138_v2  ;;  %v3289_v2 = vand.u32 4294901760, %v3288_v12  ;;  %v9253_v12 = vpack.c.bf16 %v12133_v25, %v12131_v49 }
 0x722   :  { %9459 = vmatprep.subr.bf16.mxu0 %v12016_v59 }
 0x723   :  { %9215 = vmatpush3.bf16.msra.mxu1 %v12121_v44  ;;  %v3247_v0 = vand.u32 4294901760, %v3246_v62 }
 0x724   :  { %8384 = vmatmul.mubr.f32.vlgmr.msra.gmra.mrb[8].mxu0 %v10893_v48  ;;  %9216 = vmatprep.subr.bf16.mxu1 %v12016_v59 }
 0x725   :  { %9461 = vmatpush3.bf16.msra.mxu0 %v10824_v8  ;;  %8418 = vmatprep.mubr.msk.f32.mxu0 %vm9916_vm2, %v12032_v17  ;;  %v3212_v8 = vand.u32 4294901760, %v3211_v42  ;;  %v9232_v35 = vpack.c.bf16 %v3247_v0, %v3240_v55  ;;  %v3267_v42 = vsub.f32 %v12143_v21, %v12144_v15  ;;  %v4424_v55 = vand.u32 4294901760, %v11370_v50  ;;  %v11382_v0 = vld [vmem:[#allocation5 + $0x2a8] sm:$0xff] }
 0x726   :  { %9462 = vmatprep.subr.bf16.mxu0 %v12016_v59 }
 0x727   :  { %9218 = vmatpush3.bf16.msra.mxu1 %v12130_v3 }
 0x728   :  { %9219 = vmatprep.subr.bf16.mxu1 %v12016_v59 }
 0x729   :  { %9464 = vmatpush3.bf16.msra.mxu0 %v12090_v19  ;;  %v9226_v19 = vpack.c.bf16 %v3219_v63, %v3212_v8  ;;  %v12147_v63 = vld [vmem:[#allocation28_spill] sm:$0xff] }
 0x72a   :  { %8034 = vmatmul.mubr.f32.vlgmr.msra.gmra.mrb[4].mxu1 %v3173_v31  ;;  %9465 = vmatprep.subr.bf16.mxu0 %v12016_v59  ;;  %v3268_v31 = vand.u32 4294901760, %v3267_v42  ;;  %v11398_v42 = vld [vmem:[#allocation5 + $0x2b8] sm:$0xff] }
 0x72b   :  { %9221 = vmatpush3.bf16.msra.mxu1 %v9220_v16  ;;  %8068 = vmatprep.mubr.msk.f32.mxu1 %vm9916_vm2, %v12032_v17  ;;  %v3274_v16 = vsub.f32 %v12145_v46, %v12146_v33  ;;  %v11400_v33 = vld [vmem:[#allocation5 + $0x2c0] sm:$0xff] }
 0x72c   :  { %9222 = vmatprep.subr.bf16.mxu1 %v12016_v59 }
 0x72d   :  { %9467 = vmatpush3.bf16.msra.mxu0 %v12092_v14  ;;  %v12139_v14 = vld [vmem:[#allocation24_spill] sm:$0xff]  ;;  %v3275_v8 = vand.u32 4294901760, %v3274_v16  ;;  %v4436_v16 = vand.u32 4294901760, %v11400_v33 }
 0x72e   :  { %9468 = vmatprep.subr.bf16.mxu0 %v12016_v59  ;;  %v12140_v34 = vand.u32 4294901760, %v12139_v14 }
 0x72f   :  { %9224 = vmatpush3.bf16.msra.mxu1 %v9223_v6  ;;  %v12148_v6 = vand.u32 4294901760, %v12147_v63  ;;  %v9238_v51 = vpack.c.bf16 %v3275_v8, %v3268_v31  ;;  %v9250_v31 = vpack.c.bf16 %v12128_v5, %v12126_v32  ;;  %v11439_v5 = vld [vmem:[#allocation5 + $0x2d8] sm:$0xff] }
 0x730   :  { %9225 = vmatprep.subr.bf16.mxu1 %v12016_v59  ;;  %v3253_v52 = vsub.f32 %v12139_v14, %v12140_v34  ;;  %v4418_v34 = vand.u32 4294901760, %v11359_v41  ;;  %v4445_v49 = vand.u32 4294901760, %v11439_v5 }
 0x731   :  { %9470 = vmatpush3.bf16.msra.mxu0 %v12093_v23  ;;  %v3281_v7 = vsub.f32 %v12147_v63, %v12148_v6 }
 0x732   :  { %9471 = vmatprep.subr.bf16.mxu0 %v12016_v59  ;;  %v3254_v23 = vand.u32 4294901760, %v3253_v52  ;;  %v11368_v52 = vld [vmem:[#allocation5 + $0x298] sm:$0xff] }
 0x733   :  { %9227 = vmatpush3.bf16.msra.mxu1 %v9226_v19  ;;  %v4412_v19 = vand.u32 4294901760, %v11344_v29  ;;  %v3282_v4 = vand.u32 4294901760, %v3281_v7 }
 0x734   :  { %9228 = vmatprep.subr.bf16.mxu1 %v12016_v59 }
 0x735   :  { %9473 = vmatpush3.bf16.msra.mxu0 %v12094_v26  ;;  %v9235_v26 = vpack.c.bf16 %v3261_v36, %v3254_v23  ;;  %v9241_v30 = vpack.c.bf16 %v3289_v2, %v3282_v4  ;;  %v11384_v23 = vld [vmem:[#allocation5 + $0x2b0] sm:$0xff]  ;;  %v11426_v6 = vsub.f32 %v11344_v29, %v4412_v19 }
 0x736   :  { %9474 = vmatprep.subr.bf16.mxu0 %v12016_v59  ;;  %v4430_v15 = vand.u32 4294901760, %v11384_v23 }
 0x737   :  { %9230 = vmatpush3.bf16.msra.mxu1 %v9229_v10  ;;  %v4421_v10 = vand.u32 4294901760, %v11368_v52  ;;  %v11994_v4 = vand.u32 4294901760, %v11426_v6 }
 0x738   :  { %9231 = vmatprep.subr.bf16.mxu1 %v12016_v59 }
 0x739   :  { %9476 = vmatpush3.bf16.msra.mxu0 %v12095_v28  ;;  %v4409_v28 = vand.u32 4294901760, %v11342_v40  ;;  %v11392_v36 = vpack.c.bf16 %v4424_v55, %v4421_v10 }
 0x73a   :  { %9477 = vmatprep.subr.bf16.mxu0 %v12016_v59 }
 0x73b   :  { %9233 = vmatpush3.bf16.msra.mxu1 %v9232_v35  ;;  %v11363_v62 = vpack.c.bf16 %v4412_v19, %v4409_v28  ;;  %v4427_v35 = vand.u32 4294901760, %v11382_v0  ;;  %v11423_v8 = vsub.f32 %v11342_v40, %v4409_v28  ;;  %v11441_v40 = vld [vmem:[#allocation5 + $0x2e0] sm:$0xff]  ;;  %v11451_v19 = vsub.f32 %v11359_v41, %v4418_v34  ;;  %v11468_v41 = vld [vmem:[#allocation5 + $0x2f0] sm:$0xff] }
 0x73c   :  { %9234 = vmatprep.subr.bf16.mxu1 %v12016_v59  ;;  %v11997_v25 = vand.u32 4294901760, %v11441_v40 }
 0x73d   :  { %9479 = vmatpush3.bf16.msra.mxu0 %v12096_v61  ;;  %v4415_v61 = vand.u32 4294901760, %v11357_v54 }
 0x73e   :  { %9480 = vmatprep.subr.bf16.mxu0 %v12016_v59 }
 0x73f   :  { %9236 = vmatpush3.bf16.msra.mxu1 %v9235_v26  ;;  %v11415_v26 = vld [vmem:[#allocation5 + $0x2c8] sm:$0xff]  ;;  %v11448_v28 = vsub.f32 %v11357_v54, %v4415_v61 }
 0x740   :  { %9237 = vmatprep.subr.bf16.mxu1 %v12016_v59  ;;  %v4439_v9 = vand.u32 4294901760, %v11415_v26  ;;  %v11466_v54 = vld [vmem:[#allocation5 + $0x2e8] sm:$0xff] }
 0x741   :  { %9482 = vmatpush3.bf16.msra.mxu0 %v10969_v53  ;;  %v11375_v53 = vpack.c.bf16 %v4418_v34, %v4415_v61  ;;  %v11474_v34 = vsub.f32 %v11368_v52, %v4421_v10  ;;  %v11490_v52 = vsub.f32 %v11370_v50, %v4424_v55  ;;  %v4454_v10 = vand.u32 4294901760, %v11468_v41 }
 0x742   :  { %9483 = vmatprep.subr.bf16.mxu0 %v12016_v59  ;;  %v9259_v50 = vpack.c.bf16 %v12141_v20, %v12139_v14 }
 0x743   :  { %9239 = vmatpush3.bf16.msra.mxu1 %v9238_v51  ;;  %v11995_v51 = vand.u32 4294901760, %v11423_v8  ;;  %v4530_v20 = vand.u32 4294901760, %v11474_v34 }
 0x744   :  { %8419 = vmatmul.mubr.f32.vlgmr.msra.gmra.mrb[8].mxu0 %v10893_v48  ;;  %9240 = vmatprep.subr.bf16.mxu1 %v12016_v59  ;;  %v9244_v48 = vpack.c.bf16 %v12119_v45, %v12117_v60  ;;  %v9247_v60 = vpack.c.bf16 %v12124_v43, %v12122_v24  ;;  %v4433_v45 = vand.u32 4294901760, %v11398_v42  ;;  %v11417_v24 = vld [vmem:[#allocation5 + $0x2d0] sm:$0xff]  ;;  %v4406_v43 = vrot.slane %v12114_v13, 3 }
 0x745   :  { %9485 = vmatpush3.bf16.msra.mxu0 %v11363_v62  ;;  %8453 = vmatprep.mubr.msk.f32.mxu0 %vm9916_vm2, %v12032_v17  ;;  %v4442_v32 = vand.u32 4294901760, %v11417_v24 }
 0x746   :  { %9486 = vmatprep.subr.bf16.mxu0 %v12016_v59  ;;  %v11434_v7 = vpack.c.bf16 %v4436_v16, %v4433_v45  ;;  %v11443_v29 = vand.u32 4294901760, %v4406_v43 }
 0x747   :  { %9242 = vmatpush3.bf16.msra.mxu1 %v9241_v30  ;;  %v11461_v2 = vpack.c.bf16 %v4442_v32, %v4439_v9  ;;  %v9256_v30 = vpack.c.bf16 %v12137_v27, %v12135_v39  ;;  %v11497_v39 = vpack.c.bf16 %v11997_v25, %v4445_v49  ;;  %v4451_v27 = vand.u32 4294901760, %v11466_v54 }
 0x748   :  { %9243 = vmatprep.subr.bf16.mxu1 %v12016_v59  ;;  %v11471_v61 = vsub.f32 %v4406_v43, %v11443_v29  ;;  %v11999_v43 = vand.u32 4294901760, %v11448_v28 }
 0x749   :  { %9488 = vmatpush3.bf16.msra.mxu0 %v11375_v53  ;;  %v11525_v14 = vpack.c.bf16 %v4454_v10, %v4451_v27 }
 0x74a   :  { %8069 = vmatmul.mubr.f32.vlgmr.msra.gmra.mrb[4].mxu1 %v12113_v56  ;;  %9489 = vmatprep.subr.bf16.mxu0 %v12016_v59  ;;  %v11410_v56 = vpack.c.bf16 %v4430_v15, %v4427_v35  ;;  %v4517_v11 = vsub.f32 %v11448_v28, %v11999_v43 }
 0x74b   :  { %9245 = vmatpush3.bf16.msra.mxu1 %v9244_v48  ;;  %8103 = vmatprep.mubr.msk.f32.mxu1 %vm9916_vm2, %v12032_v17  ;;  %v4503_v48 = vsub.f32 %v11423_v8, %v11995_v51 }
 0x74c   :  { %9246 = vmatprep.subr.bf16.mxu1 %v12016_v59 }
 0x74d   :  { %9491 = vmatpush3.bf16.msra.mxu0 %v11392_v36  ;;  %v4504_v55 = vand.u32 4294901760, %v4503_v48  ;;  %v11543_v48 = vsub.f32 %v11400_v33, %v4436_v16  ;;  %v9265_v16 = vpack.c.bf16 %v12149_v22, %v12147_v63 }
 0x74e   :  { %9492 = vmatprep.subr.bf16.mxu0 %v12016_v59 }
 0x74f   :  { %9248 = vmatpush3.bf16.msra.mxu1 %v9247_v60  ;;  %v4510_v60 = vsub.f32 %v11426_v6, %v11994_v4  ;;  %v11504_v4 = vsub.f32 %v11382_v0, %v4427_v35  ;;  %v11518_v0 = vsub.f32 %v11384_v23, %v4430_v15  ;;  %v4537_v35 = vand.u32 4294901760, %v11490_v52 }
 0x750   :  { %9249 = vmatprep.subr.bf16.mxu1 %v12016_v59  ;;  %v11536_v23 = vsub.f32 %v11398_v42, %v4433_v45  ;;  %v9262_v15 = vpack.c.bf16 %v12145_v46, %v12143_v21  ;;  %v4531_v42 = vsub.f32 %v11474_v34, %v4530_v20 }
 0x751   :  { %9494 = vmatpush3.bf16.msra.mxu0 %v11410_v56  ;;  %v4511_v51 = vand.u32 4294901760, %v4510_v60  ;;  %v4538_v21 = vsub.f32 %v11490_v52, %v4537_v35  ;;  %v4544_v46 = vand.u32 4294901760, %v11504_v4  ;;  %v4551_v33 = vand.u32 4294901760, %v11518_v0 }
 0x752   :  { %9495 = vmatprep.subr.bf16.mxu0 %v12016_v59 }
 0x753   :  { %9251 = vmatpush3.bf16.msra.mxu1 %v9250_v31  ;;  %v11998_v31 = vand.u32 4294901760, %v11451_v19  ;;  %v9508_v60 = vpack.c.bf16 %v4511_v51, %v4504_v55  ;;  %v11566_v51 = vsub.f32 %v11417_v24, %v4442_v32  ;;  %v4565_v55 = vand.u32 4294901760, %v11543_v48 }
 0x754   :  { %9252 = vmatprep.subr.bf16.mxu1 %v12016_v59  ;;  %v4545_v63 = vsub.f32 %v11504_v4, %v4544_v46  ;;  %v4552_v22 = vsub.f32 %v11518_v0, %v4551_v33  ;;  %v11583_v24 = vsub.f32 %v11439_v5, %v4445_v49 }
 0x755   :  { %9497 = vmatpush3.bf16.msra.mxu0 %v11434_v7  ;;  %v4524_v25 = vsub.f32 %v11451_v19, %v11998_v31  ;;  %v4518_v31 = vand.u32 4294901760, %v4517_v11  ;;  %v11559_v11 = vsub.f32 %v11415_v26, %v4439_v9  ;;  %v4532_v26 = vand.u32 4294901760, %v4531_v42 }
 0x756   :  { %9498 = vmatprep.subr.bf16.mxu0 %v12016_v59  ;;  %v4539_v9 = vand.u32 4294901760, %v4538_v21  ;;  %v4553_v42 = vand.u32 4294901760, %v4552_v22  ;;  %v11604_v21 = vsub.f32 %v11466_v54, %v4451_v27  ;;  %v11619_v54 = vsub.f32 %v11468_v41, %v4454_v10 }
 0x757   :  { %9254 = vmatpush3.bf16.msra.mxu1 %v9253_v12  ;;  %v4491_v12 = vand.u32 4294901760, %v11471_v61  ;;  %v4525_v43 = vand.u32 4294901760, %v4524_v25  ;;  %v4586_v27 = vand.u32 4294901760, %v11583_v24 }
 0x758   :  { %9255 = vmatprep.subr.bf16.mxu1 %v12016_v59  ;;  %v9514_v49 = vpack.c.bf16 %v4539_v9, %v4532_v26 }
 0x759   :  { %9500 = vmatpush3.bf16.msra.mxu0 %v11461_v2  ;;  %v9511_v25 = vpack.c.bf16 %v4525_v43, %v4518_v31  ;;  %v4566_v43 = vsub.f32 %v11543_v48, %v4565_v55  ;;  %v4572_v31 = vand.u32 4294901760, %v11559_v11  ;;  %v4587_v41 = vsub.f32 %v11583_v24, %v4586_v27 }
 0x75a   :  { %9501 = vmatprep.subr.bf16.mxu0 %v12016_v59 }
 0x75b   :  { %9257 = vmatpush3.bf16.msra.mxu1 %v9256_v30  ;;  %v4492_v30 = vsub.f32 %v11471_v61, %v4491_v12 }
 0x75c   :  { %9258 = vmatprep.subr.bf16.mxu1 %v12016_v59 }
 0x75d   :  { %9503 = vmatpush3.bf16.msra.mxu0 %v11497_v39  ;;  %v4493_v45 = vand.u32 4294901760, %v4492_v30  ;;  %v4579_v30 = vand.u32 4294901760, %v11566_v51 }
 0x75e   :  { %9504 = vmatprep.subr.bf16.mxu0 %v12016_v59 }
 0x75f   :  { %9260 = vmatpush3.bf16.msra.mxu1 %v9259_v50  ;;  %v4558_v50 = vand.u32 4294901760, %v11536_v23 }
 0x760   :  { %9261 = vmatprep.subr.bf16.mxu1 %v12016_v59 }
 0x761   :  { %9506 = vmatpush3.bf16.msra.mxu0 %v11525_v14  ;;  %v4559_v32 = vsub.f32 %v11536_v23, %v4558_v50 }
 0x762   :  { %9507 = vmatprep.subr.bf16.mxu0 %v12016_v59 }
 0x763   :  { %9263 = vmatpush3.bf16.msra.mxu1 %v9262_v15  ;;  %v12151_v15 = vand.u32 4294901760, %v11441_v40 }
 0x764   :  { %8454 = vmatmul.mubr.f32.vlgmr.msra.gmra.mrb[8].mxu0 %v4493_v45  ;;  %9264 = vmatprep.subr.bf16.mxu1 %v12016_v59  ;;  %v4567_v45 = vand.u32 4294901760, %v4566_v43  ;;  %v4607_v43 = vand.u32 4294901760, %v11619_v54 }
 0x765   :  { %9509 = vmatpush3.bf16.msra.mxu0 %v9508_v60  ;;  %8488 = vmatprep.mubr.msk.f32.mxu0 %vm9916_vm2, %v12032_v17  ;;  %v11597_v5 = vsub.f32 %v11441_v40, %v12151_v15  ;;  %v4546_v60 = vand.u32 4294901760, %v4545_v63  ;;  %v4560_v40 = vand.u32 4294901760, %v4559_v32  ;;  %v4600_v32 = vand.u32 4294901760, %v11604_v21 }
 0x766   :  { %9510 = vmatprep.subr.bf16.mxu0 %v12016_v59  ;;  %v4588_v15 = vand.u32 4294901760, %v4587_v41  ;;  %v9538_v41 = vpack.c.bf16 %v11490_v52, %v11474_v34 }
 0x767   :  { %9266 = vmatpush3.bf16.msra.mxu1 %v9265_v16  ;;  %v4573_v16 = vsub.f32 %v11559_v11, %v4572_v31  ;;  %v4593_v26 = vand.u32 4294901760, %v11597_v5  ;;  %v9520_v9 = vpack.c.bf16 %v4567_v45, %v4560_v40  ;;  %v5057_v40 = vsel %vm63_vm0, %v12114_v13, 0 }
 0x768   :  { %9267 = vmatprep.subr.bf16.mxu1 %v12016_v59 }
 0x769   :  { %9512 = vmatpush3.bf16.msra.mxu0 %v9511_v25  ;;  %v4580_v25 = vsub.f32 %v11566_v51, %v4579_v30  ;;  %v4574_v63 = vand.u32 4294901760, %v4573_v16  ;;  %v4594_v10 = vsub.f32 %v11597_v5, %v4593_v26 }
 0x76a   :  { %8104 = vmatmul.mubr.f32.vlgmr.msra.gmra.mrb[4].mxu1 %v11260_v57  ;;  %9513 = vmatprep.subr.bf16.mxu0 %v12016_v59 }
 0x76b   :  { %9269 = vmatpush3.bf16.msra.mxu1 %v12104_v47  ;;  %8138 = vmatprep.mubr.msk.f32.mxu1 %vm9916_vm2, %v12032_v17  ;;  %v9517_v47 = vpack.c.bf16 %v4553_v42, %v4546_v60  ;;  %v4581_v22 = vand.u32 4294901760, %v4580_v25  ;;  %v4601_v60 = vsub.f32 %v11604_v21, %v4600_v32  ;;  %v4608_v42 = vsub.f32 %v11619_v54, %v4607_v43 }
 0x76c   :  { %9270 = vmatprep.subr.bf16.mxu1 %v12016_v59  ;;  %v11648_v25 = vand.u32 4294901760, %v5057_v40 }
 0x76d   :  { %9515 = vmatpush3.bf16.msra.mxu0 %v9514_v49  ;;  %v4595_v49 = vand.u32 4294901760, %v4594_v10  ;;  %v4602_v45 = vand.u32 4294901760, %v4601_v60  ;;  %v4609_v16 = vand.u32 4294901760, %v4608_v42  ;;  %v12152_v10 = vand.u32 4294901760, %v11260_v57 }
 0x76e   :  { %9516 = vmatprep.subr.bf16.mxu0 %v12016_v59  ;;  %v5137_v13 = vsub.f32 %v5057_v40, %v11648_v25  ;;  %v9544_v57 = vpack.c.bf16 %v11543_v48, %v11536_v23  ;;  %v9550_v60 = vpack.c.bf16 %v11597_v5, %v11583_v24  ;;  %v9553_v40 = vpack.c.bf16 %v11619_v54, %v11604_v21  ;;  %v2410_v23 = vld [vmem:[#allocation5 + $0xf0] sm:$0x1] }
 0x76f   :  { %9272 = vmatpush3.bf16.msra.mxu1 %v12107_v18  ;;  %v9523_v18 = vpack.c.bf16 %v4581_v22, %v4574_v63 }
 0x770   :  { %9273 = vmatprep.subr.bf16.mxu1 %v12016_v59 }
 0x771   :  { %9518 = vmatpush3.bf16.msra.mxu0 %v9517_v47  ;;  %v9529_v47 = vpack.c.bf16 %v4609_v16, %v4602_v45  ;;  %v12154_v45 = vand.u32 4294901760, %v11426_v6 }
 0x772   :  { %9519 = vmatprep.subr.bf16.mxu0 %v12016_v59 }
 0x773   :  { %9275 = vmatpush3.bf16.msra.mxu1 %v12109_v1  ;;  %v9526_v1 = vpack.c.bf16 %v4595_v49, %v4588_v15  ;;  %v9547_v49 = vpack.c.bf16 %v11566_v51, %v11559_v11  ;;  %v5053_v51 = vld [vmem:[#allocation5 + $0x88] sm:$0xff] }
 0x774   :  { %9276 = vmatprep.subr.bf16.mxu1 %v12016_v59 }
 0x775   :  { %9521 = vmatpush3.bf16.msra.mxu0 %v9520_v9  ;;  %v5138_v9 = vand.u32 4294901760, %v5137_v13 }
 0x776   :  { %9522 = vmatprep.subr.bf16.mxu0 %v12016_v59 }
 0x777   :  { %9278 = vmatpush3.bf16.msra.mxu1 %v12111_v58  ;;  %v9532_v58 = vpack.c.bf16 %v11426_v6, %v11423_v8  ;;  %v5139_v63 = vsub.f32 %v5137_v13, %v5138_v9  ;;  %v9589_v6 = vpack.c.bf16 %v4551_v33, %v4544_v46 }
 0x778   :  { %9279 = vmatprep.subr.bf16.mxu1 %v12016_v59 }
 0x779   :  { %9524 = vmatpush3.bf16.msra.mxu0 %v9523_v18 }
 0x77a   :  { %9525 = vmatprep.subr.bf16.mxu0 %v12016_v59 }
 0x77b   :  { %9281 = vmatpush3.bf16.msra.mxu1 %v12112_v37  ;;  %v5052_v37 = vld [vmem:[#allocation5 + $0x80] sm:$0xff] }
 0x77c   :  { %9282 = vmatprep.subr.bf16.mxu1 %v12016_v59  ;;  %v5055_v22 = vsel %vm50_vm1, %v5052_v37, 0 }
 0x77d   :  { %9527 = vmatpush3.bf16.msra.mxu0 %v9526_v1  ;;  %v5125_v18 = vand.u32 4294901760, %v5055_v22  ;;  %v12153_v1 = vand.u32 4294901760, %v11423_v8  ;;  %v9586_v8 = vpack.c.bf16 %v4537_v35, %v4530_v20 }
 0x77e   :  { %9528 = vmatprep.subr.bf16.mxu0 %v12016_v59 }
 0x77f   :  { %9284 = vmatpush3.bf16.msra.mxu1 %v12116_v38  ;;  %v9535_v38 = vpack.c.bf16 %v11451_v19, %v11448_v28  ;;  %v11688_v15 = vsub.f32 %v5055_v22, %v5125_v18  ;;  %v9580_v16 = vpack.c.bf16 %v12154_v45, %v12153_v1 }
 0x780   :  { %9285 = vmatprep.subr.bf16.mxu1 %v12016_v59 }
 0x781   :  { %9530 = vmatpush3.bf16.msra.mxu0 %v9529_v47  ;;  %v5127_v42 = vand.u32 4294901760, %v11688_v15  ;;  %v12155_v47 = vand.u32 4294901760, %v11448_v28  ;;  %v9592_v28 = vpack.c.bf16 %v4565_v55, %v4558_v50 }
 0x782   :  { %9531 = vmatprep.subr.bf16.mxu0 %v12016_v59 }
 0x783   :  { %9287 = vmatpush3.bf16.msra.mxu1 %v12121_v44  ;;  %v5140_v44 = vand.u32 4294901760, %v5139_v63 }
 0x784   :  { %8489 = vmatmul.mubr.f32.vlgmr.msra.gmra.mrb[8].mxu0 %v11443_v29  ;;  %9288 = vmatprep.subr.bf16.mxu1 %v12016_v59 }
 0x785   :  { %9533 = vmatpush3.bf16.msra.mxu0 %v9532_v58  ;;  %8523 = vmatprep.mubr.msk.f32.mxu0 %vm9916_vm2, %v12032_v17 }
 0x786   :  { %9534 = vmatprep.subr.bf16.mxu0 %v12016_v59 }
 0x787   :  { %9290 = vmatpush3.bf16.msra.mxu1 %v12130_v3  ;;  %v9541_v3 = vpack.c.bf16 %v11518_v0, %v11504_v4  ;;  %v9598_v4 = vpack.c.bf16 %v4593_v26, %v4586_v27 }
 0x788   :  { %8636 = vmatprep.subr.mxu1 %v12032_v17 }
 0x789   :  { %9536 = vmatpush3.bf16.msra.mxu0 %v9535_v38 }
 0x78a   :  { %8139 = vmatmul.mubr.f32.vlgmr.msra.gmra.mrb[4].mxu1 %v12152_v10  ;;  %9537 = vmatprep.subr.bf16.mxu0 %v12016_v59  ;;  %v6009_v10 = vld [vmem:[#allocation5 + $0xb8] sm:$0xff] }
 0x78b   :  { %8637 = vmatpush3.msra.mxu1 %v5140_v44  ;;  %8638 = vmatprep.mubr.msk.f32.mxu1 %vm9916_vm2, %v12032_v17 }
 0x78c   :  { %8641 = vmatprep.subr.mxu1 %v12032_v17 }
 0x78d   :  { %9539 = vmatpush3.bf16.msra.mxu0 %v9538_v41 }
 0x78e   :  { %8639 = vmatmul.mubr.f32.vlgmr.msra.gmra.mrb[6].mxu1 %v5125_v18  ;;  %9540 = vmatprep.subr.bf16.mxu0 %v12016_v59 }
 0x78f   :  { %8642 = vmatpush3.msra.mxu1 %v5137_v13  ;;  %8643 = vmatprep.mubr.msk.f32.mxu1 %vm9916_vm2, %v12032_v17  ;;  %v12156_v13 = vand.u32 4294901760, %v11451_v19  ;;  %v9595_v19 = vpack.c.bf16 %v4579_v30, %v4572_v31 }
 0x790   :  { %8646 = vmatprep.subr.mxu1 %v12032_v17 }
 0x791   :  { %9542 = vmatpush3.bf16.msra.mxu0 %v9541_v3  ;;  %v9583_v58 = vpack.c.bf16 %v12156_v13, %v12155_v47  ;;  %v6021_v3 = vsel %vm6016_vm7, %v6009_v10, 0 }
 0x792   :  { %9543 = vmatprep.subr.bf16.mxu0 %v12016_v59 }
 0x795   :  { %9545 = vmatpush3.bf16.msra.mxu0 %v9544_v57 }
 0x796   :  { %8644 = vmatmul.mubr.f32.vlgmr.msra.gmra.mrb[6].mxu1 %v11688_v15  ;;  %9546 = vmatprep.subr.bf16.mxu0 %v12016_v59 }
 0x797   :  { %8647 = vmatpush3.msra.mxu1 %v11648_v25  ;;  %8648 = vmatprep.mubr.msk.f32.mxu1 %vm9916_vm2, %v12032_v17 }
 0x798   :  { %8651 = vmatprep.subr.mxu1 %v12032_v17 }
 0x799   :  { %9548 = vmatpush3.bf16.msra.mxu0 %v9547_v49  ;;  %v11812_v49 = vand.u32 4294901760, %v6021_v3 }
 0x79a   :  { %9549 = vmatprep.subr.bf16.mxu0 %v12016_v59 }
 0x79b   :  { %v6107_v1 = vsub.f32 %v6021_v3, %v11812_v49 }
 0x79d   :  { %9551 = vmatpush3.bf16.msra.mxu0 %v9550_v60 }
 0x79e   :  { %8649 = vmatmul.mubr.f32.vlgmr.msra.gmra.mrb[6].mxu1 %v5127_v42  ;;  %9552 = vmatprep.subr.bf16.mxu0 %v12016_v59 }
 0x79f   :  { %8652 = vmatpush3.msra.mxu1 %v5138_v9  ;;  %8653 = vmatprep.mubr.msk.f32.mxu1 %vm9916_vm2, %v12032_v17  ;;  %v6008_v9 = vld [vmem:[#allocation5 + $0xb0] sm:$0xff] }
 0x7a0   :  { %8656 = vmatprep.subr.mxu1 %v12032_v17  ;;  %v6018_v37 = vsel %vm6016_vm7, %v6008_v9, 0 }
 0x7a1   :  { %9554 = vmatpush3.bf16.msra.mxu0 %v9553_v40  ;;  %v11803_v38 = vand.u32 4294901760, %v6018_v37  ;;  %v5509_v40 = vld [vmem:[#allocation5 + $0xa8] sm:$0xff] }
 0x7a2   :  { %9555 = vmatprep.subr.bf16.mxu0 %v12016_v59 }
 0x7a3   :  { %v11806_v63 = vsub.f32 %v6018_v37, %v11803_v38 }
 0x7a4   :  { %8524 = vmatmul.mubr.f32.vlgmr.msra.gmra.mrb[8].mxu0 %v11471_v61  ;;  %v9601_v61 = vpack.c.bf16 %v4607_v43, %v4600_v32 }
 0x7a5   :  { %9557 = vmatpush3.bf16.msra.mxu0 %v11363_v62  ;;  %8558 = vmatprep.mubr.msk.f32.mxu0 %vm9916_vm2, %v12032_v17  ;;  %v6098_v22 = vand.u32 4294901760, %v11806_v63 }
 0x7a6   :  { %8654 = vmatmul.mubr.f32.vlgmr.msra.gmra.mrb[6].mxu1 %v5125_v18  ;;  %9558 = vmatprep.subr.bf16.mxu0 %v12016_v59 }
 0x7a7   :  { %8657 = vmatpush3.msra.mxu1 %v11648_v25  ;;  %8658 = vmatprep.mubr.msk.f32.mxu1 %vm9916_vm2, %v12032_v17  ;;  %v6099_v44 = vsub.f32 %v11806_v63, %v6098_v22 }
 0x7a9   :  { %9560 = vmatpush3.bf16.msra.mxu0 %v11375_v53  ;;  %v6100_v41 = vand.u32 4294901760, %v6099_v44 }
 0x7aa   :  { %9561 = vmatprep.subr.bf16.mxu0 %v12016_v59 }
 0x7ad   :  { %9563 = vmatpush3.bf16.msra.mxu0 %v11392_v36 }
 0x7ae   :  { %9564 = vmatprep.subr.bf16.mxu0 %v12016_v59  ;;  %8659 = vmatmul.mubr.f32.vlgmr.msra.gmra.mrb[6].mxu1 %v5125_v18  ;;  %v6010_v18 = vld [vmem:[#allocation5 + $0xc0] sm:$0xff] }
 0x7af   :  { %v6024_v57 = vsel %vm6016_vm7, %v6010_v18, 0 }
 0x7b0   :  { %v11814_v60 = vand.u32 4294901760, %v6024_v57 }
 0x7b1   :  { %9566 = vmatpush3.bf16.msra.mxu0 %v11410_v56 }
 0x7b2   :  { %9567 = vmatprep.subr.bf16.mxu0 %v12016_v59  ;;  %v6117_v47 = vsub.f32 %v6024_v57, %v11814_v60 }
 0x7b5   :  { %9569 = vmatpush3.bf16.msra.mxu0 %v11434_v7 }
 0x7b6   :  { %9570 = vmatprep.subr.bf16.mxu0 %v12016_v59 }
 0x7b9   :  { %9572 = vmatpush3.bf16.msra.mxu0 %v11461_v2 }
 0x7ba   :  { %9573 = vmatprep.subr.bf16.mxu0 %v12016_v59 }
 0x7bd   :  { %9575 = vmatpush3.bf16.msra.mxu0 %v11497_v39 }
 0x7be   :  { %9576 = vmatprep.subr.bf16.mxu0 %v12016_v59 }
 0x7c1   :  { %9578 = vmatpush3.bf16.msra.mxu0 %v11525_v14 }
 0x7c2   :  { %9579 = vmatprep.subr.bf16.mxu0 %v12016_v59 }
 0x7c4   :  { %8559 = vmatmul.mubr.f32.vlgmr.msra.gmra.mrb[8].mxu0 %v4491_v12 }
 0x7c5   :  { %9581 = vmatpush3.bf16.msra.mxu0 %v9580_v16  ;;  %8593 = vmatprep.mubr.msk.f32.mxu0 %vm9916_vm2, %v12032_v17  ;;  %v5508_v16 = vld [vmem:[#allocation5 + $0xa0] sm:$0xff] }
 0x7c6   :  { %9582 = vmatprep.subr.bf16.mxu0 %v12016_v59 }
 0x7c9   :  { %9584 = vmatpush3.bf16.msra.mxu0 %v9583_v58 }
 0x7ca   :  { %9585 = vmatprep.subr.bf16.mxu0 %v12016_v59 }
 0x7cd   :  { %9587 = vmatpush3.bf16.msra.mxu0 %v9586_v8 }
 0x7ce   :  { %9588 = vmatprep.subr.bf16.mxu0 %v12016_v59 }
 0x7d1   :  { %9590 = vmatpush3.bf16.msra.mxu0 %v9589_v6 }
 0x7d2   :  { %9591 = vmatprep.subr.bf16.mxu0 %v12016_v59 }
 0x7d5   :  { %9593 = vmatpush3.bf16.msra.mxu0 %v9592_v28  ;;  %v6108_v28 = vand.u32 4294901760, %v6107_v1 }
 0x7d6   :  { %9594 = vmatprep.subr.bf16.mxu0 %v12016_v59 }
 0x7d9   :  { %9596 = vmatpush3.bf16.msra.mxu0 %v9595_v19 }
 0x7da   :  { %9597 = vmatprep.subr.bf16.mxu0 %v12016_v59 }
 0x7dd   :  { %9599 = vmatpush3.bf16.msra.mxu0 %v9598_v4 }
 0x7de   :  { %9600 = vmatprep.subr.bf16.mxu0 %v12016_v59 }
 0x7e1   :  { %9602 = vmatpush3.bf16.msra.mxu0 %v9601_v61  ;;  %v6118_v61 = vand.u32 4294901760, %v6117_v47 }
 0x7e2   :  { %9603 = vmatprep.subr.bf16.mxu0 %v12016_v59 }
 0x7e4   :  { %8594 = vmatmul.mubr.f32.vlgmr.msra.gmra.mrb[8].mxu0 %v11443_v29 }
 0x7e5   :  { %9605 = vmatpush3.bf16.msra.mxu0 %v11363_v62  ;;  %8628 = vmatprep.mubr.msk.f32.mxu0 %vm9916_vm2, %v12032_v17  ;;  %v5128_v62 = vsub.f32 %v11688_v15, %v5127_v42  ;;  %v6011_v15 = vld [vmem:[#allocation5 + $0xc8] sm:$0xff] }
 0x7e6   :  { %9606 = vmatprep.subr.bf16.mxu0 %v12016_v59  ;;  %v6027_v42 = vsel %vm6016_vm7, %v6011_v15, 0 }
 0x7e7   :  { %v11817_v45 = vand.u32 4294901760, %v6027_v42 }
 0x7e9   :  { %9608 = vmatpush3.bf16.msra.mxu0 %v11375_v53  ;;  %v5129_v53 = vand.u32 4294901760, %v5128_v62  ;;  %v6127_v19 = vsub.f32 %v6027_v42, %v11817_v45 }
 0x7ea   :  { %9609 = vmatprep.subr.bf16.mxu0 %v12016_v59 }
 0x7ed   :  { %9611 = vmatpush3.bf16.msra.mxu0 %v11392_v36  ;;  %v5506_v36 = vld [vmem:[#allocation5 + $0x90] sm:$0xff] }
 0x7ee   :  { %9612 = vmatprep.subr.bf16.mxu0 %v12016_v59 }
 0x7f1   :  { %9614 = vmatpush3.bf16.msra.mxu0 %v11410_v56 }
 0x7f2   :  { %9615 = vmatprep.subr.bf16.mxu0 %v12016_v59 }
 0x7f5   :  { %9617 = vmatpush3.bf16.msra.mxu0 %v11434_v7 }
 0x7f6   :  { %9618 = vmatprep.subr.bf16.mxu0 %v12016_v59 }
 0x7f9   :  { %9620 = vmatpush3.bf16.msra.mxu0 %v11461_v2 }
 0x7fa   :  { %9621 = vmatprep.subr.bf16.mxu0 %v12016_v59 }
 0x7fd   :  { %9623 = vmatpush3.bf16.msra.mxu0 %v11497_v39 }
 0x7fe   :  { %9624 = vmatprep.subr.bf16.mxu0 %v12016_v59  ;;  %v5512_v59 = vsel %vm5510_vm5, %v5506_v36, 0 }
 0x7ff   :  { %v5583_v56 = vand.u32 4294901760, %v5512_v59 }
 0x801   :  { %9626 = vmatpush3.bf16.msra.mxu0 %v11525_v14  ;;  %v5584_v34 = vsub.f32 %v5512_v59, %v5583_v56  ;;  %v5507_v14 = vld [vmem:[#allocation5 + $0x98] sm:$0xff]  ;;  %v6109_v59 = vsub.f32 %v6107_v1, %v6108_v28 }
 0x802   :  { %8631 = vmatprep.subr.mxu0 %v12032_v17  ;;  %v5515_v20 = vsel %vm5510_vm5, %v5507_v14, 0 }
 0x803   :  { %v5585_v52 = vand.u32 4294901760, %v5584_v34  ;;  %v5593_v35 = vand.u32 4294901760, %v5515_v20 }
 0x804   :  { %8629 = vmatmul.mubr.f32.vlgmr.msra.gmra.mrb[8].mxu0 %v11443_v29 }
 0x805   :  { %8632 = vmatpush3.msra.mxu0 %v11648_v25  ;;  %8633 = vmatprep.mubr.msk.f32.mxu0 %vm9916_vm2, %v12032_v17  ;;  %v5586_v39 = vsub.f32 %v5584_v34, %v5585_v52  ;;  %v5594_v17 = vsub.f32 %v5515_v20, %v5593_v35 }
 0x807   :  { %v5587_v12 = vand.u32 4294901760, %v5586_v39  ;;  %v5595_v50 = vand.u32 4294901760, %v5594_v17 }
 0x808   :  { %8634 = vmatmul.mubr.f32.vlgmr.msra.gmra.mrb[10].mxu0 %v5129_v53 }
 0x809   :  { %8663 = vmatprep.mubr.f32.mxu1 %v5587_v12  ;;  %v5596_v5 = vsub.f32 %v5594_v17, %v5595_v50 }
 0x80b   :  { %v5597_v27 = vand.u32 4294901760, %v5596_v5 }
 0x85d   :  { %v3519_v7 = vpop.f32.mrb[4].mxu1 }
 0x85e   :  { %v8140_v2 = vpop.f32.mrb[5].mxu1  ;;  %v9660_v48 = vadd.f32 %v3519_v7, %v2410_v23 }
 0x85f   :  { %v6119_v2 = vsub.f32 %v6117_v47, %v6118_v61 }
 0x861   :  { %v6120_v20 = vand.u32 4294901760, %v6119_v2 }
 0x881   :  { %v5501_v0 = vpop.f32.mrb[6].mxu1 }
 0x882   :  { %v8660_v29 = vpop.f32.mrb[7].mxu1 }
 0x8d7   :  { %v5045_v46 = vpop.f32.mrb[8].mxu0 }
 0x8d8   :  { %v9661_v33 = vadd.f32 %v9660_v48, %v5045_v46  ;;  %v8630_v11 = vpop.f32.mrb[9].mxu0 }
 0x8da   :  { %5051 = vst.msk [vmem:[#allocation8] sm:$0x1] %vm5050_vm6, %v9661_v33 }
 0x8db   :  { %v5131_v55 = vpop.f32.mrb[10].mxu0 }
 0x8dc   :  { %v5132_v24 = vadd.f32 %v5131_v55, %v5053_v51  ;;  %v8635_v31 = vpop.f32.mrb[11].mxu0 }
 0x8de   :  { %v9663_v30 = vadd.f32 %v5501_v0, %v5132_v24  ;;  %v6110_v0 = vand.u32 4294901760, %v6109_v59 }
 0x8e0   :  { %v5505_v21 = vmax.f32 %v9663_v30, 0.0 }
 0x8e2   :  { %v5518_v54 = vand.u32 4294901760, %v5505_v21 }
 0x8e4   :  { %v5605_v26 = vsub.f32 %v5505_v21, %v5518_v54  ;;  %8661 = vmatprep.subr.mxu1 %v5518_v54 }
 0x8e5   :  { %8662 = vmatpush3.msra.mxu1 %v5518_v54 }
 0x8e6   :  { %8664 = vmatmul.mubr.f32.vlgmr.msra.gmra.mrb[8].mxu1 %v5597_v27  ;;  %v5606_v32 = vand.u32 4294901760, %v5605_v26 }
 0x8e7   :  { %8668 = vmatprep.mubr.f32.mxu1 %v5583_v56 }
 0x8e8   :  { %v5607_v43 = vsub.f32 %v5605_v26, %v5606_v32 }
 0x8ea   :  { %v5608_v25 = vand.u32 4294901760, %v5607_v43 }
 0x8ec   :  { %8666 = vmatprep.subr.mxu1 %v5608_v25 }
 0x8ed   :  { %8667 = vmatpush3.msra.mxu1 %v5608_v25 }
 0x8ee   :  { %8669 = vmatmul.mubr.f32.vlgmr.msra.gmra.mrb[8].mxu1 %v5593_v35  ;;  %8671 = vmatprep.subr.mxu1 %v5605_v26 }
 0x8ef   :  { %8672 = vmatpush3.msra.mxu1 %v5605_v26  ;;  %8673 = vmatprep.mubr.f32.mxu1 %v5584_v34 }
 0x8f0   :  { %8676 = vmatprep.subr.mxu1 %v5518_v54 }
 0x8f6   :  { %8674 = vmatmul.mubr.f32.vlgmr.msra.gmra.mrb[8].mxu1 %v5594_v17 }
 0x8f7   :  { %8677 = vmatpush3.msra.mxu1 %v5518_v54  ;;  %8678 = vmatprep.mubr.f32.mxu1 %v5585_v52 }
 0x8f8   :  { %8681 = vmatprep.subr.mxu1 %v5606_v32 }
 0x8fe   :  { %8679 = vmatmul.mubr.f32.vlgmr.msra.gmra.mrb[8].mxu1 %v5595_v50 }
 0x8ff   :  { %8682 = vmatpush3.msra.mxu1 %v5606_v32  ;;  %8683 = vmatprep.mubr.f32.mxu1 %v5583_v56 }
 0x900   :  { %8686 = vmatprep.subr.mxu1 %v5518_v54 }
 0x906   :  { %8684 = vmatmul.mubr.f32.vlgmr.msra.gmra.mrb[8].mxu1 %v5593_v35 }
 0x907   :  { %8687 = vmatpush3.msra.mxu1 %v5518_v54  ;;  %8688 = vmatprep.mubr.f32.mxu1 %v5583_v56  ;;  %v6128_v56 = vand.u32 4294901760, %v6127_v19 }
 0x909   :  { %v6129_v29 = vsub.f32 %v6127_v19, %v6128_v56 }
 0x90b   :  { %v6130_v46 = vand.u32 4294901760, %v6129_v29 }
 0x90e   :  { %8689 = vmatmul.mubr.f32.vlgmr.msra.gmra.mrb[8].mxu1 %v5593_v35 }
 0x90f   :  { %8695 = vmatprep.mubr.f32.mxu1 %v6100_v41 }
 0x9e1   :  { %v8690_v13 = vpop.f32.mrb[8].mxu1 }
 0x9e2   :  { %v9664_v58 = vadd.f32 %v8690_v13, %v5509_v40  ;;  %v5996_v8 = vpop.f32.mrb[9].mxu1 }
 0x9e3   :  { %v9665_v6 = vadd.f32 %v5996_v8, %v5508_v16 }
 0x9e4   :  { %v6007_v4 = vmax.f32 %v9664_v58, 0.0 }
 0x9e5   :  { %v6006_v62 = vmax.f32 %v9665_v6, 0.0 }
 0x9e6   :  { %v6033_v53 = vand.u32 4294901760, %v6007_v4 }
 0x9e7   :  { %v6030_v36 = vand.u32 4294901760, %v6006_v62 }
 0x9e8   :  { %v6145_v7 = vsub.f32 %v6007_v4, %v6033_v53 }
 0x9e9   :  { %v9627_v34 = vpack.c.bf16 %v6033_v53, %v6030_v36  ;;  %v6138_v52 = vsub.f32 %v6006_v62, %v6030_v36 }
 0x9ea   :  { %v6146_v39 = vand.u32 4294901760, %v6145_v7 }
 0x9eb   :  { %v6139_v12 = vand.u32 4294901760, %v6138_v52  ;;  %9628 = vmatprep.subr.bf16.mxu1 %v9627_v34  ;;  %v9635_v14 = vpack.c.bf16 %v6145_v7, %v6138_v52 }
 0x9ec   :  { %9630 = vmatpush3.bf16.msra.mxu1 %v9627_v34  ;;  %v6147_v35 = vsub.f32 %v6145_v7, %v6146_v39 }
 0x9ed   :  { %v6140_v23 = vsub.f32 %v6138_v52, %v6139_v12  ;;  %v9643_v48 = vpack.c.bf16 %v6146_v39, %v6139_v12 }
 0x9ee   :  { %v6148_v17 = vand.u32 4294901760, %v6147_v35 }
 0x9ef   :  { %8696 = vmatmul.mubr.f32.vlgmr.msra.gmra.mrb[10].mxu1 %v6110_v0  ;;  %v6141_v33 = vand.u32 4294901760, %v6140_v23 }
 0x9f0   :  { %8698 = vmatprep.mubr.f32.mxu1 %v6120_v20 }
 0x9f1   :  { %v9631_v11 = vpack.c.bf16 %v6148_v17, %v6141_v33 }
 0x9f3   :  { %8699 = vmatmul.mubr.f32.gmra.mrb[12].mxu1 %v6130_v46  ;;  %9632 = vmatprep.subr.bf16.mxu1 %v9631_v11 }
 0x9f4   :  { %9634 = vmatpush3.bf16.msra.mxu1 %v9631_v11  ;;  %8705 = vmatprep.mubr.f32.mxu1 %v11803_v38 }
 0x9f5   :  { %9636 = vmatprep.subr.bf16.mxu1 %v9635_v14 }
 0x9f7   :  { %8706 = vmatmul.mubr.f32.vlgmr.msra.gmra.mrb[10].mxu1 %v11812_v49 }
 0x9f8   :  { %9638 = vmatpush3.bf16.msra.mxu1 %v9635_v14  ;;  %8708 = vmatprep.mubr.f32.mxu1 %v11814_v60 }
 0x9f9   :  { %9640 = vmatprep.subr.bf16.mxu1 %v9627_v34 }
 0x9fb   :  { %8709 = vmatmul.mubr.f32.gmra.mrb[12].mxu1 %v11817_v45 }
 0x9fc   :  { %8715 = vmatprep.mubr.f32.mxu1 %v11806_v63 }
 0x9ff   :  { %8716 = vmatmul.mubr.f32.vlgmr.msra.gmra.mrb[10].mxu1 %v6107_v1 }
 0xa00   :  { %9642 = vmatpush3.bf16.msra.mxu1 %v9627_v34  ;;  %8718 = vmatprep.mubr.f32.mxu1 %v6117_v47 }
 0xa01   :  { %9644 = vmatprep.subr.bf16.mxu1 %v9643_v48 }
 0xa03   :  { %8719 = vmatmul.mubr.f32.gmra.mrb[12].mxu1 %v6127_v19 }
 0xa04   :  { %8725 = vmatprep.mubr.f32.mxu1 %v6098_v22 }
 0xa07   :  { %8726 = vmatmul.mubr.f32.vlgmr.msra.gmra.mrb[10].mxu1 %v6108_v28 }
 0xa08   :  { %9646 = vmatpush3.bf16.msra.mxu1 %v9643_v48  ;;  %8728 = vmatprep.mubr.f32.mxu1 %v6118_v61 }
 0xa09   :  { %9648 = vmatprep.subr.bf16.mxu1 %v9627_v34 }
 0xa0b   :  { %8729 = vmatmul.mubr.f32.gmra.mrb[12].mxu1 %v6128_v56 }
 0xa0c   :  { %8735 = vmatprep.mubr.f32.mxu1 %v11803_v38 }
 0xa0f   :  { %8736 = vmatmul.mubr.f32.vlgmr.msra.gmra.mrb[10].mxu1 %v11812_v49 }
 0xa10   :  { %9650 = vmatpush3.bf16.msra.mxu1 %v9627_v34  ;;  %8738 = vmatprep.mubr.f32.mxu1 %v11814_v60 }
 0xa13   :  { %8739 = vmatmul.mubr.f32.gmra.mrb[12].mxu1 %v11817_v45 }
 0xa14   :  { %8745 = vmatprep.mubr.f32.mxu1 %v11803_v38 }
 0xa17   :  { %8746 = vmatmul.mubr.f32.vlgmr.msra.gmra.mrb[10].mxu1 %v11812_v49 }
 0xa18   :  { %8748 = vmatprep.mubr.f32.mxu1 %v11814_v60 }
 0xa1b   :  { %8749 = vmatmul.mubr.f32.gmra.mrb[12].mxu1 %v11817_v45 }
 0xa1c   :  { %9867 = shalt.err (!%p9864_p6)
}
 0xa1d   :  { %s9868_s18 = scalar_lea.hbm %s11866_s3, 16 }
 0xa1e   :  { %p9869_p7 = scmp.ne.s32.totalorder %s11866_s3, %s9868_s18  ;;  %p9872_p8 = scmp.lt.u32.totalorder %s9868_s18, %s11866_s3 }
 0xa20   :  { %p9874_p9 = pnand %p9872_p8, %p9869_p7 }
 0xa22   :  { %9877 = shalt.err (!%p9874_p9)
}
 0xa23   :  { %6646 = dma.vmem_to_hbm [thread:$0]  %s6644_s13, 16, %s11866_s3, [#allocation9]   ;;  %v6013_v51 = vld [vmem:[#allocation5 + $0xd8] sm:$0xff]  ;;  %v6012_v50 = vld [vmem:[#allocation5 + $0xd0] sm:$0xff]  ;;  %v6015_v5 = vld [vmem:[#allocation5 + $0xe8] sm:$0xff] }
 0xa24   :  { %v6014_v54 = vld [vmem:[#allocation5 + $0xe0] sm:$0xff]  ;;  %s9919_s25 = smov [#allocation7]  }
 0xa25   :  { %s6630_s26 = sshll.u32 %s9919_s25, 4  ;;  %s6631_s26 = int_to_ptr.vmem [resolvable:$true] %s6630_s26 }
 0xa26   :  { %s9878_s3 = scalar_lea.vmem %s6631_s26, 512  ;;  %p9883_p11 = scmp.lt.s32.totalorder %s6631_s26, %s6631_s26 }
 0xa27   :  { %p9879_p10 = scmp.ne.s32.totalorder %s6631_s26, %s9878_s3  ;;  %p9884_p12 = scmp.lt.s32.totalorder %s9878_s3, %s9878_s3 }
 0xa29   :  { %p9885_p13 = por %p9884_p12, %p9883_p11 }
 0xa2b   :  { %p9886_p0 = pnand %p9885_p13, %p9879_p10 }
 0xaea   :  { %v8747_v55 = vpop.f32.mrb[10].mxu1 }
 0xaeb   :  { %v9666_v24 = vadd.f32 %v8747_v55, %v6013_v51  ;;  %v6595_v31 = vpop.f32.mrb[11].mxu1 }
 0xaec   :  { %v9667_v30 = vadd.f32 %v6595_v31, %v6012_v50 }
 0xaed   :  { %v6618_v21 = vmax.f32 %v9666_v24, 0.0 }
 0xaee   :  { %v6617_v27 = vmax.f32 %v9667_v30, 0.0  ;;  %v8750_v26 = vpop.f32.mrb[12].mxu1 }
 0xaef   :  { %6622 = vst [vmem:[#allocation7 + $0x8] sm:$0xff] %v6618_v21  ;;  %v9668_v32 = vadd.f32 %v8750_v26, %v6015_v5  ;;  %v6607_v43 = vpop.f32.mrb[13].mxu1 }
 0xaf0   :  { %6621 = vst [vmem:[#allocation7] sm:$0xff] %v6617_v27  ;;  %v9669_v25 = vadd.f32 %v6607_v43, %v6014_v54 }
 0xaf1   :  { %v6620_v9 = vmax.f32 %v9668_v32, 0.0 }
 0xaf2   :  { %v6619_v37 = vmax.f32 %v9669_v25, 0.0 }
 0xaf3   :  { %6624 = vst [vmem:[#allocation7 + $0x18] sm:$0xff] %v6620_v9 }
 0xaf4   :  { %6623 = vst [vmem:[#allocation7 + $0x10] sm:$0xff] %v6619_v37 }
 0xaf5   :  { %9889 = shalt.err (!%p9886_p0)
}
 0xaf6   :  { %s9890_s29 = scalar_lea.hbm %s11865_s2, 512 }
 0xaf7   :  { %p9891_p1 = scmp.ne.s32.totalorder %s11865_s2, %s9890_s29  ;;  %p9894_p2 = scmp.lt.u32.totalorder %s9890_s29, %s11865_s2 }
 0xaf9   :  { %p9896_p3 = pnand %p9894_p2, %p9891_p1 }
 0xafb   :  { %9899 = shalt.err (!%p9896_p3)
}
 0xafc   :  { %6636 = dma.vmem_to_hbm [thread:$0]  %s6631_s26, 512, %s11865_s2, [#allocation4], %s9910_s0, %s9910_s0, %s9911_s7  }
 0xafd   :  { %9904 = dma.done.wait [#allocation4], 512  }
 0xafe   :  { %9905 = vsyncadd [#allocation4], 4294966784 }
 0xaff   :  { %9906 = dma.done.wait [#allocation9], 16  }
 0xb00   :  { %9907 = vsyncadd [#allocation9], 4294967280 }
 0xb01   :  { %6653 = vsyncpa [#allocation3], 1 }
 0xb02   :  { %6654 = vsyncpa [#allocation6], 1 }
 0xb03   :  { %6655 = vsyncpa [#allocation4], 1 }
 0xb04   :  { %6656 = vsyncpa [#allocation9], 1 }

</bundles_post_ra>
